<compile_context>
chip_gen: v7x
topology: tpu7x:2x2x1
jax: 0.10.0
libtpu: 0.0.40
codegen_flags: <defaults>
</compile_context>

<pallas_src>
import functools

import jax
import jax.numpy as jnp
from jax import lax
from jax.experimental import pallas as pl
from jax.experimental.pallas import tpu as pltpu

# MXU operand dtype: bf16 runs the MXU at full rate on v5e/v6e/v7x and halves
# the VMEM footprint of the im2col staging + padded-activation scratch.
# Accumulation is always f32 (preferred_element_type).
MXU_DTYPE = jnp.bfloat16


# ---------------------------------------------------------------------------
# Small helpers (trace-time)
# ---------------------------------------------------------------------------

def _bytes(shape, dtype):
    n = 1
    for d in shape:
        n *= int(d)
    return n * jnp.dtype(dtype).itemsize


def _vmem_limit(block_bytes, scratch_bytes):
    """Scoped-VMEM budget: double-buffered I/O blocks + scratch, 2x headroom,
    floored at 32 MiB and capped under v7x's 64 MiB physical VMEM."""
    need = 2 * block_bytes + scratch_bytes
    return int(min(max(2 * need, 32 * 1024 * 1024), 64 * 1024 * 1024))


def _group_avg_matrix(C, G, hw):
    """(C, C) matrix A with A[i,j] = 1/(hw*C//G) if i,j share a group else 0,
    so that group_mean_per_channel = per_channel_sum @ A (one tiny matmul)."""
    cg = C // G
    g = jnp.arange(C) // cg
    m = (g[:, None] == g[None, :]).astype(jnp.float32)
    return m / float(hw * cg)


# ---------------------------------------------------------------------------
# In-kernel helpers
# ---------------------------------------------------------------------------

def _zero_halo(pad_ref, H, W, C):
    """Zero only the 1-pixel halo of a (H+2, W+2, C) padded buffer.
    The interior is fully overwritten every grid step, so no full memset."""
    pad_ref[0, :, :] = jnp.zeros((W + 2, C), MXU_DTYPE)
    pad_ref[H + 1, :, :] = jnp.zeros((W + 2, C), MXU_DTYPE)
    pad_ref[:, 0, :] = jnp.zeros((H + 2, C), MXU_DTYPE)
    pad_ref[:, W + 1, :] = jnp.zeros((H + 2, C), MXU_DTYPE)


def _group_norm_silu(xf, avg, gamma, beta, eps):
    """Two-pass GroupNorm (biased var, PyTorch semantics) + SiLU on (N, C).
    `avg` is the precomputed (C, C) group-averaging matrix (hoisted out of the
    kernel; no per-step iota/compare rebuilds)."""
    sum_c = jnp.sum(xf, axis=0, keepdims=True)                              # (1, C)
    mean_c = jnp.dot(sum_c, avg, preferred_element_type=jnp.float32)        # (1, C)
    diff = xf - mean_c
    ss_c = jnp.sum(diff * diff, axis=0, keepdims=True)                      # (1, C)
    var_c = jnp.dot(ss_c, avg, preferred_element_type=jnp.float32)          # (1, C)
    y = diff * lax.rsqrt(var_c + eps) * gamma + beta
    return y * jax.nn.sigmoid(y)                                            # SiLU


def _im2col_conv(pad_ref, col_ref, w_mat, H, W, C):
    """3x3 'same' conv as ONE MXU matmul via a bf16 im2col staging buffer.

    pad_ref : (H+2, W+2, C) zero-halo'd activation (MXU_DTYPE) in VMEM.
    col_ref : (H*W, >= 9*C) MXU_DTYPE staging buffer.
    w_mat   : (9*C, Cout) MXU_DTYPE weight, tap-major (ky, kx, cin).
    """
    for t in range(9):
        ky, kx = divmod(t, 3)
        col_ref[:, t * C:(t + 1) * C] = (
            pad_ref[ky:ky + H, kx:kx + W, :].reshape(H * W, C))
    return jnp.dot(col_ref[:, :9 * C], w_mat,
                   preferred_element_type=jnp.float32)


# ---------------------------------------------------------------------------
# Fused ResnetBlock2D kernel (one grid step == one batch element)
# ---------------------------------------------------------------------------

def _resnet_block_kernel(h_ref, res_ref, a1_ref, g1_ref, b1_ref, w1_ref, c1b_ref,
                         temb_ref, a2_ref, g2_ref, b2_ref, w2_ref, c2b_ref,
                         ws_ref, bs_ref, out_ref,
                         xcat_ref, pad1_ref, pad2_ref, col_ref,
                         *, eps, inv_scale):
    _, H, W, Ch = h_ref.shape
    Cr = res_ref.shape[3]
    Cin = Ch + Cr
    Cout = out_ref.shape[3]
    HW = H * W

    # Halo-only zeroing (interior fully overwritten below every step).
    _zero_halo(pad1_ref, H, W, Cin)
    _zero_halo(pad2_ref, H, W, Cout)

    # torch.cat([h, res], dim=1) done directly in VMEM (no HBM concat copy).
    xcat_ref[:, 0:Ch] = h_ref[0].reshape(HW, Ch)
    xcat_ref[:, Ch:Cin] = res_ref[0].reshape(HW, Cr)
    xf = xcat_ref[...]                                                      # (HW, Cin) f32

    # norm1 + SiLU -> zero-halo'd bf16 buffer for conv1
    y1 = _group_norm_silu(xf, a1_ref[...], g1_ref[...], b1_ref[...], eps)
    pad1_ref[1:H + 1, 1:W + 1, :] = y1.reshape(H, W, Cin).astype(MXU_DTYPE)

    # conv1 (3x3, single K=9*Cin bf16 matmul, f32 acc) + bias + time-embedding
    h1 = (_im2col_conv(pad1_ref, col_ref, w1_ref[...], H, W, Cin)
          + c1b_ref[...] + temb_ref[0])                                     # (HW, Cout) f32

    # norm2 + SiLU (dropout p=0 is identity) -> bf16 buffer for conv2
    y2 = _group_norm_silu(h1, a2_ref[...], g2_ref[...], b2_ref[...], eps)
    pad2_ref[1:H + 1, 1:W + 1, :] = y2.reshape(H, W, Cout).astype(MXU_DTYPE)

    # conv2 (3x3) + bias
    h2 = _im2col_conv(pad2_ref, col_ref, w2_ref[...], H, W, Cout) + c2b_ref[...]

    # 1x1 conv shortcut on the (un-normalized) concatenated input
    sc = jnp.dot(xf.astype(MXU_DTYPE), ws_ref[...],
                 preferred_element_type=jnp.float32) + bs_ref[...]

    out_ref[...] = ((sc + h2) * inv_scale).reshape(1, H, W, Cout)


def resnet_block(h, res, tproj, p, *, groups, eps, output_scale_factor):
    """h: (B,H,W,Ch), res: (B,H,W,Cr) NHWC f32; tproj: (B,Cout) pre-projected temb."""
    B, H, W, Ch = h.shape
    Cr = res.shape[3]
    Cin = Ch + Cr
    Cout = p["conv1_w"].shape[-1]
    Cmax = max(Cin, Cout)
    HW = H * W

    # Weights in MXU dtype (bf16), tap-major (ky, kx, cin) -> Cout.
    w1 = p["conv1_w"].reshape(9 * Cin, Cout).astype(MXU_DTYPE)
    w2 = p["conv2_w"].reshape(9 * Cout, Cout).astype(MXU_DTYPE)
    if Cin == Cout:
        # diffusers uses an identity shortcut when in_channels == out_channels.
        ws = jnp.eye(Cout, dtype=MXU_DTYPE)
        bs = jnp.zeros((Cout,), jnp.float32)
    else:
        ws = p["short_w"].astype(MXU_DTYPE)
        bs = p["short_b"]

    # GroupNorm averaging matrices, hoisted out of the kernel (f32 for accuracy).
    avg1 = _group_avg_matrix(Cin, groups, HW)
    avg2 = _group_avg_matrix(Cout, groups, HW)

    def row(v):
        return v.reshape(1, -1).astype(jnp.float32)

    rep2 = lambda b: (0, 0)                     # replicated (broadcast) params

    scratch_bytes = (_bytes((HW, Cin), jnp.float32)
                     + _bytes((H + 2, W + 2, Cin), MXU_DTYPE)
                     + _bytes((H + 2, W + 2, Cout), MXU_DTYPE)
                     + _bytes((HW, 9 * Cmax), MXU_DTYPE))
    block_bytes = (_bytes((1, H, W, Ch), jnp.float32)
                   + _bytes((1, H, W, Cr), jnp.float32)
                   + _bytes((1, H, W, Cout), jnp.float32)
                   + _bytes((Cin, Cin), jnp.float32)
                   + _bytes((Cout, Cout), jnp.float32)
                   + _bytes((9 * Cin, Cout), MXU_DTYPE)
                   + _bytes((9 * Cout, Cout), MXU_DTYPE)
                   + _bytes((Cin, Cout), MXU_DTYPE)
                   + _bytes((8, Cmax), jnp.float32))          # small row params

    kern = functools.partial(_resnet_block_kernel, eps=float(eps),
                             inv_scale=float(1.0 / output_scale_factor))
    return pl.pallas_call(
        kern,
        grid=(B,),
        in_specs=[
            pl.BlockSpec((1, H, W, Ch), lambda b: (b, 0, 0, 0)),   # hidden
            pl.BlockSpec((1, H, W, Cr), lambda b: (b, 0, 0, 0)),   # residual
            pl.BlockSpec((Cin, Cin), rep2),                        # GN1 avg matrix
            pl.BlockSpec((1, Cin), rep2),                          # GN1 gamma
            pl.BlockSpec((1, Cin), rep2),                          # GN1 beta
            pl.BlockSpec((9 * Cin, Cout), rep2),                   # conv1 weight
            pl.BlockSpec((1, Cout), rep2),                         # conv1 bias
            pl.BlockSpec((1, 1, Cout), lambda b: (b, 0, 0)),       # temb proj
            pl.BlockSpec((Cout, Cout), rep2),                      # GN2 avg matrix
            pl.BlockSpec((1, Cout), rep2),                         # GN2 gamma
            pl.BlockSpec((1, Cout), rep2),                         # GN2 beta
            pl.BlockSpec((9 * Cout, Cout), rep2),                  # conv2 weight
            pl.BlockSpec((1, Cout), rep2),                         # conv2 bias
            pl.BlockSpec((Cin, Cout), rep2),                       # shortcut weight
            pl.BlockSpec((1, Cout), rep2),                         # shortcut bias
        ],
        out_specs=pl.BlockSpec((1, H, W, Cout), lambda b: (b, 0, 0, 0)),
        out_shape=jax.ShapeDtypeStruct((B, H, W, Cout), jnp.float32),
        scratch_shapes=[
            pltpu.VMEM((HW, Cin), jnp.float32),             # concatenated input (f32)
            pltpu.VMEM((H + 2, W + 2, Cin), MXU_DTYPE),     # padded act for conv1
            pltpu.VMEM((H + 2, W + 2, Cout), MXU_DTYPE),    # padded act for conv2
            pltpu.VMEM((HW, 9 * Cmax), MXU_DTYPE),          # shared im2col staging
        ],
        compiler_params=pltpu.CompilerParams(
            dimension_semantics=("parallel",),
            vmem_limit_bytes=_vmem_limit(block_bytes, scratch_bytes)),
    )(h, res,
      avg1, row(p["norm1_g"]), row(p["norm1_b"]), w1, row(p["conv1_b"]),
      tproj.reshape(B, 1, Cout).astype(jnp.float32),
      avg2, row(p["norm2_g"]), row(p["norm2_b"]), w2, row(p["conv2_b"]),
      ws, row(bs))


# ---------------------------------------------------------------------------
# Fused Upsample2D kernel: 2x nearest + 3x3 conv via subpixel decomposition
# ---------------------------------------------------------------------------

# Row/col combination matrices: output phase dy/dx in {0,1} maps the 3 original
# kernel rows/cols onto the 2 contributing original-resolution taps.
_PHASE_MIX = jnp.array([[[1., 0., 0.], [0., 1., 1.], [0., 0., 0.]],
                        [[0., 0., 0.], [1., 1., 0.], [0., 0., 1.]]], jnp.float32)


def _subpixel_upsample_weight(w):
    """(3,3,Cin,Cout) HWIO -> (9*Cin, 4*Cout): packed per-phase effective weights
    of '3x3 conv on 2x-nearest-upsampled input' evaluated at original resolution.
    Phase column order is (dy, dx, cout)."""
    c, cout = w.shape[2], w.shape[3]
    cols = []
    for dy in range(2):
        for dx in range(2):
            weff = jnp.einsum('yk,xl,klio->yxio', _PHASE_MIX[dy], _PHASE_MIX[dx], w)
            cols.append(weff.reshape(9 * c, cout))
    return jnp.concatenate(cols, axis=1)


def _upsample_conv_kernel(x_ref, wp_ref, b2_ref, out_ref, pad_ref, col_ref):
    _, H, W, C = x_ref.shape
    C2 = out_ref.shape[4]                        # 2 * Cout  (dx-folded channels)

    _zero_halo(pad_ref, H, W, C)
    pad_ref[1:H + 1, 1:W + 1, :] = x_ref[0].astype(MXU_DTYPE)

    # One matmul produces all 4 output phases: (HW, 9C) x (9C, 4*Cout).
    r = _im2col_conv(pad_ref, col_ref, wp_ref[...], H, W, C)     # (HW, 4*Cout) f32
    b2 = b2_ref[...]                                             # (1, 2*Cout), bias tiled over dx
    for dy in range(2):
        out_ref[0, dy] = (r[:, dy * C2:(dy + 1) * C2] + b2).reshape(H, W, C2)


def upsample2x_conv(x, w, b):
    """x: (B,H,W,C) NHWC -> (B, 2, H, W, 2*Cout); dims are (b, dy, h, w, (dx, c))."""
    B, H, W, C = x.shape
    Cout = w.shape[-1]
    HW = H * W
    wp = _subpixel_upsample_weight(w).astype(MXU_DTYPE)          # (9C, 4*Cout)
    b2 = jnp.concatenate([b, b]).reshape(1, 2 * Cout).astype(jnp.float32)

    scratch_bytes = (_bytes((H + 2, W + 2, C), MXU_DTYPE)
                     + _bytes((HW, 9 * C), MXU_DTYPE))
    block_bytes = (_bytes((1, H, W, C), jnp.float32)
                   + _bytes((1, 2, H, W, 2 * Cout), jnp.float32)
                   + _bytes((9 * C, 4 * Cout), MXU_DTYPE)
                   + _bytes((1, 2 * Cout), jnp.float32))

    return pl.pallas_call(
        _upsample_conv_kernel,
        grid=(B,),
        in_specs=[
            pl.BlockSpec((1, H, W, C), lambda i: (i, 0, 0, 0)),
            pl.BlockSpec((9 * C, 4 * Cout), lambda i: (0, 0)),
            pl.BlockSpec((1, 2 * Cout), lambda i: (0, 0)),
        ],
        out_specs=pl.BlockSpec((1, 2, H, W, 2 * Cout), lambda i: (i, 0, 0, 0, 0)),
        out_shape=jax.ShapeDtypeStruct((B, 2, H, W, 2 * Cout), jnp.float32),
        scratch_shapes=[
            pltpu.VMEM((H + 2, W + 2, C), MXU_DTYPE),
            pltpu.VMEM((HW, 9 * C), MXU_DTYPE),
        ],
        compiler_params=pltpu.CompilerParams(
            dimension_semantics=("parallel",),
            vmem_limit_bytes=_vmem_limit(block_bytes, scratch_bytes)),
    )(x, wp, b2)


# ---------------------------------------------------------------------------
# Module-level forward (PareResnetBlock2D + PareUpsample2D + PareUpBlock2D)
# ---------------------------------------------------------------------------

def pare_up_block2d_forward(hidden_states, res_hidden_states_tuple, temb, params, *,
                            groups, eps, output_scale_factor):
    """hidden_states / residuals: NCHW (PyTorch convention); returns NCHW."""
    h = jnp.transpose(hidden_states, (0, 2, 3, 1))                 # -> NHWC
    res_list = list(res_hidden_states_tuple)
    for p in params["resnets"]:
        res = jnp.transpose(res_list.pop(-1), (0, 2, 3, 1))
        # Tiny time-embedding SiLU + Linear: plain XLA (no pallas_call overhead).
        t = temb * jax.nn.sigmoid(temb)
        tproj = t @ p["time_w"] + p["time_b"]                      # (B, Cout)
        h = resnet_block(h, res, tproj, p, groups=groups, eps=eps,
                         output_scale_factor=output_scale_factor)
    up = params["upsampler"]
    o = upsample2x_conv(h, up["w"], up["b"])                       # (B, 2, H, W, 2C)
    B, _, H, W, C2 = o.shape
    C = C2 // 2
    o = o.reshape(B, 2, H, W, 2, C)                                # (b, dy, h, w, dx, c)
    # Single fused XLA transpose to the mandatory NCHW boundary layout; the
    # (h,dy)->2h+dy and (w,dx)->2w+dx interleave is then a free reshape.
    return jnp.transpose(o, (0, 5, 2, 1, 3, 4)).reshape(B, C, 2 * H, 2 * W)


# ---------------------------------------------------------------------------
# Pure-JAX reference (for correctness check)
# ---------------------------------------------------------------------------

def _ref_groupnorm_silu(x, gamma, beta, G, eps):
    B, H, W, C = x.shape
    xg = x.reshape(B, H, W, G, C // G)
    mean = xg.mean(axis=(1, 2, 4), keepdims=True)
    var = xg.var(axis=(1, 2, 4), keepdims=True)
    y = ((xg - mean) / jnp.sqrt(var + eps)).reshape(B, H, W, C)
    y = y * gamma.reshape(1, 1, 1, C) + beta.reshape(1, 1, 1, C)
    return y * jax.nn.sigmoid(y)


def _ref_conv(x, w, b, pad):
    y = lax.conv_general_dilated(x, w, (1, 1), [(pad, pad), (pad, pad)],
                                 dimension_numbers=("NHWC", "HWIO", "NHWC"))
    return y + b.reshape(1, 1, 1, -1)


def _ref_forward(hidden_states, res_tuple, temb, params, *, groups, eps, scale):
    h = jnp.transpose(hidden_states, (0, 2, 3, 1))
    res_list = list(res_tuple)
    for p in params["resnets"]:
        res = jnp.transpose(res_list.pop(-1), (0, 2, 3, 1))
        x = jnp.concatenate([h, res], axis=-1)
        hh = _ref_groupnorm_silu(x, p["norm1_g"], p["norm1_b"], groups, eps)
        hh = _ref_conv(hh, p["conv1_w"], p["conv1_b"], 1)
        t = temb * jax.nn.sigmoid(temb)
        t = t @ p["time_w"] + p["time_b"]
        hh = hh + t[:, None, None, :]
        hh = _ref_groupnorm_silu(hh, p["norm2_g"], p["norm2_b"], groups, eps)
        hh = _ref_conv(hh, p["conv2_w"], p["conv2_b"], 1)
        if x.shape[-1] == hh.shape[-1]:
            sc = x
        else:
            sc = jnp.einsum("bhwc,cd->bhwd", x, p["short_w"]) + p["short_b"].reshape(1, 1, 1, -1)
        h = (sc + hh) / scale
    h = jnp.repeat(jnp.repeat(h, 2, axis=1), 2, axis=2)
    h = _ref_conv(h, params["upsampler"]["w"], params["upsampler"]["b"], 1)
    return jnp.transpose(h, (0, 3, 1, 2))


# ---------------------------------------------------------------------------
# Parameter init + main
# ---------------------------------------------------------------------------

def init_params(key, *, prev_out_ch, skip_ch, out_ch, temb_ch):
    in_ch = prev_out_ch + skip_ch
    ks = jax.random.split(key, 8)

    def w(k, shape):
        return jax.random.normal(k, shape, jnp.float32) * 0.02

    resnet = {
        "norm1_g": jnp.ones((in_ch,), jnp.float32),
        "norm1_b": jnp.zeros((in_ch,), jnp.float32),
        "conv1_w": w(ks[0], (3, 3, in_ch, out_ch)),       # HWIO
        "conv1_b": w(ks[1], (out_ch,)),
        "time_w": w(ks[2], (temb_ch, out_ch)),
        "time_b": w(ks[3], (out_ch,)),
        "norm2_g": jnp.ones((out_ch,), jnp.float32),
        "norm2_b": jnp.zeros((out_ch,), jnp.float32),
        "conv2_w": w(ks[4], (3, 3, out_ch, out_ch)),
        "conv2_b": w(ks[5], (out_ch,)),
        "short_w": w(ks[6], (in_ch, out_ch)),
        "short_b": jnp.zeros((out_ch,), jnp.float32),
    }
    upsampler = {
        "w": w(ks[7], (3, 3, out_ch, out_ch)),
        "b": jnp.zeros((out_ch,), jnp.float32),
    }
    return {"resnets": [resnet], "upsampler": upsampler}


if __name__ == "__main__":
    # PareUpBlock2D config: num_layers=1, add_upsample=True
    B, H, W = 2, 8, 8
    prev_output_channel = 16     # channels of `hidden_states`
    in_channels = 16             # channels of the skip connection
    out_channels = 16
    temb_channels = 32
    resnet_groups = 8
    resnet_eps = 1e-6
    output_scale_factor = 1.0

    key = jax.random.PRNGKey(0)
    k_h, k_r, k_t, k_p = jax.random.split(key, 4)
    hidden_states = jax.random.normal(k_h, (B, prev_output_channel, H, W), jnp.float32)
    res_hidden = jax.random.normal(k_r, (B, in_channels, H, W), jnp.float32)
    temb = jax.random.normal(k_t, (B, temb_channels), jnp.float32)
    params = init_params(k_p, prev_out_ch=prev_output_channel, skip_ch=in_channels,
                         out_ch=out_channels, temb_ch=temb_channels)

    fwd = jax.jit(functools.partial(
        pare_up_block2d_forward, groups=resnet_groups, eps=resnet_eps,
        output_scale_factor=output_scale_factor))

    out = fwd(hidden_states, (res_hidden,), temb, params)
    out = jax.block_until_ready(out)

    assert out.shape == (B, out_channels, 2 * H, 2 * W), out.shape

    ref = _ref_forward(hidden_states, (res_hidden,), temb, params,
                       groups=resnet_groups, eps=resnet_eps, scale=output_scale_factor)
    ref = jax.block_until_ready(ref)
    err = float(jnp.max(jnp.abs(out - ref)))
    # bf16 MXU operands (f32 accumulation) => relaxed tolerance vs f32 reference.
    assert jnp.allclose(out, ref, atol=3e-2, rtol=3e-2), err

    print("KERNEL_OK")
</pallas_src>

<mosaic_0001>
module attributes {stable_mosaic.version = 11 : i64} {
  func.func @_resnet_block_kernel(%arg0: i32, %arg1: memref<1x8x8x16xf32, #tpu.memory_space<vmem>>, %arg2: memref<1x8x8x16xf32, #tpu.memory_space<vmem>>, %arg3: memref<32x32xf32, #tpu.memory_space<vmem>>, %arg4: memref<1x32xf32, #tpu.memory_space<vmem>>, %arg5: memref<1x32xf32, #tpu.memory_space<vmem>>, %arg6: memref<288x16xbf16, #tpu.memory_space<vmem>>, %arg7: memref<1x16xf32, #tpu.memory_space<vmem>>, %arg8: memref<1x1x16xf32, #tpu.memory_space<vmem>>, %arg9: memref<16x16xf32, #tpu.memory_space<vmem>>, %arg10: memref<1x16xf32, #tpu.memory_space<vmem>>, %arg11: memref<1x16xf32, #tpu.memory_space<vmem>>, %arg12: memref<144x16xbf16, #tpu.memory_space<vmem>>, %arg13: memref<1x16xf32, #tpu.memory_space<vmem>>, %arg14: memref<32x16xbf16, #tpu.memory_space<vmem>>, %arg15: memref<1x16xf32, #tpu.memory_space<vmem>>, %arg16: memref<1x8x8x16xf32, #tpu.memory_space<vmem>>, %arg17: memref<64x32xf32, #tpu.memory_space<vmem>>, %arg18: memref<10x10x32xbf16, #tpu.memory_space<vmem>>, %arg19: memref<10x10x16xbf16, #tpu.memory_space<vmem>>, %arg20: memref<64x288xbf16, #tpu.memory_space<vmem>>) attributes {dimension_semantics = [#tpu.dimension_semantics<parallel>], iteration_bounds = array<i64: 2>, scalar_prefetch = 0 : i64, scratch_operands = 4 : i64, tpu.core_type = #tpu.core_type<tc>, window_params = [{transform_indices = @transform_0, window_bounds = array<i64: 1, 8, 8, 16>}, {transform_indices = @transform_1, window_bounds = array<i64: 1, 8, 8, 16>}, {pipeline_mode = #tpu.pipeline_mode<synchronous>, transform_indices = @transform_2, window_bounds = array<i64: 32, 32>}, {pipeline_mode = #tpu.pipeline_mode<synchronous>, transform_indices = @transform_3, window_bounds = array<i64: 1, 32>}, {pipeline_mode = #tpu.pipeline_mode<synchronous>, transform_indices = @transform_4, window_bounds = array<i64: 1, 32>}, {pipeline_mode = #tpu.pipeline_mode<synchronous>, transform_indices = @transform_5, window_bounds = array<i64: 288, 16>}, {pipeline_mode = #tpu.pipeline_mode<synchronous>, transform_indices = @transform_6, window_bounds = array<i64: 1, 16>}, {transform_indices = @transform_7, window_bounds = array<i64: 1, 1, 16>}, {pipeline_mode = #tpu.pipeline_mode<synchronous>, transform_indices = @transform_8, window_bounds = array<i64: 16, 16>}, {pipeline_mode = #tpu.pipeline_mode<synchronous>, transform_indices = @transform_9, window_bounds = array<i64: 1, 16>}, {pipeline_mode = #tpu.pipeline_mode<synchronous>, transform_indices = @transform_10, window_bounds = array<i64: 1, 16>}, {pipeline_mode = #tpu.pipeline_mode<synchronous>, transform_indices = @transform_11, window_bounds = array<i64: 144, 16>}, {pipeline_mode = #tpu.pipeline_mode<synchronous>, transform_indices = @transform_12, window_bounds = array<i64: 1, 16>}, {pipeline_mode = #tpu.pipeline_mode<synchronous>, transform_indices = @transform_13, window_bounds = array<i64: 32, 16>}, {pipeline_mode = #tpu.pipeline_mode<synchronous>, transform_indices = @transform_14, window_bounds = array<i64: 1, 16>}, {transform_indices = @transform_15, window_bounds = array<i64: 1, 8, 8, 16>}]} {
    %cst = arith.constant 0.000000e+00 : bf16
    %0 = vector.broadcast %cst : bf16 to vector<10x32xbf16>
    %c0 = arith.constant 0 : index
    %c0_0 = arith.constant 0 : index
    %c0_1 = arith.constant 0 : index
    %1 = vector.load %arg18[%c0, %c0_0, %c0_1] : memref<10x10x32xbf16, #tpu.memory_space<vmem>>, vector<1x10x32xbf16>
    %2 = vector.shape_cast %1 : vector<1x10x32xbf16> to vector<10x32xbf16>
    %3 = vector.shape_cast %0 : vector<10x32xbf16> to vector<1x10x32xbf16>
    tpu.vector_store %arg18[%c0, %c0_0, %c0_1], %3 {strides = array<i32>} : memref<10x10x32xbf16, #tpu.memory_space<vmem>>, vector<1x10x32xbf16>,
    %cst_2 = arith.constant 0.000000e+00 : bf16
    %4 = vector.broadcast %cst_2 : bf16 to vector<10x32xbf16>
    %c9 = arith.constant 9 : index
    %c0_3 = arith.constant 0 : index
    %c0_4 = arith.constant 0 : index
    %5 = vector.load %arg18[%c9, %c0_3, %c0_4] : memref<10x10x32xbf16, #tpu.memory_space<vmem>>, vector<1x10x32xbf16>
    %6 = vector.shape_cast %5 : vector<1x10x32xbf16> to vector<10x32xbf16>
    %7 = vector.shape_cast %4 : vector<10x32xbf16> to vector<1x10x32xbf16>
    tpu.vector_store %arg18[%c9, %c0_3, %c0_4], %7 {strides = array<i32>} : memref<10x10x32xbf16, #tpu.memory_space<vmem>>, vector<1x10x32xbf16>,
    %cst_5 = arith.constant 0.000000e+00 : bf16
    %8 = vector.broadcast %cst_5 : bf16 to vector<10x32xbf16>
    %c0_6 = arith.constant 0 : index
    %c0_7 = arith.constant 0 : index
    %c0_8 = arith.constant 0 : index
    %9 = vector.load %arg18[%c0_6, %c0_7, %c0_8] : memref<10x10x32xbf16, #tpu.memory_space<vmem>>, vector<10x1x32xbf16>
    %10 = vector.shape_cast %9 : vector<10x1x32xbf16> to vector<10x32xbf16>
    %11 = vector.shape_cast %8 : vector<10x32xbf16> to vector<10x1x32xbf16>
    tpu.vector_store %arg18[%c0_6, %c0_7, %c0_8], %11 {strides = array<i32>} : memref<10x10x32xbf16, #tpu.memory_space<vmem>>, vector<10x1x32xbf16>,
    %cst_9 = arith.constant 0.000000e+00 : bf16
    %12 = vector.broadcast %cst_9 : bf16 to vector<10x32xbf16>
    %c0_10 = arith.constant 0 : index
    %c9_11 = arith.constant 9 : index
    %c0_12 = arith.constant 0 : index
    %13 = vector.load %arg18[%c0_10, %c9_11, %c0_12] : memref<10x10x32xbf16, #tpu.memory_space<vmem>>, vector<10x1x32xbf16>
    %14 = vector.shape_cast %13 : vector<10x1x32xbf16> to vector<10x32xbf16>
    %15 = vector.shape_cast %12 : vector<10x32xbf16> to vector<10x1x32xbf16>
    tpu.vector_store %arg18[%c0_10, %c9_11, %c0_12], %15 {strides = array<i32>} : memref<10x10x32xbf16, #tpu.memory_space<vmem>>, vector<10x1x32xbf16>,
    %cst_13 = arith.constant 0.000000e+00 : bf16
    %16 = vector.broadcast %cst_13 : bf16 to vector<10x16xbf16>
    %c0_14 = arith.constant 0 : index
    %c0_15 = arith.constant 0 : index
    %c0_16 = arith.constant 0 : index
    %17 = vector.load %arg19[%c0_14, %c0_15, %c0_16] : memref<10x10x16xbf16, #tpu.memory_space<vmem>>, vector<1x10x16xbf16>
    %18 = vector.shape_cast %17 : vector<1x10x16xbf16> to vector<10x16xbf16>
    %19 = vector.shape_cast %16 : vector<10x16xbf16> to vector<1x10x16xbf16>
    tpu.vector_store %arg19[%c0_14, %c0_15, %c0_16], %19 {strides = array<i32>} : memref<10x10x16xbf16, #tpu.memory_space<vmem>>, vector<1x10x16xbf16>,
    %cst_17 = arith.constant 0.000000e+00 : bf16
    %20 = vector.broadcast %cst_17 : bf16 to vector<10x16xbf16>
    %c9_18 = arith.constant 9 : index
    %c0_19 = arith.constant 0 : index
    %c0_20 = arith.constant 0 : index
    %21 = vector.load %arg19[%c9_18, %c0_19, %c0_20] : memref<10x10x16xbf16, #tpu.memory_space<vmem>>, vector<1x10x16xbf16>
    %22 = vector.shape_cast %21 : vector<1x10x16xbf16> to vector<10x16xbf16>
    %23 = vector.shape_cast %20 : vector<10x16xbf16> to vector<1x10x16xbf16>
    tpu.vector_store %arg19[%c9_18, %c0_19, %c0_20], %23 {strides = array<i32>} : memref<10x10x16xbf16, #tpu.memory_space<vmem>>, vector<1x10x16xbf16>,
    %cst_21 = arith.constant 0.000000e+00 : bf16
    %24 = vector.broadcast %cst_21 : bf16 to vector<10x16xbf16>
    %c0_22 = arith.constant 0 : index
    %c0_23 = arith.constant 0 : index
    %c0_24 = arith.constant 0 : index
    %25 = vector.load %arg19[%c0_22, %c0_23, %c0_24] : memref<10x10x16xbf16, #tpu.memory_space<vmem>>, vector<10x1x16xbf16>
    %26 = vector.shape_cast %25 : vector<10x1x16xbf16> to vector<10x16xbf16>
    %27 = vector.shape_cast %24 : vector<10x16xbf16> to vector<10x1x16xbf16>
    tpu.vector_store %arg19[%c0_22, %c0_23, %c0_24], %27 {strides = array<i32>} : memref<10x10x16xbf16, #tpu.memory_space<vmem>>, vector<10x1x16xbf16>,
    %cst_25 = arith.constant 0.000000e+00 : bf16
    %28 = vector.broadcast %cst_25 : bf16 to vector<10x16xbf16>
    %c0_26 = arith.constant 0 : index
    %c9_27 = arith.constant 9 : index
    %c0_28 = arith.constant 0 : index
    %29 = vector.load %arg19[%c0_26, %c9_27, %c0_28] : memref<10x10x16xbf16, #tpu.memory_space<vmem>>, vector<10x1x16xbf16>
    %30 = vector.shape_cast %29 : vector<10x1x16xbf16> to vector<10x16xbf16>
    %31 = vector.shape_cast %28 : vector<10x16xbf16> to vector<10x1x16xbf16>
    tpu.vector_store %arg19[%c0_26, %c9_27, %c0_28], %31 {strides = array<i32>} : memref<10x10x16xbf16, #tpu.memory_space<vmem>>, vector<10x1x16xbf16>,
    %c0_29 = arith.constant 0 : index
    %c0_30 = arith.constant 0 : index
    %c0_31 = arith.constant 0 : index
    %c0_32 = arith.constant 0 : index
    %32 = vector.load %arg1[%c0_29, %c0_30, %c0_31, %c0_32] : memref<1x8x8x16xf32, #tpu.memory_space<vmem>>, vector<1x8x8x16xf32>
    %33 = vector.shape_cast %32 : vector<1x8x8x16xf32> to vector<8x8x16xf32>
    %34 = vector.shape_cast %33 : vector<8x8x16xf32> to vector<64x16xf32>
    %c0_33 = arith.constant 0 : index
    %c0_34 = arith.constant 0 : index
    %35 = vector.load %arg17[%c0_33, %c0_34] : memref<64x32xf32, #tpu.memory_space<vmem>>, vector<64x16xf32>
    tpu.vector_store %arg17[%c0_33, %c0_34], %34 {strides = array<i32>} : memref<64x32xf32, #tpu.memory_space<vmem>>, vector<64x16xf32>,
    %c0_35 = arith.constant 0 : index
    %c0_36 = arith.constant 0 : index
    %c0_37 = arith.constant 0 : index
    %c0_38 = arith.constant 0 : index
    %36 = vector.load %arg2[%c0_35, %c0_36, %c0_37, %c0_38] : memref<1x8x8x16xf32, #tpu.memory_space<vmem>>, vector<1x8x8x16xf32>
    %37 = vector.shape_cast %36 : vector<1x8x8x16xf32> to vector<8x8x16xf32>
    %38 = vector.shape_cast %37 : vector<8x8x16xf32> to vector<64x16xf32>
    %c0_39 = arith.constant 0 : index
    %c16 = arith.constant 16 : index
    %39 = vector.load %arg17[%c0_39, %c16] : memref<64x32xf32, #tpu.memory_space<vmem>>, vector<64x16xf32>
    tpu.vector_store %arg17[%c0_39, %c16], %38 {strides = array<i32>} : memref<64x32xf32, #tpu.memory_space<vmem>>, vector<64x16xf32>,
    %c0_40 = arith.constant 0 : index
    %c0_41 = arith.constant 0 : index
    %40 = vector.load %arg17[%c0_40, %c0_41] : memref<64x32xf32, #tpu.memory_space<vmem>>, vector<64x32xf32>
    %c0_42 = arith.constant 0 : index
    %c0_43 = arith.constant 0 : index
    %41 = vector.load %arg3[%c0_42, %c0_43] : memref<32x32xf32, #tpu.memory_space<vmem>>, vector<32x32xf32>
    %c0_44 = arith.constant 0 : index
    %c0_45 = arith.constant 0 : index
    %42 = vector.load %arg4[%c0_44, %c0_45] : memref<1x32xf32, #tpu.memory_space<vmem>>, vector<1x32xf32>
    %c0_46 = arith.constant 0 : index
    %c0_47 = arith.constant 0 : index
    %43 = vector.load %arg5[%c0_46, %c0_47] : memref<1x32xf32, #tpu.memory_space<vmem>>, vector<1x32xf32>
    %cst_48 = arith.constant dense<0.000000e+00> : vector<32xf32>
    %44 = vector.multi_reduction <add>, %40, %cst_48 [0] : vector<64x32xf32> to vector<32xf32>
    %45 = vector.shape_cast %44 : vector<32xf32> to vector<1x32xf32>
    %cst_49 = arith.constant dense<0.000000e+00> : vector<1x32xf32>
    %46 = tpu.matmul %45, %41, %cst_49 {dimension_numbers = #tpu.dot_dimension_numbers<[1], [0], [0], [1], [0, 0, 1, 1], [], []>} : vector<1x32xf32>, vector<32x32xf32>, vector<1x32xf32> -> vector<1x32xf32>
    %47 = vector.broadcast %46 : vector<1x32xf32> to vector<64x32xf32>
    %48 = arith.subf %40, %47 : vector<64x32xf32>
    %49 = arith.mulf %48, %48 : vector<64x32xf32>
    %cst_50 = arith.constant dense<0.000000e+00> : vector<32xf32>
    %50 = vector.multi_reduction <add>, %49, %cst_50 [0] : vector<64x32xf32> to vector<32xf32>
    %51 = vector.shape_cast %50 : vector<32xf32> to vector<1x32xf32>
    %cst_51 = arith.constant dense<0.000000e+00> : vector<1x32xf32>
    %52 = tpu.matmul %51, %41, %cst_51 {dimension_numbers = #tpu.dot_dimension_numbers<[1], [0], [0], [1], [0, 0, 1, 1], [], []>} : vector<1x32xf32>, vector<32x32xf32>, vector<1x32xf32> -> vector<1x32xf32>
    %cst_52 = arith.constant 9.99999997E-7 : f32
    %53 = vector.broadcast %cst_52 : f32 to vector<1x32xf32>
    %54 = arith.addf %52, %53 : vector<1x32xf32>
    %55 = math.rsqrt %54 : vector<1x32xf32>
    %56 = vector.broadcast %55 : vector<1x32xf32> to vector<64x32xf32>
    %57 = arith.mulf %48, %56 : vector<64x32xf32>
    %58 = vector.broadcast %42 : vector<1x32xf32> to vector<64x32xf32>
    %59 = arith.mulf %57, %58 : vector<64x32xf32>
    %60 = vector.broadcast %43 : vector<1x32xf32> to vector<64x32xf32>
    %61 = arith.addf %59, %60 : vector<64x32xf32>
    %62 = arith.negf %61 : vector<64x32xf32>
    %63 = math.exp %62 : vector<64x32xf32>
    %cst_53 = arith.constant 1.000000e+00 : f32
    %64 = vector.broadcast %cst_53 : f32 to vector<64x32xf32>
    %65 = arith.addf %64, %63 : vector<64x32xf32>
    %66 = arith.divf %64, %65 : vector<64x32xf32>
    %67 = arith.mulf %61, %66 : vector<64x32xf32>
    %68 = vector.shape_cast %67 : vector<64x32xf32> to vector<8x8x32xf32>
    %69 = arith.truncf %68 : vector<8x8x32xf32> to vector<8x8x32xbf16>
    %c1 = arith.constant 1 : index
    %c1_54 = arith.constant 1 : index
    %c0_55 = arith.constant 0 : index
    %70 = vector.load %arg18[%c1, %c1_54, %c0_55] : memref<10x10x32xbf16, #tpu.memory_space<vmem>>, vector<8x8x32xbf16>
    tpu.vector_store %arg18[%c1, %c1_54, %c0_55], %69 {strides = array<i32>} : memref<10x10x32xbf16, #tpu.memory_space<vmem>>, vector<8x8x32xbf16>,
    %c0_56 = arith.constant 0 : index
    %c0_57 = arith.constant 0 : index
    %71 = vector.load %arg6[%c0_56, %c0_57] : memref<288x16xbf16, #tpu.memory_space<vmem>>, vector<288x16xbf16>
    %c0_58 = arith.constant 0 : index
    %c0_59 = arith.constant 0 : index
    %c0_60 = arith.constant 0 : index
    %72 = vector.load %arg18[%c0_58, %c0_59, %c0_60] : memref<10x10x32xbf16, #tpu.memory_space<vmem>>, vector<8x8x32xbf16>
    %73 = vector.shape_cast %72 : vector<8x8x32xbf16> to vector<64x32xbf16>
    %c0_61 = arith.constant 0 : index
    %c0_62 = arith.constant 0 : index
    %74 = vector.load %arg20[%c0_61, %c0_62] : memref<64x288xbf16, #tpu.memory_space<vmem>>, vector<64x32xbf16>
    tpu.vector_store %arg20[%c0_61, %c0_62], %73 {strides = array<i32>} : memref<64x288xbf16, #tpu.memory_space<vmem>>, vector<64x32xbf16>,
    %c0_63 = arith.constant 0 : index
    %c1_64 = arith.constant 1 : index
    %c0_65 = arith.constant 0 : index
    %75 = vector.load %arg18[%c0_63, %c1_64, %c0_65] : memref<10x10x32xbf16, #tpu.memory_space<vmem>>, vector<8x8x32xbf16>
    %76 = vector.shape_cast %75 : vector<8x8x32xbf16> to vector<64x32xbf16>
    %c0_66 = arith.constant 0 : index
    %c32 = arith.constant 32 : index
    %77 = vector.load %arg20[%c0_66, %c32] : memref<64x288xbf16, #tpu.memory_space<vmem>>, vector<64x32xbf16>
    tpu.vector_store %arg20[%c0_66, %c32], %76 {strides = array<i32>} : memref<64x288xbf16, #tpu.memory_space<vmem>>, vector<64x32xbf16>,
    %c0_67 = arith.constant 0 : index
    %c2 = arith.constant 2 : index
    %c0_68 = arith.constant 0 : index
    %78 = vector.load %arg18[%c0_67, %c2, %c0_68] : memref<10x10x32xbf16, #tpu.memory_space<vmem>>, vector<8x8x32xbf16>
    %79 = vector.shape_cast %78 : vector<8x8x32xbf16> to vector<64x32xbf16>
    %c0_69 = arith.constant 0 : index
    %c64 = arith.constant 64 : index
    %80 = vector.load %arg20[%c0_69, %c64] : memref<64x288xbf16, #tpu.memory_space<vmem>>, vector<64x32xbf16>
    tpu.vector_store %arg20[%c0_69, %c64], %79 {strides = array<i32>} : memref<64x288xbf16, #tpu.memory_space<vmem>>, vector<64x32xbf16>,
    %c1_70 = arith.constant 1 : index
    %c0_71 = arith.constant 0 : index
    %c0_72 = arith.constant 0 : index
    %81 = vector.load %arg18[%c1_70, %c0_71, %c0_72] : memref<10x10x32xbf16, #tpu.memory_space<vmem>>, vector<8x8x32xbf16>
    %82 = vector.shape_cast %81 : vector<8x8x32xbf16> to vector<64x32xbf16>
    %c0_73 = arith.constant 0 : index
    %c96 = arith.constant 96 : index
    %83 = vector.load %arg20[%c0_73, %c96] : memref<64x288xbf16, #tpu.memory_space<vmem>>, vector<64x32xbf16>
    tpu.vector_store %arg20[%c0_73, %c96], %82 {strides = array<i32>} : memref<64x288xbf16, #tpu.memory_space<vmem>>, vector<64x32xbf16>,
    %c1_74 = arith.constant 1 : index
    %c1_75 = arith.constant 1 : index
    %c0_76 = arith.constant 0 : index
    %84 = vector.load %arg18[%c1_74, %c1_75, %c0_76] : memref<10x10x32xbf16, #tpu.memory_space<vmem>>, vector<8x8x32xbf16>
    %85 = vector.shape_cast %84 : vector<8x8x32xbf16> to vector<64x32xbf16>
    %c0_77 = arith.constant 0 : index
    %c128 = arith.constant 128 : index
    %86 = vector.load %arg20[%c0_77, %c128] : memref<64x288xbf16, #tpu.memory_space<vmem>>, vector<64x32xbf16>
    tpu.vector_store %arg20[%c0_77, %c128], %85 {strides = array<i32>} : memref<64x288xbf16, #tpu.memory_space<vmem>>, vector<64x32xbf16>,
    %c1_78 = arith.constant 1 : index
    %c2_79 = arith.constant 2 : index
    %c0_80 = arith.constant 0 : index
    %87 = vector.load %arg18[%c1_78, %c2_79, %c0_80] : memref<10x10x32xbf16, #tpu.memory_space<vmem>>, vector<8x8x32xbf16>
    %88 = vector.shape_cast %87 : vector<8x8x32xbf16> to vector<64x32xbf16>
    %c0_81 = arith.constant 0 : index
    %c160 = arith.constant 160 : index
    %89 = vector.load %arg20[%c0_81, %c160] : memref<64x288xbf16, #tpu.memory_space<vmem>>, vector<64x32xbf16>
    tpu.vector_store %arg20[%c0_81, %c160], %88 {strides = array<i32>} : memref<64x288xbf16, #tpu.memory_space<vmem>>, vector<64x32xbf16>,
    %c2_82 = arith.constant 2 : index
    %c0_83 = arith.constant 0 : index
    %c0_84 = arith.constant 0 : index
    %90 = vector.load %arg18[%c2_82, %c0_83, %c0_84] : memref<10x10x32xbf16, #tpu.memory_space<vmem>>, vector<8x8x32xbf16>
    %91 = vector.shape_cast %90 : vector<8x8x32xbf16> to vector<64x32xbf16>
    %c0_85 = arith.constant 0 : index
    %c192 = arith.constant 192 : index
    %92 = vector.load %arg20[%c0_85, %c192] : memref<64x288xbf16, #tpu.memory_space<vmem>>, vector<64x32xbf16>
    tpu.vector_store %arg20[%c0_85, %c192], %91 {strides = array<i32>} : memref<64x288xbf16, #tpu.memory_space<vmem>>, vector<64x32xbf16>,
    %c2_86 = arith.constant 2 : index
    %c1_87 = arith.constant 1 : index
    %c0_88 = arith.constant 0 : index
    %93 = vector.load %arg18[%c2_86, %c1_87, %c0_88] : memref<10x10x32xbf16, #tpu.memory_space<vmem>>, vector<8x8x32xbf16>
    %94 = vector.shape_cast %93 : vector<8x8x32xbf16> to vector<64x32xbf16>
    %c0_89 = arith.constant 0 : index
    %c224 = arith.constant 224 : index
    %95 = vector.load %arg20[%c0_89, %c224] : memref<64x288xbf16, #tpu.memory_space<vmem>>, vector<64x32xbf16>
    tpu.vector_store %arg20[%c0_89, %c224], %94 {strides = array<i32>} : memref<64x288xbf16, #tpu.memory_space<vmem>>, vector<64x32xbf16>,
    %c2_90 = arith.constant 2 : index
    %c2_91 = arith.constant 2 : index
    %c0_92 = arith.constant 0 : index
    %96 = vector.load %arg18[%c2_90, %c2_91, %c0_92] : memref<10x10x32xbf16, #tpu.memory_space<vmem>>, vector<8x8x32xbf16>
    %97 = vector.shape_cast %96 : vector<8x8x32xbf16> to vector<64x32xbf16>
    %c0_93 = arith.constant 0 : index
    %c256 = arith.constant 256 : index
    %98 = vector.load %arg20[%c0_93, %c256] : memref<64x288xbf16, #tpu.memory_space<vmem>>, vector<64x32xbf16>
    tpu.vector_store %arg20[%c0_93, %c256], %97 {strides = array<i32>} : memref<64x288xbf16, #tpu.memory_space<vmem>>, vector<64x32xbf16>,
    %c0_94 = arith.constant 0 : index
    %c0_95 = arith.constant 0 : index
    %99 = vector.load %arg20[%c0_94, %c0_95] : memref<64x288xbf16, #tpu.memory_space<vmem>>, vector<64x288xbf16>
    %cst_96 = arith.constant dense<0.000000e+00> : vector<64x16xf32>
    %100 = tpu.matmul %99, %71, %cst_96 {dimension_numbers = #tpu.dot_dimension_numbers<[1], [0], [0], [1], [0, 0, 1, 1], [], []>} : vector<64x288xbf16>, vector<288x16xbf16>, vector<64x16xf32> -> vector<64x16xf32>
    %c0_97 = arith.constant 0 : index
    %c0_98 = arith.constant 0 : index
    %101 = vector.load %arg7[%c0_97, %c0_98] : memref<1x16xf32, #tpu.memory_space<vmem>>, vector<1x16xf32>
    %102 = vector.broadcast %101 : vector<1x16xf32> to vector<64x16xf32>
    %103 = arith.addf %100, %102 : vector<64x16xf32>
    %c0_99 = arith.constant 0 : index
    %c0_100 = arith.constant 0 : index
    %c0_101 = arith.constant 0 : index
    %104 = vector.load %arg8[%c0_99, %c0_100, %c0_101] : memref<1x1x16xf32, #tpu.memory_space<vmem>>, vector<1x1x16xf32>
    %105 = vector.shape_cast %104 : vector<1x1x16xf32> to vector<1x16xf32>
    %106 = vector.broadcast %105 : vector<1x16xf32> to vector<64x16xf32>
    %107 = arith.addf %103, %106 : vector<64x16xf32>
    %c0_102 = arith.constant 0 : index
    %c0_103 = arith.constant 0 : index
    %108 = vector.load %arg9[%c0_102, %c0_103] : memref<16x16xf32, #tpu.memory_space<vmem>>, vector<16x16xf32>
    %c0_104 = arith.constant 0 : index
    %c0_105 = arith.constant 0 : index
    %109 = vector.load %arg10[%c0_104, %c0_105] : memref<1x16xf32, #tpu.memory_space<vmem>>, vector<1x16xf32>
    %c0_106 = arith.constant 0 : index
    %c0_107 = arith.constant 0 : index
    %110 = vector.load %arg11[%c0_106, %c0_107] : memref<1x16xf32, #tpu.memory_space<vmem>>, vector<1x16xf32>
    %cst_108 = arith.constant dense<0.000000e+00> : vector<16xf32>
    %111 = vector.multi_reduction <add>, %107, %cst_108 [0] : vector<64x16xf32> to vector<16xf32>
    %112 = vector.shape_cast %111 : vector<16xf32> to vector<1x16xf32>
    %cst_109 = arith.constant dense<0.000000e+00> : vector<1x16xf32>
    %113 = tpu.matmul %112, %108, %cst_109 {dimension_numbers = #tpu.dot_dimension_numbers<[1], [0], [0], [1], [0, 0, 1, 1], [], []>} : vector<1x16xf32>, vector<16x16xf32>, vector<1x16xf32> -> vector<1x16xf32>
    %114 = vector.broadcast %113 : vector<1x16xf32> to vector<64x16xf32>
    %115 = arith.subf %107, %114 : vector<64x16xf32>
    %116 = arith.mulf %115, %115 : vector<64x16xf32>
    %cst_110 = arith.constant dense<0.000000e+00> : vector<16xf32>
    %117 = vector.multi_reduction <add>, %116, %cst_110 [0] : vector<64x16xf32> to vector<16xf32>
    %118 = vector.shape_cast %117 : vector<16xf32> to vector<1x16xf32>
    %cst_111 = arith.constant dense<0.000000e+00> : vector<1x16xf32>
    %119 = tpu.matmul %118, %108, %cst_111 {dimension_numbers = #tpu.dot_dimension_numbers<[1], [0], [0], [1], [0, 0, 1, 1], [], []>} : vector<1x16xf32>, vector<16x16xf32>, vector<1x16xf32> -> vector<1x16xf32>
    %cst_112 = arith.constant 9.99999997E-7 : f32
    %120 = vector.broadcast %cst_112 : f32 to vector<1x16xf32>
    %121 = arith.addf %119, %120 : vector<1x16xf32>
    %122 = math.rsqrt %121 : vector<1x16xf32>
    %123 = vector.broadcast %122 : vector<1x16xf32> to vector<64x16xf32>
    %124 = arith.mulf %115, %123 : vector<64x16xf32>
    %125 = vector.broadcast %109 : vector<1x16xf32> to vector<64x16xf32>
    %126 = arith.mulf %124, %125 : vector<64x16xf32>
    %127 = vector.broadcast %110 : vector<1x16xf32> to vector<64x16xf32>
    %128 = arith.addf %126, %127 : vector<64x16xf32>
    %129 = arith.negf %128 : vector<64x16xf32>
    %130 = math.exp %129 : vector<64x16xf32>
    %cst_113 = arith.constant 1.000000e+00 : f32
    %131 = vector.broadcast %cst_113 : f32 to vector<64x16xf32>
    %132 = arith.addf %131, %130 : vector<64x16xf32>
    %133 = arith.divf %131, %132 : vector<64x16xf32>
    %134 = arith.mulf %128, %133 : vector<64x16xf32>
    %135 = vector.shape_cast %134 : vector<64x16xf32> to vector<8x8x16xf32>
    %136 = arith.truncf %135 : vector<8x8x16xf32> to vector<8x8x16xbf16>
    %c1_114 = arith.constant 1 : index
    %c1_115 = arith.constant 1 : index
    %c0_116 = arith.constant 0 : index
    %137 = vector.load %arg19[%c1_114, %c1_115, %c0_116] : memref<10x10x16xbf16, #tpu.memory_space<vmem>>, vector<8x8x16xbf16>
    tpu.vector_store %arg19[%c1_114, %c1_115, %c0_116], %136 {strides = array<i32>} : memref<10x10x16xbf16, #tpu.memory_space<vmem>>, vector<8x8x16xbf16>,
    %c0_117 = arith.constant 0 : index
    %c0_118 = arith.constant 0 : index
    %138 = vector.load %arg12[%c0_117, %c0_118] : memref<144x16xbf16, #tpu.memory_space<vmem>>, vector<144x16xbf16>
    %c0_119 = arith.constant 0 : index
    %c0_120 = arith.constant 0 : index
    %c0_121 = arith.constant 0 : index
    %139 = vector.load %arg19[%c0_119, %c0_120, %c0_121] : memref<10x10x16xbf16, #tpu.memory_space<vmem>>, vector<8x8x16xbf16>
    %140 = vector.shape_cast %139 : vector<8x8x16xbf16> to vector<64x16xbf16>
    %c0_122 = arith.constant 0 : index
    %c0_123 = arith.constant 0 : index
    %141 = vector.load %arg20[%c0_122, %c0_123] : memref<64x288xbf16, #tpu.memory_space<vmem>>, vector<64x16xbf16>
    tpu.vector_store %arg20[%c0_122, %c0_123], %140 {strides = array<i32>} : memref<64x288xbf16, #tpu.memory_space<vmem>>, vector<64x16xbf16>,
    %c0_124 = arith.constant 0 : index
    %c1_125 = arith.constant 1 : index
    %c0_126 = arith.constant 0 : index
    %142 = vector.load %arg19[%c0_124, %c1_125, %c0_126] : memref<10x10x16xbf16, #tpu.memory_space<vmem>>, vector<8x8x16xbf16>
    %143 = vector.shape_cast %142 : vector<8x8x16xbf16> to vector<64x16xbf16>
    %c0_127 = arith.constant 0 : index
    %c16_128 = arith.constant 16 : index
    %144 = vector.load %arg20[%c0_127, %c16_128] : memref<64x288xbf16, #tpu.memory_space<vmem>>, vector<64x16xbf16>
    tpu.vector_store %arg20[%c0_127, %c16_128], %143 {strides = array<i32>} : memref<64x288xbf16, #tpu.memory_space<vmem>>, vector<64x16xbf16>,
    %c0_129 = arith.constant 0 : index
    %c2_130 = arith.constant 2 : index
    %c0_131 = arith.constant 0 : index
    %145 = vector.load %arg19[%c0_129, %c2_130, %c0_131] : memref<10x10x16xbf16, #tpu.memory_space<vmem>>, vector<8x8x16xbf16>
    %146 = vector.shape_cast %145 : vector<8x8x16xbf16> to vector<64x16xbf16>
    %c0_132 = arith.constant 0 : index
    %c32_133 = arith.constant 32 : index
    %147 = vector.load %arg20[%c0_132, %c32_133] : memref<64x288xbf16, #tpu.memory_space<vmem>>, vector<64x16xbf16>
    tpu.vector_store %arg20[%c0_132, %c32_133], %146 {strides = array<i32>} : memref<64x288xbf16, #tpu.memory_space<vmem>>, vector<64x16xbf16>,
    %c1_134 = arith.constant 1 : index
    %c0_135 = arith.constant 0 : index
    %c0_136 = arith.constant 0 : index
    %148 = vector.load %arg19[%c1_134, %c0_135, %c0_136] : memref<10x10x16xbf16, #tpu.memory_space<vmem>>, vector<8x8x16xbf16>
    %149 = vector.shape_cast %148 : vector<8x8x16xbf16> to vector<64x16xbf16>
    %c0_137 = arith.constant 0 : index
    %c48 = arith.constant 48 : index
    %150 = vector.load %arg20[%c0_137, %c48] : memref<64x288xbf16, #tpu.memory_space<vmem>>, vector<64x16xbf16>
    tpu.vector_store %arg20[%c0_137, %c48], %149 {strides = array<i32>} : memref<64x288xbf16, #tpu.memory_space<vmem>>, vector<64x16xbf16>,
    %c1_138 = arith.constant 1 : index
    %c1_139 = arith.constant 1 : index
    %c0_140 = arith.constant 0 : index
    %151 = vector.load %arg19[%c1_138, %c1_139, %c0_140] : memref<10x10x16xbf16, #tpu.memory_space<vmem>>, vector<8x8x16xbf16>
    %152 = vector.shape_cast %151 : vector<8x8x16xbf16> to vector<64x16xbf16>
    %c0_141 = arith.constant 0 : index
    %c64_142 = arith.constant 64 : index
    %153 = vector.load %arg20[%c0_141, %c64_142] : memref<64x288xbf16, #tpu.memory_space<vmem>>, vector<64x16xbf16>
    tpu.vector_store %arg20[%c0_141, %c64_142], %152 {strides = array<i32>} : memref<64x288xbf16, #tpu.memory_space<vmem>>, vector<64x16xbf16>,
    %c1_143 = arith.constant 1 : index
    %c2_144 = arith.constant 2 : index
    %c0_145 = arith.constant 0 : index
    %154 = vector.load %arg19[%c1_143, %c2_144, %c0_145] : memref<10x10x16xbf16, #tpu.memory_space<vmem>>, vector<8x8x16xbf16>
    %155 = vector.shape_cast %154 : vector<8x8x16xbf16> to vector<64x16xbf16>
    %c0_146 = arith.constant 0 : index
    %c80 = arith.constant 80 : index
    %156 = vector.load %arg20[%c0_146, %c80] : memref<64x288xbf16, #tpu.memory_space<vmem>>, vector<64x16xbf16>
    tpu.vector_store %arg20[%c0_146, %c80], %155 {strides = array<i32>} : memref<64x288xbf16, #tpu.memory_space<vmem>>, vector<64x16xbf16>,
    %c2_147 = arith.constant 2 : index
    %c0_148 = arith.constant 0 : index
    %c0_149 = arith.constant 0 : index
    %157 = vector.load %arg19[%c2_147, %c0_148, %c0_149] : memref<10x10x16xbf16, #tpu.memory_space<vmem>>, vector<8x8x16xbf16>
    %158 = vector.shape_cast %157 : vector<8x8x16xbf16> to vector<64x16xbf16>
    %c0_150 = arith.constant 0 : index
    %c96_151 = arith.constant 96 : index
    %159 = vector.load %arg20[%c0_150, %c96_151] : memref<64x288xbf16, #tpu.memory_space<vmem>>, vector<64x16xbf16>
    tpu.vector_store %arg20[%c0_150, %c96_151], %158 {strides = array<i32>} : memref<64x288xbf16, #tpu.memory_space<vmem>>, vector<64x16xbf16>,
    %c2_152 = arith.constant 2 : index
    %c1_153 = arith.constant 1 : index
    %c0_154 = arith.constant 0 : index
    %160 = vector.load %arg19[%c2_152, %c1_153, %c0_154] : memref<10x10x16xbf16, #tpu.memory_space<vmem>>, vector<8x8x16xbf16>
    %161 = vector.shape_cast %160 : vector<8x8x16xbf16> to vector<64x16xbf16>
    %c0_155 = arith.constant 0 : index
    %c112 = arith.constant 112 : index
    %162 = vector.load %arg20[%c0_155, %c112] : memref<64x288xbf16, #tpu.memory_space<vmem>>, vector<64x16xbf16>
    tpu.vector_store %arg20[%c0_155, %c112], %161 {strides = array<i32>} : memref<64x288xbf16, #tpu.memory_space<vmem>>, vector<64x16xbf16>,
    %c2_156 = arith.constant 2 : index
    %c2_157 = arith.constant 2 : index
    %c0_158 = arith.constant 0 : index
    %163 = vector.load %arg19[%c2_156, %c2_157, %c0_158] : memref<10x10x16xbf16, #tpu.memory_space<vmem>>, vector<8x8x16xbf16>
    %164 = vector.shape_cast %163 : vector<8x8x16xbf16> to vector<64x16xbf16>
    %c0_159 = arith.constant 0 : index
    %c128_160 = arith.constant 128 : index
    %165 = vector.load %arg20[%c0_159, %c128_160] : memref<64x288xbf16, #tpu.memory_space<vmem>>, vector<64x16xbf16>
    tpu.vector_store %arg20[%c0_159, %c128_160], %164 {strides = array<i32>} : memref<64x288xbf16, #tpu.memory_space<vmem>>, vector<64x16xbf16>,
    %c0_161 = arith.constant 0 : index
    %c0_162 = arith.constant 0 : index
    %166 = vector.load %arg20[%c0_161, %c0_162] : memref<64x288xbf16, #tpu.memory_space<vmem>>, vector<64x144xbf16>
    %cst_163 = arith.constant dense<0.000000e+00> : vector<64x16xf32>
    %167 = tpu.matmul %166, %138, %cst_163 {dimension_numbers = #tpu.dot_dimension_numbers<[1], [0], [0], [1], [0, 0, 1, 1], [], []>} : vector<64x144xbf16>, vector<144x16xbf16>, vector<64x16xf32> -> vector<64x16xf32>
    %c0_164 = arith.constant 0 : index
    %c0_165 = arith.constant 0 : index
    %168 = vector.load %arg13[%c0_164, %c0_165] : memref<1x16xf32, #tpu.memory_space<vmem>>, vector<1x16xf32>
    %169 = vector.broadcast %168 : vector<1x16xf32> to vector<64x16xf32>
    %170 = arith.addf %167, %169 : vector<64x16xf32>
    %171 = arith.truncf %40 : vector<64x32xf32> to vector<64x32xbf16>
    %c0_166 = arith.constant 0 : index
    %c0_167 = arith.constant 0 : index
    %172 = vector.load %arg14[%c0_166, %c0_167] : memref<32x16xbf16, #tpu.memory_space<vmem>>, vector<32x16xbf16>
    %cst_168 = arith.constant dense<0.000000e+00> : vector<64x16xf32>
    %173 = tpu.matmul %171, %172, %cst_168 {dimension_numbers = #tpu.dot_dimension_numbers<[1], [0], [0], [1], [0, 0, 1, 1], [], []>} : vector<64x32xbf16>, vector<32x16xbf16>, vector<64x16xf32> -> vector<64x16xf32>
    %c0_169 = arith.constant 0 : index
    %c0_170 = arith.constant 0 : index
    %174 = vector.load %arg15[%c0_169, %c0_170] : memref<1x16xf32, #tpu.memory_space<vmem>>, vector<1x16xf32>
    %175 = vector.broadcast %174 : vector<1x16xf32> to vector<64x16xf32>
    %176 = arith.addf %173, %175 : vector<64x16xf32>
    %177 = arith.addf %176, %170 : vector<64x16xf32>
    %cst_171 = arith.constant 1.000000e+00 : f32
    %178 = vector.broadcast %cst_171 : f32 to vector<64x16xf32>
    %179 = arith.mulf %177, %178 : vector<64x16xf32>
    %180 = vector.shape_cast %179 : vector<64x16xf32> to vector<1x8x8x16xf32>
    %c0_172 = arith.constant 0 : index
    %c0_173 = arith.constant 0 : index
    %c0_174 = arith.constant 0 : index
    %c0_175 = arith.constant 0 : index
    %181 = vector.load %arg16[%c0_172, %c0_173, %c0_174, %c0_175] : memref<1x8x8x16xf32, #tpu.memory_space<vmem>>, vector<1x8x8x16xf32>
    tpu.vector_store %arg16[%c0_172, %c0_173, %c0_174, %c0_175], %180 {strides = array<i32>} : memref<1x8x8x16xf32, #tpu.memory_space<vmem>>, vector<1x8x8x16xf32>,
    return
  }
  func.func @transform_0(%arg0: i32) -> (i32, i32, i32, i32) {
    %c0_i32 = arith.constant 0 : i32
    %c0_i32_0 = arith.constant 0 : i32
    %c0_i32_1 = arith.constant 0 : i32
    %c0_i32_2 = arith.constant 0 : i32
    return %arg0, %c0_i32, %c0_i32_0, %c0_i32_1 : i32, i32, i32, i32
  }
  func.func @transform_1(%arg0: i32) -> (i32, i32, i32, i32) {
    %c0_i32 = arith.constant 0 : i32
    %c0_i32_0 = arith.constant 0 : i32
    %c0_i32_1 = arith.constant 0 : i32
    %c0_i32_2 = arith.constant 0 : i32
    return %arg0, %c0_i32, %c0_i32_0, %c0_i32_1 : i32, i32, i32, i32
  }
  func.func @transform_2(%arg0: i32) -> (i32, i32) {
    %c0_i32 = arith.constant 0 : i32
    %c0_i32_0 = arith.constant 0 : i32
    %c0_i32_1 = arith.constant 0 : i32
    return %c0_i32, %c0_i32_0 : i32, i32
  }
  func.func @transform_3(%arg0: i32) -> (i32, i32) {
    %c0_i32 = arith.constant 0 : i32
    %c0_i32_0 = arith.constant 0 : i32
    %c0_i32_1 = arith.constant 0 : i32
    return %c0_i32, %c0_i32_0 : i32, i32
  }
  func.func @transform_4(%arg0: i32) -> (i32, i32) {
    %c0_i32 = arith.constant 0 : i32
    %c0_i32_0 = arith.constant 0 : i32
    %c0_i32_1 = arith.constant 0 : i32
    return %c0_i32, %c0_i32_0 : i32, i32
  }
  func.func @transform_5(%arg0: i32) -> (i32, i32) {
    %c0_i32 = arith.constant 0 : i32
    %c0_i32_0 = arith.constant 0 : i32
    %c0_i32_1 = arith.constant 0 : i32
    return %c0_i32, %c0_i32_0 : i32, i32
  }
  func.func @transform_6(%arg0: i32) -> (i32, i32) {
    %c0_i32 = arith.constant 0 : i32
    %c0_i32_0 = arith.constant 0 : i32
    %c0_i32_1 = arith.constant 0 : i32
    return %c0_i32, %c0_i32_0 : i32, i32
  }
  func.func @transform_7(%arg0: i32) -> (i32, i32, i32) {
    %c0_i32 = arith.constant 0 : i32
    %c0_i32_0 = arith.constant 0 : i32
    %c0_i32_1 = arith.constant 0 : i32
    return %arg0, %c0_i32, %c0_i32_0 : i32, i32, i32
  }
  func.func @transform_8(%arg0: i32) -> (i32, i32) {
    %c0_i32 = arith.constant 0 : i32
    %c0_i32_0 = arith.constant 0 : i32
    %c0_i32_1 = arith.constant 0 : i32
    return %c0_i32, %c0_i32_0 : i32, i32
  }
  func.func @transform_9(%arg0: i32) -> (i32, i32) {
    %c0_i32 = arith.constant 0 : i32
    %c0_i32_0 = arith.constant 0 : i32
    %c0_i32_1 = arith.constant 0 : i32
    return %c0_i32, %c0_i32_0 : i32, i32
  }
  func.func @transform_10(%arg0: i32) -> (i32, i32) {
    %c0_i32 = arith.constant 0 : i32
    %c0_i32_0 = arith.constant 0 : i32
    %c0_i32_1 = arith.constant 0 : i32
    return %c0_i32, %c0_i32_0 : i32, i32
  }
  func.func @transform_11(%arg0: i32) -> (i32, i32) {
    %c0_i32 = arith.constant 0 : i32
    %c0_i32_0 = arith.constant 0 : i32
    %c0_i32_1 = arith.constant 0 : i32
    return %c0_i32, %c0_i32_0 : i32, i32
  }
  func.func @transform_12(%arg0: i32) -> (i32, i32) {
    %c0_i32 = arith.constant 0 : i32
    %c0_i32_0 = arith.constant 0 : i32
    %c0_i32_1 = arith.constant 0 : i32
    return %c0_i32, %c0_i32_0 : i32, i32
  }
  func.func @transform_13(%arg0: i32) -> (i32, i32) {
    %c0_i32 = arith.constant 0 : i32
    %c0_i32_0 = arith.constant 0 : i32
    %c0_i32_1 = arith.constant 0 : i32
    return %c0_i32, %c0_i32_0 : i32, i32
  }
  func.func @transform_14(%arg0: i32) -> (i32, i32) {
    %c0_i32 = arith.constant 0 : i32
    %c0_i32_0 = arith.constant 0 : i32
    %c0_i32_1 = arith.constant 0 : i32
    return %c0_i32, %c0_i32_0 : i32, i32
  }
  func.func @transform_15(%arg0: i32) -> (i32, i32, i32, i32) {
    %c0_i32 = arith.constant 0 : i32
    %c0_i32_0 = arith.constant 0 : i32
    %c0_i32_1 = arith.constant 0 : i32
    %c0_i32_2 = arith.constant 0 : i32
    return %arg0, %c0_i32, %c0_i32_0, %c0_i32_1 : i32, i32, i32, i32
  }
}

module attributes {stable_mosaic.version = 11 : i64} {
  func.func @_upsample_conv_kernel(%arg0: i32, %arg1: memref<1x8x8x16xf32, #tpu.memory_space<vmem>>, %arg2: memref<144x64xbf16, #tpu.memory_space<vmem>>, %arg3: memref<1x32xf32, #tpu.memory_space<vmem>>, %arg4: memref<1x2x8x8x32xf32, #tpu.memory_space<vmem>>, %arg5: memref<10x10x16xbf16, #tpu.memory_space<vmem>>, %arg6: memref<64x144xbf16, #tpu.memory_space<vmem>>) attributes {dimension_semantics = [#tpu.dimension_semantics<parallel>], iteration_bounds = array<i64: 2>, scalar_prefetch = 0 : i64, scratch_operands = 2 : i64, tpu.core_type = #tpu.core_type<tc>, window_params = [{transform_indices = @transform_0, window_bounds = array<i64: 1, 8, 8, 16>}, {pipeline_mode = #tpu.pipeline_mode<synchronous>, transform_indices = @transform_1, window_bounds = array<i64: 144, 64>}, {pipeline_mode = #tpu.pipeline_mode<synchronous>, transform_indices = @transform_2, window_bounds = array<i64: 1, 32>}, {transform_indices = @transform_3, window_bounds = array<i64: 1, 2, 8, 8, 32>}]} {
    %cst = arith.constant 0.000000e+00 : bf16
    %0 = vector.broadcast %cst : bf16 to vector<10x16xbf16>
    %c0 = arith.constant 0 : index
    %c0_0 = arith.constant 0 : index
    %c0_1 = arith.constant 0 : index
    %1 = vector.load %arg5[%c0, %c0_0, %c0_1] : memref<10x10x16xbf16, #tpu.memory_space<vmem>>, vector<1x10x16xbf16>
    %2 = vector.shape_cast %1 : vector<1x10x16xbf16> to vector<10x16xbf16>
    %3 = vector.shape_cast %0 : vector<10x16xbf16> to vector<1x10x16xbf16>
    tpu.vector_store %arg5[%c0, %c0_0, %c0_1], %3 {strides = array<i32>} : memref<10x10x16xbf16, #tpu.memory_space<vmem>>, vector<1x10x16xbf16>,
    %cst_2 = arith.constant 0.000000e+00 : bf16
    %4 = vector.broadcast %cst_2 : bf16 to vector<10x16xbf16>
    %c9 = arith.constant 9 : index
    %c0_3 = arith.constant 0 : index
    %c0_4 = arith.constant 0 : index
    %5 = vector.load %arg5[%c9, %c0_3, %c0_4] : memref<10x10x16xbf16, #tpu.memory_space<vmem>>, vector<1x10x16xbf16>
    %6 = vector.shape_cast %5 : vector<1x10x16xbf16> to vector<10x16xbf16>
    %7 = vector.shape_cast %4 : vector<10x16xbf16> to vector<1x10x16xbf16>
    tpu.vector_store %arg5[%c9, %c0_3, %c0_4], %7 {strides = array<i32>} : memref<10x10x16xbf16, #tpu.memory_space<vmem>>, vector<1x10x16xbf16>,
    %cst_5 = arith.constant 0.000000e+00 : bf16
    %8 = vector.broadcast %cst_5 : bf16 to vector<10x16xbf16>
    %c0_6 = arith.constant 0 : index
    %c0_7 = arith.constant 0 : index
    %c0_8 = arith.constant 0 : index
    %9 = vector.load %arg5[%c0_6, %c0_7, %c0_8] : memref<10x10x16xbf16, #tpu.memory_space<vmem>>, vector<10x1x16xbf16>
    %10 = vector.shape_cast %9 : vector<10x1x16xbf16> to vector<10x16xbf16>
    %11 = vector.shape_cast %8 : vector<10x16xbf16> to vector<10x1x16xbf16>
    tpu.vector_store %arg5[%c0_6, %c0_7, %c0_8], %11 {strides = array<i32>} : memref<10x10x16xbf16, #tpu.memory_space<vmem>>, vector<10x1x16xbf16>,
    %cst_9 = arith.constant 0.000000e+00 : bf16
    %12 = vector.broadcast %cst_9 : bf16 to vector<10x16xbf16>
    %c0_10 = arith.constant 0 : index
    %c9_11 = arith.constant 9 : index
    %c0_12 = arith.constant 0 : index
    %13 = vector.load %arg5[%c0_10, %c9_11, %c0_12] : memref<10x10x16xbf16, #tpu.memory_space<vmem>>, vector<10x1x16xbf16>
    %14 = vector.shape_cast %13 : vector<10x1x16xbf16> to vector<10x16xbf16>
    %15 = vector.shape_cast %12 : vector<10x16xbf16> to vector<10x1x16xbf16>
    tpu.vector_store %arg5[%c0_10, %c9_11, %c0_12], %15 {strides = array<i32>} : memref<10x10x16xbf16, #tpu.memory_space<vmem>>, vector<10x1x16xbf16>,
    %c0_13 = arith.constant 0 : index
    %c0_14 = arith.constant 0 : index
    %c0_15 = arith.constant 0 : index
    %c0_16 = arith.constant 0 : index
    %16 = vector.load %arg1[%c0_13, %c0_14, %c0_15, %c0_16] : memref<1x8x8x16xf32, #tpu.memory_space<vmem>>, vector<1x8x8x16xf32>
    %17 = vector.shape_cast %16 : vector<1x8x8x16xf32> to vector<8x8x16xf32>
    %18 = arith.truncf %17 : vector<8x8x16xf32> to vector<8x8x16xbf16>
    %c1 = arith.constant 1 : index
    %c1_17 = arith.constant 1 : index
    %c0_18 = arith.constant 0 : index
    %19 = vector.load %arg5[%c1, %c1_17, %c0_18] : memref<10x10x16xbf16, #tpu.memory_space<vmem>>, vector<8x8x16xbf16>
    tpu.vector_store %arg5[%c1, %c1_17, %c0_18], %18 {strides = array<i32>} : memref<10x10x16xbf16, #tpu.memory_space<vmem>>, vector<8x8x16xbf16>,
    %c0_19 = arith.constant 0 : index
    %c0_20 = arith.constant 0 : index
    %20 = vector.load %arg2[%c0_19, %c0_20] : memref<144x64xbf16, #tpu.memory_space<vmem>>, vector<144x64xbf16>
    %c0_21 = arith.constant 0 : index
    %c0_22 = arith.constant 0 : index
    %c0_23 = arith.constant 0 : index
    %21 = vector.load %arg5[%c0_21, %c0_22, %c0_23] : memref<10x10x16xbf16, #tpu.memory_space<vmem>>, vector<8x8x16xbf16>
    %22 = vector.shape_cast %21 : vector<8x8x16xbf16> to vector<64x16xbf16>
    %c0_24 = arith.constant 0 : index
    %c0_25 = arith.constant 0 : index
    %23 = vector.load %arg6[%c0_24, %c0_25] : memref<64x144xbf16, #tpu.memory_space<vmem>>, vector<64x16xbf16>
    tpu.vector_store %arg6[%c0_24, %c0_25], %22 {strides = array<i32>} : memref<64x144xbf16, #tpu.memory_space<vmem>>, vector<64x16xbf16>,
    %c0_26 = arith.constant 0 : index
    %c1_27 = arith.constant 1 : index
    %c0_28 = arith.constant 0 : index
    %24 = vector.load %arg5[%c0_26, %c1_27, %c0_28] : memref<10x10x16xbf16, #tpu.memory_space<vmem>>, vector<8x8x16xbf16>
    %25 = vector.shape_cast %24 : vector<8x8x16xbf16> to vector<64x16xbf16>
    %c0_29 = arith.constant 0 : index
    %c16 = arith.constant 16 : index
    %26 = vector.load %arg6[%c0_29, %c16] : memref<64x144xbf16, #tpu.memory_space<vmem>>, vector<64x16xbf16>
    tpu.vector_store %arg6[%c0_29, %c16], %25 {strides = array<i32>} : memref<64x144xbf16, #tpu.memory_space<vmem>>, vector<64x16xbf16>,
    %c0_30 = arith.constant 0 : index
    %c2 = arith.constant 2 : index
    %c0_31 = arith.constant 0 : index
    %27 = vector.load %arg5[%c0_30, %c2, %c0_31] : memref<10x10x16xbf16, #tpu.memory_space<vmem>>, vector<8x8x16xbf16>
    %28 = vector.shape_cast %27 : vector<8x8x16xbf16> to vector<64x16xbf16>
    %c0_32 = arith.constant 0 : index
    %c32 = arith.constant 32 : index
    %29 = vector.load %arg6[%c0_32, %c32] : memref<64x144xbf16, #tpu.memory_space<vmem>>, vector<64x16xbf16>
    tpu.vector_store %arg6[%c0_32, %c32], %28 {strides = array<i32>} : memref<64x144xbf16, #tpu.memory_space<vmem>>, vector<64x16xbf16>,
    %c1_33 = arith.constant 1 : index
    %c0_34 = arith.constant 0 : index
    %c0_35 = arith.constant 0 : index
    %30 = vector.load %arg5[%c1_33, %c0_34, %c0_35] : memref<10x10x16xbf16, #tpu.memory_space<vmem>>, vector<8x8x16xbf16>
    %31 = vector.shape_cast %30 : vector<8x8x16xbf16> to vector<64x16xbf16>
    %c0_36 = arith.constant 0 : index
    %c48 = arith.constant 48 : index
    %32 = vector.load %arg6[%c0_36, %c48] : memref<64x144xbf16, #tpu.memory_space<vmem>>, vector<64x16xbf16>
    tpu.vector_store %arg6[%c0_36, %c48], %31 {strides = array<i32>} : memref<64x144xbf16, #tpu.memory_space<vmem>>, vector<64x16xbf16>,
    %c1_37 = arith.constant 1 : index
    %c1_38 = arith.constant 1 : index
    %c0_39 = arith.constant 0 : index
    %33 = vector.load %arg5[%c1_37, %c1_38, %c0_39] : memref<10x10x16xbf16, #tpu.memory_space<vmem>>, vector<8x8x16xbf16>
    %34 = vector.shape_cast %33 : vector<8x8x16xbf16> to vector<64x16xbf16>
    %c0_40 = arith.constant 0 : index
    %c64 = arith.constant 64 : index
    %35 = vector.load %arg6[%c0_40, %c64] : memref<64x144xbf16, #tpu.memory_space<vmem>>, vector<64x16xbf16>
    tpu.vector_store %arg6[%c0_40, %c64], %34 {strides = array<i32>} : memref<64x144xbf16, #tpu.memory_space<vmem>>, vector<64x16xbf16>,
    %c1_41 = arith.constant 1 : index
    %c2_42 = arith.constant 2 : index
    %c0_43 = arith.constant 0 : index
    %36 = vector.load %arg5[%c1_41, %c2_42, %c0_43] : memref<10x10x16xbf16, #tpu.memory_space<vmem>>, vector<8x8x16xbf16>
    %37 = vector.shape_cast %36 : vector<8x8x16xbf16> to vector<64x16xbf16>
    %c0_44 = arith.constant 0 : index
    %c80 = arith.constant 80 : index
    %38 = vector.load %arg6[%c0_44, %c80] : memref<64x144xbf16, #tpu.memory_space<vmem>>, vector<64x16xbf16>
    tpu.vector_store %arg6[%c0_44, %c80], %37 {strides = array<i32>} : memref<64x144xbf16, #tpu.memory_space<vmem>>, vector<64x16xbf16>,
    %c2_45 = arith.constant 2 : index
    %c0_46 = arith.constant 0 : index
    %c0_47 = arith.constant 0 : index
    %39 = vector.load %arg5[%c2_45, %c0_46, %c0_47] : memref<10x10x16xbf16, #tpu.memory_space<vmem>>, vector<8x8x16xbf16>
    %40 = vector.shape_cast %39 : vector<8x8x16xbf16> to vector<64x16xbf16>
    %c0_48 = arith.constant 0 : index
    %c96 = arith.constant 96 : index
    %41 = vector.load %arg6[%c0_48, %c96] : memref<64x144xbf16, #tpu.memory_space<vmem>>, vector<64x16xbf16>
    tpu.vector_store %arg6[%c0_48, %c96], %40 {strides = array<i32>} : memref<64x144xbf16, #tpu.memory_space<vmem>>, vector<64x16xbf16>,
    %c2_49 = arith.constant 2 : index
    %c1_50 = arith.constant 1 : index
    %c0_51 = arith.constant 0 : index
    %42 = vector.load %arg5[%c2_49, %c1_50, %c0_51] : memref<10x10x16xbf16, #tpu.memory_space<vmem>>, vector<8x8x16xbf16>
    %43 = vector.shape_cast %42 : vector<8x8x16xbf16> to vector<64x16xbf16>
    %c0_52 = arith.constant 0 : index
    %c112 = arith.constant 112 : index
    %44 = vector.load %arg6[%c0_52, %c112] : memref<64x144xbf16, #tpu.memory_space<vmem>>, vector<64x16xbf16>
    tpu.vector_store %arg6[%c0_52, %c112], %43 {strides = array<i32>} : memref<64x144xbf16, #tpu.memory_space<vmem>>, vector<64x16xbf16>,
    %c2_53 = arith.constant 2 : index
    %c2_54 = arith.constant 2 : index
    %c0_55 = arith.constant 0 : index
    %45 = vector.load %arg5[%c2_53, %c2_54, %c0_55] : memref<10x10x16xbf16, #tpu.memory_space<vmem>>, vector<8x8x16xbf16>
    %46 = vector.shape_cast %45 : vector<8x8x16xbf16> to vector<64x16xbf16>
    %c0_56 = arith.constant 0 : index
    %c128 = arith.constant 128 : index
    %47 = vector.load %arg6[%c0_56, %c128] : memref<64x144xbf16, #tpu.memory_space<vmem>>, vector<64x16xbf16>
    tpu.vector_store %arg6[%c0_56, %c128], %46 {strides = array<i32>} : memref<64x144xbf16, #tpu.memory_space<vmem>>, vector<64x16xbf16>,
    %c0_57 = arith.constant 0 : index
    %c0_58 = arith.constant 0 : index
    %48 = vector.load %arg6[%c0_57, %c0_58] : memref<64x144xbf16, #tpu.memory_space<vmem>>, vector<64x144xbf16>
    %cst_59 = arith.constant dense<0.000000e+00> : vector<64x64xf32>
    %49 = tpu.matmul %48, %20, %cst_59 {dimension_numbers = #tpu.dot_dimension_numbers<[1], [0], [0], [1], [0, 0, 1, 1], [], []>} : vector<64x144xbf16>, vector<144x64xbf16>, vector<64x64xf32> -> vector<64x64xf32>
    %c0_60 = arith.constant 0 : index
    %c0_61 = arith.constant 0 : index
    %50 = vector.load %arg3[%c0_60, %c0_61] : memref<1x32xf32, #tpu.memory_space<vmem>>, vector<1x32xf32>
    %51 = vector.extract_strided_slice %49 {offsets = [0, 0], sizes = [64, 32], strides = [1, 1]} : vector<64x64xf32> to vector<64x32xf32>
    %52 = vector.broadcast %50 : vector<1x32xf32> to vector<64x32xf32>
    %53 = arith.addf %51, %52 : vector<64x32xf32>
    %54 = vector.shape_cast %53 : vector<64x32xf32> to vector<8x8x32xf32>
    %c0_62 = arith.constant 0 : index
    %c0_63 = arith.constant 0 : index
    %c0_64 = arith.constant 0 : index
    %c0_65 = arith.constant 0 : index
    %c0_66 = arith.constant 0 : index
    %55 = vector.load %arg4[%c0_62, %c0_63, %c0_64, %c0_65, %c0_66] : memref<1x2x8x8x32xf32, #tpu.memory_space<vmem>>, vector<1x1x8x8x32xf32>
    %56 = vector.shape_cast %55 : vector<1x1x8x8x32xf32> to vector<8x8x32xf32>
    %57 = vector.shape_cast %54 : vector<8x8x32xf32> to vector<1x1x8x8x32xf32>
    tpu.vector_store %arg4[%c0_62, %c0_63, %c0_64, %c0_65, %c0_66], %57 {strides = array<i32>} : memref<1x2x8x8x32xf32, #tpu.memory_space<vmem>>, vector<1x1x8x8x32xf32>,
    %58 = vector.extract_strided_slice %49 {offsets = [0, 32], sizes = [64, 32], strides = [1, 1]} : vector<64x64xf32> to vector<64x32xf32>
    %59 = vector.broadcast %50 : vector<1x32xf32> to vector<64x32xf32>
    %60 = arith.addf %58, %59 : vector<64x32xf32>
    %61 = vector.shape_cast %60 : vector<64x32xf32> to vector<8x8x32xf32>
    %c0_67 = arith.constant 0 : index
    %c1_68 = arith.constant 1 : index
    %c0_69 = arith.constant 0 : index
    %c0_70 = arith.constant 0 : index
    %c0_71 = arith.constant 0 : index
    %62 = vector.load %arg4[%c0_67, %c1_68, %c0_69, %c0_70, %c0_71] : memref<1x2x8x8x32xf32, #tpu.memory_space<vmem>>, vector<1x1x8x8x32xf32>
    %63 = vector.shape_cast %62 : vector<1x1x8x8x32xf32> to vector<8x8x32xf32>
    %64 = vector.shape_cast %61 : vector<8x8x32xf32> to vector<1x1x8x8x32xf32>
    tpu.vector_store %arg4[%c0_67, %c1_68, %c0_69, %c0_70, %c0_71], %64 {strides = array<i32>} : memref<1x2x8x8x32xf32, #tpu.memory_space<vmem>>, vector<1x1x8x8x32xf32>,
    return
  }
  func.func @transform_0(%arg0: i32) -> (i32, i32, i32, i32) {
    %c0_i32 = arith.constant 0 : i32
    %c0_i32_0 = arith.constant 0 : i32
    %c0_i32_1 = arith.constant 0 : i32
    %c0_i32_2 = arith.constant 0 : i32
    return %arg0, %c0_i32, %c0_i32_0, %c0_i32_1 : i32, i32, i32, i32
  }
  func.func @transform_1(%arg0: i32) -> (i32, i32) {
    %c0_i32 = arith.constant 0 : i32
    %c0_i32_0 = arith.constant 0 : i32
    %c0_i32_1 = arith.constant 0 : i32
    return %c0_i32, %c0_i32_0 : i32, i32
  }
  func.func @transform_2(%arg0: i32) -> (i32, i32) {
    %c0_i32 = arith.constant 0 : i32
    %c0_i32_0 = arith.constant 0 : i32
    %c0_i32_1 = arith.constant 0 : i32
    return %c0_i32, %c0_i32_0 : i32, i32
  }
  func.func @transform_3(%arg0: i32) -> (i32, i32, i32, i32, i32) {
    %c0_i32 = arith.constant 0 : i32
    %c0_i32_0 = arith.constant 0 : i32
    %c0_i32_1 = arith.constant 0 : i32
    %c0_i32_2 = arith.constant 0 : i32
    %c0_i32_3 = arith.constant 0 : i32
    return %arg0, %c0_i32, %c0_i32_0, %c0_i32_1, %c0_i32_2 : i32, i32, i32, i32, i32
  }
}

</mosaic_0001>

<bundles_post_ra>
// kernel: pare_up_block2d_forward.3
= control target key start
LH: loop header
LB: loop body
LE: loop exit
PB: predicated region body
PF: predicated region fallthrough
CT: control target
= control target key end

     0   :  { %s1780_s12 = smov 0   ;;  %s2246_s0 = inlined_call_operand.vmem [shape: f32[2,8,8,16], index: 0, kind: input, shape index: {}]   ;;  %s2247_s1 = inlined_call_operand.vmem [shape: bf16[144,64], index: 1, kind: input, shape index: {}]   ;;  %s2248_s2 = inlined_call_operand.vmem [shape: f32[1,32], index: 2, kind: input, shape index: {}]   ;;  %s2249_s3 = inlined_call_operand.vmem [shape: f32[2,2,8,8,32], index: 3, kind: output, shape index: {}]  }
   0x1 LB: > { %s1578_s13 = sadd.s32 4294967295, %s1750_s12   ;;  %p1582_p0 = scmp.ge.s32.totalorder %s1750_s12, 1  ;;  %s1750_s12 = sphi %s1780_s12, %s13_s12  }
   0x2   : > { %p137_p1 = scmp.lt.s32.totalorder %s1750_s12, 3 }
   0x4   : > { %p138_p2 = pnand %p1582_p0, %p137_p1 }
   0x5   : > { %p161_p3 = scmp.lt.s32.totalorder (!%p138_p2), %s1578_s13, 1  ;;  %vm174_vm0 = vcmask (!%p138_p2), 122880   ;;  %vm180_vm1 = vsmask.f32 (!%p138_p2), 256  ;;  %v197_v1 = vld [vmem:[#allocation2 + $0x28] sm:$0x1] (!%p138_p2) }
   0x6   : > { %141 = sbr.rel (%p138_p2) target bundleno = 584 (0x248), region = 32  ;;  %vm1789_vm2 = vmand (!%p138_p2), %vm174_vm0, %vm180_vm1  ;;  %v200_v2 = vld [vmem:[#allocation2 + $0x30] sm:$0x1] (!%p138_p2)  ;;  %vm212_vm3 = vsmask.f32 (!%p138_p2), 7938  ;;  %vm172_vm5 = vcmask (!%p138_p2), 125952  }
   0x7   : > { %v198_v3 = vsel (!%p138_p2), %vm1789_vm2, 0, %v197_v1  ;;  %v201_v4 = vsel (!%p138_p2), %vm1789_vm2, 0, %v200_v2  ;;  %v185_v5 = vld [vmem:[#allocation2 + $0x8] sm:$0x1] (!%p138_p2)  ;;  %vm1801_vm4 = vmand (!%p138_p2), %vm174_vm0, %vm212_vm3  ;;  %v188_v8 = vld [vmem:[#allocation2 + $0x10] sm:$0x1] (!%p138_p2) }
   0x8   : > { %199 = vst [vmem:[#allocation2 + $0x28] sm:$0x1] (!%p138_p2), %v198_v3  ;;  %202 = vst [vmem:[#allocation2 + $0x30] sm:$0x1] (!%p138_p2), %v201_v4  ;;  %v186_v7 = vsel (!%p138_p2), %vm1789_vm2, 0, %v185_v5  ;;  %v189_v10 = vsel (!%p138_p2), %vm1789_vm2, 0, %v188_v8 }
   0x9   : > { %v203_v9 = vld [vmem:[#allocation2 + $0x38] sm:$0x1] (!%p138_p2)  ;;  %187 = vst [vmem:[#allocation2 + $0x8] sm:$0x1] (!%p138_p2), %v186_v7  ;;  %190 = vst [vmem:[#allocation2 + $0x10] sm:$0x1] (!%p138_p2), %v189_v10 }
   0xa   : > { %v204_v11 = vsel (!%p138_p2), %vm1789_vm2, 0, %v203_v9  ;;  %v191_v12 = vld [vmem:[#allocation2 + $0x18] sm:$0x1] (!%p138_p2)  ;;  %v217_v14 = vld [vmem:[#allocation2 + $0xc] sm:$0x1] (!%p138_p2)  ;;  %v1752_v30 = vmov (!%p138_p2), 0   ;;  %vm1845_vm6 = vmand (!%p138_p2), %vm172_vm5, %vm212_vm3 }
   0xb   : > { %205 = vst [vmem:[#allocation2 + $0x38] sm:$0x1] (!%p138_p2), %v204_v11  ;;  %v192_v13 = vsel (!%p138_p2), %vm1789_vm2, 0, %v191_v12  ;;  %v220_v15 = vld [vmem:[#allocation2 + $0x14] sm:$0x1] (!%p138_p2)  ;;  %v218_v19 = vsel (!%p138_p2), %vm1801_vm4, 0, %v217_v14  ;;  %1382 = vmatprep.subr.bf16.mxu0 (!%p138_p2), %v1752_v30  ;;  %1689 = vmatprep.subr.bf16.mxu1 (!%p138_p2), %v1752_v30 }
   0xc   : > { %193 = vst [vmem:[#allocation2 + $0x18] sm:$0x1] (!%p138_p2), %v192_v13  ;;  %v221_v20 = vsel (!%p138_p2), %vm1801_vm4, 0, %v220_v15  ;;  %219 = vst [vmem:[#allocation2 + $0xc] sm:$0x1] (!%p138_p2), %v218_v19  ;;  %vm662_vm7 = vcmask (!%p138_p2), 1042432  }
   0xd   : > { %s2261_s13 = smov (!%p161_p3, %s1578_s13), 1  ;;  %222 = vst [vmem:[#allocation2 + $0x14] sm:$0x1] %v221_v20  ;;  %173 = vst.msk [vmem:[#allocation2] sm:$0xf] %vm172_vm5, %v1752_v30  ;;  %vm663_vm8 = vcmask 1046532  }
   0xe   : > { %s1679_s14 = sshll.u32 %s2261_s13, 6  ;;  %175 = vst.msk [vmem:[#allocation2 + $0x4] sm:$0x1] %vm174_vm0, %v1752_v30  ;;  %178 = vst.msk [vmem:[#allocation2 + $0x4c] sm:$0x1] %vm174_vm0, %v1752_v30  ;;  %s1753_s24 = smov 48  }
   0xf   : > { %s1815_s17 = scalar_lea.vmem %s2246_s0, %s1679_s14  ;;  %177 = vst.msk [vmem:[#allocation2 + $0x48] sm:$0xf] %vm172_vm5, %v1752_v30  ;;  %v391_v35 = vld [vmem:[#allocation2 + $0x28] sm:$0xf]  ;;  %v397_v40 = vld [vmem:[#allocation2 + $0x30] sm:$0xf]  ;;  %vm1916_vm9 = vmor %vm662_vm7, %vm663_vm8 }
  0x10   : > { %v248_v16 = vld [vmem:[%s1815_s17 + $0x20] sm:$0xff]  ;;  %v249_v17 = vld [vmem:[%s1815_s17 + $0x28] sm:$0xff]  ;;  %v250_v25 = vld [vmem:[%s1815_s17 + $0x30] sm:$0xff]  ;;  %s1754_s25 = smov 96   ;;  %vm486_vm10 = vsmask.f32 3328 }
  0x11   : > { %v244_v18 = vld [vmem:[%s1815_s17] sm:$0xff]  ;;  %v1685_v21 = vpack.c.bf16 %v248_v16, %v248_v16  ;;  %v1686_v22 = vpack.c.bf16 %v249_v17, %v249_v17  ;;  %v245_v23 = vld [vmem:[%s1815_s17 + $0x8] sm:$0xff]  ;;  %v246_v26 = vld [vmem:[%s1815_s17 + $0x10] sm:$0xff]  ;;  %v1687_v28 = vpack.c.bf16 %v250_v25, %v250_v25  ;;  %vm487_vm11 = vsmask.f32 7440  ;;  %s1755_s26 = smov 80  }
  0x12   : > { %v1681_v24 = vpack.c.bf16 %v244_v18, %v244_v18  ;;  %v1682_v27 = vpack.c.bf16 %v245_v23, %v245_v23  ;;  %v1683_v29 = vpack.c.bf16 %v246_v26, %v246_v26  ;;  %v367_v45 = vld [vmem:[#allocation2 + $0x8] sm:$0xf]  ;;  %v373_v53 = vld [vmem:[#allocation2 + $0x10] sm:$0xf]  ;;  %v403_v54 = vld [vmem:[#allocation2 + $0x38] sm:$0xf] }
  0x13   : > { %v317_v31 = vshrl.u32 %v1685_v21, 16  ;;  %v320_v32 = vshll.u32 %v1685_v21, 16  ;;  %v325_v33 = vshrl.u32 %v1686_v22, 16  ;;  %v328_v34 = vshll.u32 %v1686_v22, 16  ;;  %v370_v59 = vld [vmem:[#allocation2 + $0xc] sm:$0x1]  ;;  %vm1984_vm12 = vmor %vm486_vm10, %vm487_vm11 }
  0x14   : > { %v285_v36 = vshrl.u32 %v1681_v24, 16  ;;  %v288_v37 = vshll.u32 %v1681_v24, 16  ;;  %v293_v41 = vshrl.u32 %v1682_v27, 16  ;;  %v296_v42 = vshll.u32 %v1682_v27, 16  ;;  %v223_v60 = vld [vmem:[#allocation2 + $0x1c] sm:$0x1] }
  0x15   : > { %v1839_v38 = vrot.slane %v317_v31, 7  ;;  %v1841_v39 = vrot.slane %v325_v33, 7  ;;  %v333_v46 = vshrl.u32 %v1687_v28, 16  ;;  %v336_v47 = vshll.u32 %v1687_v28, 16  ;;  %v194_v61 = vld [vmem:[#allocation2 + $0x20] sm:$0x1] }
  0x16   : > { %v287_v44 = vrot.slane %v285_v36, 7  ;;  %v301_v48 = vshrl.u32 %v1683_v29, 16  ;;  %v295_v57 = vrot.slane %v293_v41, 7  ;;  %v304_v2 = vshll.u32 %v1683_v29, 16  ;;  %v376_v3 = vld [vmem:[#allocation2 + $0x14] sm:$0x1] }
  0x17   : > { %v322_v49 = vor.u32 %v320_v32, %v1839_v38  ;;  %v323_v50 = vrot.slane %v1839_v38, 4  ;;  %v330_v51 = vor.u32 %v328_v34, %v1841_v39  ;;  %v331_v52 = vrot.slane %v1841_v39, 4  ;;  %v214_v4 = vld [vmem:[#allocation2 + $0x4] sm:$0x1]  ;;  %v379_v10 = vld [vmem:[#allocation2 + $0x18] sm:$0xf] }
  0x18   : > { %v290_v55 = vor.u32 %v288_v37, %v287_v44  ;;  %v291_v56 = vrot.slane %v287_v44, 4  ;;  %v1853_v58 = vrot.slane %v333_v46, 7  ;;  %v1859_v1 = vrot.slane %v301_v48, 7  ;;  %v226_v11 = vld [vmem:[#allocation2 + $0x24] sm:$0x1]  ;;  %v247_v12 = vld [vmem:[%s1815_s17 + $0x18] sm:$0xff] }
  0x19   : > { %v392_v62 = vsel %vm1845_vm6, %v322_v49, %v391_v35  ;;  %v398_v63 = vsel %vm1845_vm6, %v330_v51, %v397_v40  ;;  %v298_v5 = vor.u32 %v296_v42, %v295_v57  ;;  %v299_v7 = vrot.slane %v295_v57, 4  ;;  %v1868_v15 = vld [vmem:[#allocation2] sm:$0xe]  ;;  %v229_v16 = vld [vmem:[#allocation2 + $0x2c] sm:$0x1]  ;;  %v251_v49 = vld [vmem:[%s1815_s17 + $0x38] sm:$0xff] }
  0x1a   : > { %393 = vst [vmem:[#allocation2 + $0x28] sm:$0xf] %v392_v62  ;;  %399 = vst [vmem:[#allocation2 + $0x30] sm:$0xf] %v398_v63  ;;  %v368_v8 = vsel %vm1845_vm6, %v290_v55, %v367_v45  ;;  %v338_v9 = vor.u32 %v336_v47, %v1853_v58  ;;  %v306_v13 = vor.u32 %v304_v2, %v1859_v1  ;;  %v232_v17 = vld [vmem:[#allocation2 + $0x34] sm:$0x1] }
  0x1b   : > { %369 = vst [vmem:[#allocation2 + $0x8] sm:$0xf] %v368_v8  ;;  %v371_v14 = vsel %vm1789_vm2, %v291_v56, %v370_v59  ;;  %v182_v18 = vld [vmem:[#allocation2] sm:$0x1]  ;;  %v374_v19 = vsel %vm1845_vm6, %v298_v5, %v373_v53  ;;  %v377_v21 = vsel %vm1789_vm2, %v299_v7, %v376_v3  ;;  %v215_v22 = vsel %vm1801_vm4, 0, %v214_v4  ;;  %v1732_v47 = vld [vmem:[%s2247_s1 + $0x8] sm:$0xff]  }
  0x1c   : > { %v404_v20 = vsel %vm1845_vm6, %v338_v9, %v403_v54  ;;  %372 = vst [vmem:[#allocation2 + $0xc] sm:$0x1] %v371_v14  ;;  %v235_v23 = vld [vmem:[#allocation2 + $0x3c] sm:$0x1]  ;;  %v206_v24 = vld [vmem:[#allocation2 + $0x40] sm:$0x1]  ;;  %v380_v26 = vsel %vm1845_vm6, %v306_v13, %v379_v10  ;;  %v1684_v33 = vpack.c.bf16 %v247_v12, %v247_v12  ;;  %v1923_v3 = vpack.c.bf16 %v251_v49, %v251_v49 }
  0x1d   : > { %375 = vst [vmem:[#allocation2 + $0x10] sm:$0xf] %v374_v19  ;;  %v339_v25 = vrot.slane %v1853_v58, 4  ;;  %405 = vst [vmem:[#allocation2 + $0x38] sm:$0xf] %v404_v20  ;;  %v224_v27 = vsel %vm1801_vm4, 0, %v223_v60 }
  0x1e   : > { %378 = vst [vmem:[#allocation2 + $0x14] sm:$0x1] %v377_v21  ;;  %216 = vst [vmem:[#allocation2 + $0x4] sm:$0x1] %v215_v22  ;;  %v195_v28 = vsel %vm1789_vm2, 0, %v194_v61  ;;  %v227_v31 = vsel %vm1801_vm4, 0, %v226_v11 }
  0x1f   : > { %v238_v29 = vld [vmem:[#allocation2 + $0x44] sm:$0x1]  ;;  %381 = vst [vmem:[#allocation2 + $0x18] sm:$0xf] %v380_v26  ;;  %225 = vst [vmem:[#allocation2 + $0x1c] sm:$0x1] %v224_v27 }
  0x20   : > { %196 = vst [vmem:[#allocation2 + $0x20] sm:$0x1] %v195_v28  ;;  %v230_v32 = vsel %vm1801_vm4, 0, %v229_v16  ;;  %v233_v34 = vsel %vm1801_vm4, 0, %v232_v17  ;;  %v1731_v35 = vld [vmem:[%s2247_s1] sm:$0xff]   ;;  %v307_v36 = vrot.slane %v1859_v1, 4 }
  0x21   : > { %228 = vst [vmem:[#allocation2 + $0x24] sm:$0x1] %v227_v31  ;;  %231 = vst [vmem:[#allocation2 + $0x2c] sm:$0x1] %v230_v32  ;;  %v183_v37 = vsel %vm1789_vm2, 0, %v182_v18  ;;  %v236_v40 = vsel %vm1801_vm4, 0, %v235_v23  ;;  %1383 = vmatpush1.bf16.msra.mxu0 %v1731_v35  ;;  %1698 = vmatpush1.bf16.msra.mxu1 %v1731_v35 }
  0x22   : > { %234 = vst [vmem:[#allocation2 + $0x34] sm:$0x1] %v233_v34  ;;  %v207_v41 = vsel %vm1789_vm2, 0, %v206_v24  ;;  %v1603_v42 = vrot.slane %v1868_v15, 9  ;;  %v309_v44 = vshrl.u32 %v1684_v33, 16  ;;  %v312_v45 = vshll.u32 %v1684_v33, 16  ;;  %1384 = vmatprep.subr.bf16.mxu0 %v1752_v30  ;;  %1690 = vmatprep.subr.bf16.mxu1 %v1752_v30 }
  0x23   : > { %184 = vst [vmem:[#allocation2] sm:$0x1] %v183_v37  ;;  %237 = vst [vmem:[#allocation2 + $0x3c] sm:$0x1] %v236_v40  ;;  %v239_v46 = vsel %vm1801_vm4, 0, %v238_v29  ;;  %v1733_v53 = vld [vmem:[%s2247_s1 + $0x10] sm:$0xff]  }
  0x24   : > { %208 = vst [vmem:[#allocation2 + $0x40] sm:$0x1] %v207_v41  ;;  %v1723_v48 = vld [vmem:[#allocation2 + $0x28] ss:$8 sps:$4 sm:$0xff]   ;;  %240 = vst [vmem:[#allocation2 + $0x44] sm:$0x1] %v239_v46 }
  0x25   : > { %v928_v51 = vld [vmem:[#allocation2 + $0x8] sm:$0xe]  ;;  %758 = vrot.lane.b32.xlu1 %v1723_v48, %s1753_s24  ;;  %v929_v55 = vld [vmem:[#allocation2 + $0xc] sm:$0x1]  ;;  %v311_v59 = vrot.slane %v309_v44, 7  ;;  %1385 = vmatpush1.bf16.msra.mxu0 %v1732_v47  ;;  %v341_v33 = vshrl.u32 %v1923_v3, 16 }
  0x26   : > { %v1623_v56 = vrot.slane %v928_v51, 9  ;;  %v632_v57 = vld [vmem:[#allocation2 + $0x8] sm:$0xe]  ;;  %1699 = vmatpush1.bf16.msra.mxu1 %v1732_v47  ;;  %v1725_v61 = vld [vmem:[#allocation2 + $0x30] ss:$8 sps:$4 sm:$0xff]   ;;  %1386 = vmatprep.subr.bf16.mxu0 %v1752_v30  ;;  %v962_v4 = vrot.slane %v929_v55, 5 }
  0x27   : > { %v1724_v60 = vld [vmem:[#allocation2 + $0x8] ss:$8 sps:$4 sm:$0xff]   ;;  %1691 = vmatprep.subr.bf16.mxu1 %v1752_v30  ;;  %v931_v1 = vld [vmem:[#allocation2 + $0x14] sm:$0x1]  ;;  %v314_v2 = vor.u32 %v312_v45, %v311_v59  ;;  %v631_v8 = vld [vmem:[#allocation2 + $0x4] sm:$0x1] }
  0x28   : > { %754 = vrot.lane.b32.xlu0 %v1724_v60, %s1753_s24  ;;  %v1726_v62 = vld [vmem:[#allocation2 + $0x10] ss:$8 sps:$4 sm:$0xff]   ;;  %v966_v7 = vrot.slane %v931_v1, 5  ;;  %v1604_v9 = vrot.slane %v632_v57, 9  ;;  %v633_v10 = vld [vmem:[#allocation2 + $0xc] sm:$0x1]  ;;  %v963_v14 = vsel %vm1916_vm9, %v1623_v56, %v962_v4 }
  0x29   : > { %v930_v63 = vld [vmem:[#allocation2 + $0x10] sm:$0xe]  ;;  %1054 = vrot.lane.b32.xlu1 %v1725_v61, %s1754_s25  ;;  %v667_v11 = vrot.slane %v631_v8, 5  ;;  %v382_v12 = vld [vmem:[#allocation2 + $0x1c] sm:$0x1]  ;;  %v315_v13 = vrot.slane %v311_v59, 4  ;;  %1387 = vmatpush1.bf16.msra.mxu0 %v1733_v53 }
  0x2a   : > { %v1624_v5 = vrot.slane %v930_v63, 9  ;;  %1700 = vmatpush1.bf16.msra.mxu1 %v1733_v53  ;;  %v671_v16 = vrot.slane %v633_v10, 5  ;;  %v383_v17 = vsel %vm1789_vm2, %v307_v36, %v382_v12  ;;  %v634_v18 = vld [vmem:[#allocation2 + $0x10] sm:$0xe]  ;;  %v635_v19 = vld [vmem:[#allocation2 + $0x14] sm:$0x1]  ;;  %1388 = vmatprep.subr.bf16.mxu0 %v1752_v30 }
  0x2b   : > { %1692 = vmatprep.subr.bf16.mxu1 %v1752_v30  ;;  %v668_v21 = vsel %vm1916_vm9, %v1603_v42, %v667_v11  ;;  %384 = vst [vmem:[#allocation2 + $0x1c] sm:$0x1] %v383_v17  ;;  %v1937_v22 = vld [vmem:[#allocation2 + $0x18] sm:$0xe]  ;;  %v1605_v23 = vrot.slane %v634_v18, 9  ;;  %v675_v24 = vrot.slane %v635_v19, 5 }
  0x2c   : > { %v967_v15 = vsel %vm1916_vm9, %v1624_v5, %v966_v7  ;;  %1050 = vrot.lane.b32.xlu0 %v1726_v62, %s1754_s25  ;;  %v385_v26 = vld [vmem:[#allocation2 + $0x20] sm:$0xf]  ;;  %v672_v27 = vsel %vm1916_vm9, %v1604_v9, %v671_v16  ;;  %v1606_v28 = vrot.slane %v1937_v22, 9  ;;  %v388_v31 = vld [vmem:[#allocation2 + $0x24] sm:$0x1]  ;;  %s1756_s27 = smov 32  }
  0x2d   : > { %v1631_v20 = vcombine.low %v963_v14, %v967_v15  ;;  %v386_v29 = vsel %vm1845_vm6, %v314_v2, %v385_v26  ;;  %v394_v32 = vld [vmem:[#allocation2 + $0x2c] sm:$0x1]  ;;  %v1611_v34 = vcombine.low %v668_v21, %v672_v27  ;;  %v389_v35 = vsel %vm1789_vm2, %v315_v13, %v388_v31  ;;  %v1951_v37 = vld [vmem:[#allocation2 + $0x28] sm:$0xe]  ;;  %v400_v40 = vld [vmem:[#allocation2 + $0x34] sm:$0x1] }
  0x2e   : > { %387 = vst [vmem:[#allocation2 + $0x20] sm:$0xf] %v386_v29  ;;  %v395_v36 = vsel %vm1789_vm2, %v323_v50, %v394_v32  ;;  %v1953_v41 = vld [vmem:[#allocation2 + $0x28] sm:$0xe]  ;;  %390 = vst [vmem:[#allocation2 + $0x24] sm:$0x1] %v389_v35  ;;  %v401_v44 = vsel %vm1789_vm2, %v331_v52, %v400_v40  ;;  %v676_v56 = vsel %vm1916_vm9, %v1605_v23, %v675_v24 }
  0x2f   : > { %396 = vst [vmem:[#allocation2 + $0x2c] sm:$0x1] %v395_v36  ;;  %v1608_v42 = vrot.slane %v1951_v37, 9  ;;  %v1960_v45 = vld [vmem:[#allocation2 + $0x30] sm:$0xe]  ;;  %v1627_v38 = vrot.slane %v1953_v41, 9  ;;  %709 = vrot.lane.b32.xlu1 %v1611_v34, %s1756_s27 }
  0x30   : > { %v470_v46 = vld [vmem:[#allocation2] sm:$0xf]  ;;  %1004 = vrot.lane.b32.xlu0 %v1631_v20, %s1755_s26  ;;  %402 = vst [vmem:[#allocation2 + $0x34] sm:$0x1] %v401_v44  ;;  %v1628_v50 = vrot.slane %v1960_v45, 9  ;;  %v1734_v11 = vld [vmem:[%s2247_s1 + $0x18] sm:$0xff]  }
  0x31   : > { %v471_v47 = vld [vmem:[#allocation2 + $0x4] sm:$0x1]  ;;  %v472_v48 = vld [vmem:[#allocation2 + $0x8] sm:$0xf]  ;;  %v490_v39 = vshrl.u32 %v470_v46, 16  ;;  %v493_v51 = vshll.u32 %v470_v46, 16  ;;  %1389 = vmatpush1.bf16.msra.mxu0 %v1734_v11  ;;  %1701 = vmatpush1.bf16.msra.mxu1 %v1734_v11 }
  0x32   : > { %v473_v49 = vld [vmem:[#allocation2 + $0xc] sm:$0x1]  ;;  %v499_v52 = vshll.u32 %v471_v47, 16  ;;  %v504_v53 = vshrl.u32 %v472_v48, 16  ;;  %v507_v55 = vshll.u32 %v472_v48, 16  ;;  %v1978_v17 = vrot.slane %v341_v33, 7  ;;  %1390 = vmatprep.subr.bf16.mxu0 %v1752_v30  ;;  %1693 = vmatprep.subr.bf16.mxu1 %v1752_v30 }
  0x33   : > { %v492_v57 = vrot.slane %v490_v39, 4  ;;  %v513_v59 = vshll.u32 %v473_v49, 16  ;;  %v406_v60 = vld [vmem:[#allocation2 + $0x3c] sm:$0x1]  ;;  %v642_v61 = vld [vmem:[#allocation2 + $0x30] sm:$0xe] }
  0x34   : > { %v637_v62 = vld [vmem:[#allocation2 + $0x1c] sm:$0x1]  ;;  %v495_v63 = vrot.slane %v493_v51, 5  ;;  %v501_v1 = vrot.slane %v499_v52, 5  ;;  %v506_v2 = vrot.slane %v504_v53, 4  ;;  %v509_v4 = vrot.slane %v507_v55, 5 }
  0x35   : > { %v679_v5 = vrot.slane %v637_v62, 5  ;;  %v515_v7 = vrot.slane %v513_v59, 5  ;;  %v407_v8 = vsel %vm1789_vm2, %v339_v25, %v406_v60  ;;  %v1972_v9 = vld [vmem:[#allocation2 + $0x38] sm:$0xe]  ;;  %v1609_v10 = vrot.slane %v642_v61, 9  ;;  %s1757_s7 = smov 16  }
  0x36   : > { %v638_v12 = vld [vmem:[#allocation2 + $0x20] sm:$0xe]  ;;  %v496_v13 = vor.u32 %v495_v63, %v492_v57  ;;  %v510_v14 = vor.u32 %v509_v4, %v506_v2  ;;  %408 = vst [vmem:[#allocation2 + $0x3c] sm:$0x1] %v407_v8  ;;  %v1610_v15 = vrot.slane %v1972_v9, 9  ;;  %v1738_v2 = vld [vmem:[%s2247_s1 + $0x28] sm:$0xff]  }
  0x37   : > { %v478_v16 = vld [vmem:[#allocation2 + $0x20] sm:$0xf]  ;;  %v680_v58 = vsel %vm1916_vm9, %v1606_v28, %v679_v5  ;;  %v639_v25 = vld [vmem:[#allocation2 + $0x24] sm:$0x1]  ;;  %v641_v18 = vld [vmem:[#allocation2 + $0x2c] sm:$0x1] }
  0x38   : > { %v1607_v19 = vrot.slane %v638_v12, 9  ;;  %v546_v20 = vshrl.u32 %v478_v16, 16  ;;  %v1612_v21 = vcombine.low %v676_v56, %v680_v58  ;;  %v683_v22 = vrot.slane %v639_v25, 5  ;;  %v937_v24 = vld [vmem:[#allocation2 + $0x2c] sm:$0x1]  ;;  %s1758_s10 = smov 64  }
  0x39   : > { %v687_v23 = vrot.slane %v641_v18, 5  ;;  %v939_v26 = vld [vmem:[#allocation2 + $0x34] sm:$0x1]  ;;  %v978_v28 = vrot.slane %v937_v24, 5  ;;  %v497_v31 = vrot.slane %v496_v13, 4  ;;  %v511_v32 = vrot.slane %v510_v14, 4 }
  0x3a   : > { %v982_v29 = vrot.slane %v939_v26, 5  ;;  %v643_v33 = vld [vmem:[#allocation2 + $0x34] sm:$0x1]  ;;  %711 = vrot.lane.b32.xlu0 %v1612_v21, %s1756_s27  ;;  %v684_v34 = vsel %vm1916_vm9, %v1607_v19, %v683_v22  ;;  %v479_v40 = vld [vmem:[#allocation2 + $0x24] sm:$0x1]  ;;  %v548_v45 = vrot.slane %v546_v20, 4 }
  0x3b   : > { %v688_v35 = vsel %vm1916_vm9, %v1608_v42, %v687_v23  ;;  %v691_v36 = vrot.slane %v643_v33, 5  ;;  %v480_v44 = vld [vmem:[#allocation2 + $0x28] sm:$0xf]  ;;  %v979_v47 = vsel %vm1916_vm9, %v1627_v38, %v978_v28  ;;  %v502_v39 = vsel %vm1984_vm12, %v497_v31, %v501_v1  ;;  %v481_v37 = vld [vmem:[#allocation2 + $0x2c] sm:$0x1]  ;;  %v1736_v38 = vld [vmem:[%s2247_s1 + $0x20] sm:$0xff]  }
  0x3c   : > { %v1613_v46 = vcombine.low %v684_v34, %v688_v35  ;;  %v983_v48 = vsel %vm1916_vm9, %v1628_v50, %v982_v29  ;;  %v779_v49 = vld [vmem:[#allocation2 + $0x28] sm:$0xf]  ;;  %v516_v42 = vsel %vm1984_vm12, %v511_v32, %v515_v7  ;;  %v549_v53 = vshll.u32 %v478_v16, 16  ;;  %v780_v41 = vld [vmem:[#allocation2 + $0x2c] sm:$0x1]  ;;  %1391 = vmatpush1.bf16.msra.mxu0 %v1736_v38  ;;  %1702 = vmatpush1.bf16.msra.mxu1 %v1736_v38  ;;  %v1739_v38 = vld [vmem:[%s2247_s1 + $0x30] sm:$0xff]  }
  0x3d   : > { %v1633_v51 = vcombine.low %v979_v47, %v983_v48  ;;  %v692_v52 = vsel %vm1916_vm9, %v1609_v10, %v691_v36  ;;  %v1599_v50 = vcombine.low %v502_v39, %v516_v42  ;;  %v645_v55 = vld [vmem:[#allocation2 + $0x3c] sm:$0x1]  ;;  %v555_v56 = vshll.u32 %v479_v40, 16  ;;  %v781_v60 = vld [vmem:[#allocation2 + $0x30] sm:$0xf]  ;;  %1392 = vmatprep.subr.bf16.mxu0 %v1752_v30  ;;  %1694 = vmatprep.subr.bf16.mxu1 %v1752_v30  ;;  %s1759_s15 = smov 112  }
  0x3e   : > { %713 = vrot.lane.b32.xlu1 %v1613_v46, %s1756_s27  ;;  %v560_v57 = vshrl.u32 %v480_v44, 16  ;;  %v563_v59 = vshll.u32 %v480_v44, 16  ;;  %v695_v61 = vrot.slane %v645_v55, 5  ;;  %v551_v62 = vrot.slane %v549_v53, 5  ;;  %v782_v8 = vld [vmem:[#allocation2 + $0x34] sm:$0x1] }
  0x3f   : > { %v569_v63 = vshll.u32 %v481_v37, 16  ;;  %v844_v1 = vshrl.u32 %v779_v49, 16  ;;  %613 = vrot.lane.b32.xlu0 %v1599_v50, %s1757_s7  ;;  %v557_v4 = vrot.slane %v555_v56, 5  ;;  %v847_v10 = vshll.u32 %v779_v49, 16  ;;  %v771_v16 = vld [vmem:[#allocation2 + $0x8] sm:$0xf] }
  0x40   : > { %v562_v5 = vrot.slane %v560_v57, 4  ;;  %v565_v7 = vrot.slane %v563_v59, 5  ;;  %v696_v11 = vsel %vm1916_vm9, %v1610_v15, %v695_v61  ;;  %v552_v12 = vor.u32 %v551_v62, %v548_v45  ;;  %v772_v9 = vld [vmem:[#allocation2 + $0xc] sm:$0x1]  ;;  %1393 = vmatpush1.bf16.msra.mxu0 %v1738_v2  ;;  %1703 = vmatpush1.bf16.msra.mxu1 %v1738_v2  ;;  %v773_v28 = vld [vmem:[#allocation2 + $0x10] sm:$0xf] }
  0x41   : > { %v571_v13 = vrot.slane %v569_v63, 5  ;;  %v846_v14 = vrot.slane %v844_v1, 4  ;;  %v1614_v58 = vcombine.low %v692_v52, %v696_v11  ;;  %v849_v18 = vrot.slane %v847_v10, 5  ;;  %1394 = vmatprep.subr.bf16.mxu0 %v1752_v30  ;;  %1695 = vmatprep.subr.bf16.mxu1 %v1752_v30  ;;  %v774_v35 = vld [vmem:[#allocation2 + $0x14] sm:$0x1]  ;;  %s1680_s20 = sshll.u32 %s2261_s13, 7 }
  0x42   : > { %1008 = vrot.lane.b32.xlu1 %v1633_v51, %s1755_s26  ;;  %v566_v25 = vor.u32 %v565_v7, %v562_v5  ;;  %v853_v19 = vshll.u32 %v780_v41, 16  ;;  %v553_v20 = vrot.slane %v552_v12, 4  ;;  %v858_v21 = vshrl.u32 %v781_v60, 16  ;;  %v1075_v46 = vld [vmem:[#allocation2 + $0x30] sm:$0xf]  ;;  %s2194_s23 = scalar_lea.vmem %s2249_s3, %s1680_s20 }
  0x43   : > { %v861_v22 = vshll.u32 %v781_v60, 16  ;;  %v867_v23 = vshll.u32 %v782_v8, 16  ;;  %v850_v24 = vor.u32 %v849_v18, %v846_v14  ;;  %v788_v29 = vshrl.u32 %v771_v16, 16  ;;  %v1076_v49 = vld [vmem:[#allocation2 + $0x34] sm:$0x1] }
  0x44   : > { %v567_v15 = vrot.slane %v566_v25, 4  ;;  %v855_v26 = vrot.slane %v853_v19, 5  ;;  %v558_v31 = vsel %vm1984_vm12, %v553_v20, %v557_v4  ;;  %v860_v32 = vrot.slane %v858_v21, 4  ;;  %v1077_v41 = vld [vmem:[#allocation2 + $0x38] sm:$0xf]  ;;  %1395 = vmatpush1.bf16.msra.mxu0 %v1739_v38  ;;  %1704 = vmatpush1.bf16.msra.mxu1 %v1739_v38 }
  0x45   : > { %v863_v33 = vrot.slane %v861_v22, 5  ;;  %v869_v34 = vrot.slane %v867_v23, 5  ;;  %v851_v40 = vrot.slane %v850_v24, 4  ;;  %v790_v44 = vrot.slane %v788_v29, 4  ;;  %v1078_v62 = vld [vmem:[#allocation2 + $0x3c] sm:$0x1]  ;;  %1396 = vmatprep.subr.bf16.mxu0 %v1752_v30  ;;  %1696 = vmatprep.subr.bf16.mxu1 %v1752_v30 }
  0x46   : > { %715 = vrot.lane.b32.xlu1 %v1614_v58, %s1756_s27  ;;  %v572_v36 = vsel %vm1984_vm12, %v567_v15, %v571_v13  ;;  %v791_v45 = vshll.u32 %v771_v16, 16  ;;  %v797_v39 = vshll.u32 %v772_v9, 16  ;;  %v802_v37 = vshrl.u32 %v773_v28, 16  ;;  %v1067_v7 = vld [vmem:[#allocation2 + $0x10] sm:$0xf] }
  0x47   : > { %v1601_v47 = vcombine.low %v558_v31, %v572_v36  ;;  %v864_v48 = vor.u32 %v863_v33, %v860_v32  ;;  %v856_v51 = vsel %vm1984_vm12, %v851_v40, %v855_v26  ;;  %v805_v52 = vshll.u32 %v773_v28, 16  ;;  %v1068_v13 = vld [vmem:[#allocation2 + $0x14] sm:$0x1]  ;;  %v1069_v18 = vld [vmem:[#allocation2 + $0x18] sm:$0xf] }
  0x48   : > { %v793_v42 = vrot.slane %v791_v45, 5  ;;  %v811_v53 = vshll.u32 %v774_v35, 16  ;;  %v799_v55 = vrot.slane %v797_v39, 5  ;;  %v804_v56 = vrot.slane %v802_v37, 4  ;;  %v1070_v22 = vld [vmem:[#allocation2 + $0x1c] sm:$0x1] }
  0x49   : > { %617 = vrot.lane.b32.xlu0 %v1601_v47, %s1757_s7  ;;  %v865_v50 = vrot.slane %v864_v48, 4  ;;  %v1140_v57 = vshrl.u32 %v1075_v46, 16  ;;  %v807_v60 = vrot.slane %v805_v52, 5  ;;  %v1143_v63 = vshll.u32 %v1075_v46, 16  ;;  %v482_v9 = vld [vmem:[#allocation2 + $0x30] sm:$0xf] }
  0x4a   : > { %v794_v59 = vor.u32 %v793_v42, %v790_v44  ;;  %v813_v61 = vrot.slane %v811_v53, 5  ;;  %v1149_v4 = vshll.u32 %v1076_v49, 16  ;;  %v1154_v5 = vshrl.u32 %v1077_v41, 16  ;;  %v483_v29 = vld [vmem:[#allocation2 + $0x34] sm:$0x1]  ;;  %v1740_v35 = vld [vmem:[%s2247_s1 + $0x38] sm:$0xff]  }
  0x4b   : > { %v870_v1 = vsel %vm1984_vm12, %v865_v50, %v869_v34  ;;  %v1142_v2 = vrot.slane %v1140_v57, 4  ;;  %v808_v11 = vor.u32 %v807_v60, %v804_v56  ;;  %v1145_v12 = vrot.slane %v1143_v63, 5  ;;  %v484_v46 = vld [vmem:[#allocation2 + $0x38] sm:$0xf]  ;;  %1397 = vmatpush1.bf16.msra.mxu0 %v1740_v35  ;;  %1705 = vmatpush1.bf16.msra.mxu1 %v1740_v35  ;;  %v485_v42 = vld [vmem:[#allocation2 + $0x3c] sm:$0x1] }
  0x4c   : > { %v1621_v8 = vcombine.low %v856_v51, %v870_v1  ;;  %v795_v10 = vrot.slane %v794_v59, 4  ;;  %v1151_v14 = vrot.slane %v1149_v4, 5  ;;  %v1156_v16 = vrot.slane %v1154_v5, 4  ;;  %1398 = vmatprep.subr.bf16.mxu0 %v1752_v30  ;;  %v474_v56 = vld [vmem:[#allocation2 + $0x10] sm:$0xf]  ;;  %1697 = vmatprep.subr.bf16.mxu1 %v1752_v30 }
  0x4d   : > { %v1157_v58 = vshll.u32 %v1077_v41, 16  ;;  %v1163_v25 = vshll.u32 %v1078_v62, 16  ;;  %v809_v20 = vrot.slane %v808_v11, 4  ;;  %v1146_v21 = vor.u32 %v1145_v12, %v1142_v2  ;;  %v475_v62 = vld [vmem:[#allocation2 + $0x14] sm:$0x1] }
  0x4e   : > { %915 = vrot.lane.b32.xlu1 %v1621_v8, %s1758_s10  ;;  %v800_v19 = vsel %vm1984_vm12, %v795_v10, %v799_v55  ;;  %v1084_v23 = vshrl.u32 %v1067_v7, 16  ;;  %v1087_v26 = vshll.u32 %v1067_v7, 16  ;;  %v1093_v28 = vshll.u32 %v1068_v13, 16  ;;  %v476_v5 = vld [vmem:[#allocation2 + $0x18] sm:$0xf] }
  0x4f   : > { %v1159_v15 = vrot.slane %v1157_v58, 5  ;;  %v1165_v24 = vrot.slane %v1163_v25, 5  ;;  %v814_v31 = vsel %vm1984_vm12, %v809_v20, %v813_v61  ;;  %v1147_v32 = vrot.slane %v1146_v21, 4 }
  0x50   : > { %v1086_v33 = vrot.slane %v1084_v23, 4  ;;  %v1098_v34 = vshrl.u32 %v1069_v18, 16  ;;  %v1619_v36 = vcombine.low %v800_v19, %v814_v31  ;;  %v1089_v44 = vrot.slane %v1087_v26, 5  ;;  %v412_v31 = vld [vmem:[#allocation2 + $0x44] sm:$0x1] }
  0x51   : > { %v1160_v40 = vor.u32 %v1159_v15, %v1156_v16  ;;  %v1095_v45 = vrot.slane %v1093_v28, 5  ;;  %v1152_v47 = vsel %vm1984_vm12, %v1147_v32, %v1151_v14  ;;  %v1101_v39 = vshll.u32 %v1069_v18, 16  ;;  %v477_v18 = vld [vmem:[#allocation2 + $0x1c] sm:$0x1]  ;;  %v1743_v32 = vld [vmem:[%s2247_s1 + $0x40] sm:$0xff]  }
  0x52   : > { %v1100_v48 = vrot.slane %v1098_v34, 4  ;;  %v1107_v37 = vshll.u32 %v1070_v22, 16  ;;  %911 = vrot.lane.b32.xlu0 %v1619_v36, %s1758_s10  ;;  %v1090_v51 = vor.u32 %v1089_v44, %v1086_v33  ;;  %v574_v52 = vshrl.u32 %v482_v9, 16  ;;  %1399 = vmatpush1.bf16.msra.mxu0 %v1743_v32 }
  0x53   : > { %v1161_v49 = vrot.slane %v1160_v40, 4  ;;  %v577_v53 = vshll.u32 %v482_v9, 16  ;;  %v1103_v41 = vrot.slane %v1101_v39, 5  ;;  %v583_v50 = vshll.u32 %v483_v29, 16  ;;  %v783_v9 = vld [vmem:[#allocation2 + $0x38] sm:$0xf]  ;;  %1706 = vmatpush1.bf16.msra.mxu1 %v1743_v32 }
  0x54   : > { %v1109_v38 = vrot.slane %v1107_v37, 5  ;;  %v588_v55 = vshrl.u32 %v484_v46, 16  ;;  %v1091_v59 = vrot.slane %v1090_v51, 4  ;;  %v576_v60 = vrot.slane %v574_v52, 4  ;;  %v409_v29 = vld [vmem:[#allocation2 + $0x40] sm:$0xf] }
  0x55   : > { %v1166_v57 = vsel %vm1984_vm12, %v1161_v49, %v1165_v24  ;;  %v579_v61 = vrot.slane %v577_v53, 5  ;;  %v1104_v1 = vor.u32 %v1103_v41, %v1100_v48  ;;  %v585_v2 = vrot.slane %v583_v50, 5  ;;  %v784_v40 = vld [vmem:[#allocation2 + $0x3c] sm:$0x1]  ;;  %v775_v51 = vld [vmem:[#allocation2 + $0x18] sm:$0xf] }
  0x56   : > { %v1641_v63 = vcombine.low %v1152_v47, %v1166_v57  ;;  %v590_v4 = vrot.slane %v588_v55, 4  ;;  %v1096_v7 = vsel %vm1984_vm12, %v1091_v59, %v1095_v45  ;;  %v591_v10 = vshll.u32 %v484_v46, 16  ;;  %v776_v41 = vld [vmem:[#allocation2 + $0x1c] sm:$0x1]  ;;  %v778_v57 = vld [vmem:[#allocation2 + $0x24] sm:$0x1] }
  0x57   : > { %v580_v8 = vor.u32 %v579_v61, %v576_v60  ;;  %v597_v11 = vshll.u32 %v485_v42, 16  ;;  %v1105_v30 = vrot.slane %v1104_v1, 4  ;;  %v518_v12 = vshrl.u32 %v474_v56, 16 }
  0x58   : > { %1211 = vrot.lane.b32.xlu1 %v1641_v63, %s1759_s15  ;;  %v521_v13 = vshll.u32 %v474_v56, 16  ;;  %v527_v14 = vshll.u32 %v475_v62, 16  ;;  %v593_v58 = vrot.slane %v591_v10, 5  ;;  %v532_v19 = vshrl.u32 %v476_v5, 16  ;;  %v932_v63 = vld [vmem:[#allocation2 + $0x18] sm:$0xe] }
  0x59   : > { %v581_v16 = vrot.slane %v580_v8, 4  ;;  %v599_v25 = vrot.slane %v597_v11, 5  ;;  %v1110_v20 = vsel %vm1984_vm12, %v1105_v30, %v1109_v38  ;;  %v520_v21 = vrot.slane %v518_v12, 4  ;;  %v777_v38 = vld [vmem:[#allocation2 + $0x20] sm:$0xf] }
  0x5a   : > { %v523_v22 = vrot.slane %v521_v13, 5  ;;  %v529_v23 = vrot.slane %v527_v14, 5  ;;  %v1639_v15 = vcombine.low %v1096_v7, %v1110_v20  ;;  %v594_v26 = vor.u32 %v593_v58, %v590_v4  ;;  %v940_v13 = vld [vmem:[#allocation2 + $0x38] sm:$0xe] }
  0x5b   : > { %v586_v24 = vsel %vm1984_vm12, %v581_v16, %v585_v2  ;;  %v534_v28 = vrot.slane %v532_v19, 4  ;;  %v535_v34 = vshll.u32 %v476_v5, 16  ;;  %v541_v35 = vshll.u32 %v477_v18, 16  ;;  %v1728_v16 = vld [vmem:[#allocation2 + $0x18] ss:$8 sps:$4 sm:$0xff]  }
  0x5c   : > { %v524_v33 = vor.u32 %v523_v22, %v520_v21  ;;  %v344_v36 = vshll.u32 %v1923_v3, 16  ;;  %1207 = vrot.lane.b32.xlu0 %v1639_v15, %s1759_s15  ;;  %v595_v44 = vrot.slane %v594_v26, 4  ;;  %v347_v45 = vrot.slane %v1978_v17, 4  ;;  %v941_v18 = vld [vmem:[#allocation2 + $0x3c] sm:$0x1] }
  0x5d   : > { %v872_v46 = vshrl.u32 %v783_v9, 16  ;;  %v875_v47 = vshll.u32 %v783_v9, 16  ;;  %v537_v39 = vrot.slane %v535_v34, 5  ;;  %v543_v37 = vrot.slane %v541_v35, 5  ;;  %v933_v19 = vld [vmem:[#allocation2 + $0x1c] sm:$0x1] }
  0x5e   : > { %v525_v48 = vrot.slane %v524_v33, 4  ;;  %v346_v49 = vor.u32 %v344_v36, %v1978_v17  ;;  %v600_v42 = vsel %vm1984_vm12, %v595_v44, %v599_v25  ;;  %v413_v3 = vsel %vm1789_vm2, %v347_v45, %v412_v31  ;;  %v934_v22 = vld [vmem:[#allocation2 + $0x20] sm:$0xe]  ;;  %v209_v33 = vld [vmem:[#allocation2 + $0x48] sm:$0x1] }
  0x5f   : > { %v874_v52 = vrot.slane %v872_v46, 4  ;;  %v877_v53 = vrot.slane %v875_v47, 5  ;;  %v1602_v50 = vcombine.low %v586_v24, %v600_v42  ;;  %v538_v56 = vor.u32 %v537_v39, %v534_v28  ;;  %414 = vst [vmem:[#allocation2 + $0x44] sm:$0x1] %v413_v3  ;;  %v935_v28 = vld [vmem:[#allocation2 + $0x24] sm:$0x1] }
  0x60   : > { %v530_v55 = vsel %vm1984_vm12, %v525_v48, %v529_v23  ;;  %v410_v17 = vsel %vm1845_vm6, %v346_v49, %v409_v29  ;;  %v881_v60 = vshll.u32 %v784_v40, 16  ;;  %v816_v61 = vshrl.u32 %v775_v51, 16  ;;  %v241_v45 = vld [vmem:[#allocation2 + $0x4c] sm:$0x1] }
  0x61   : > { %411 = vst [vmem:[#allocation2 + $0x40] sm:$0xf] %v410_v17  ;;  %v878_v59 = vor.u32 %v877_v53, %v874_v52  ;;  %v819_v62 = vshll.u32 %v775_v51, 16  ;;  %619 = vrot.lane.b32.xlu1 %v1602_v50, %s1757_s7  ;;  %v539_v1 = vrot.slane %v538_v56, 4  ;;  %v825_v2 = vshll.u32 %v776_v41, 16 }
  0x62   : > { %v830_v4 = vshrl.u32 %v777_v38, 16  ;;  %v833_v5 = vshll.u32 %v777_v38, 16  ;;  %v818_v8 = vrot.slane %v816_v61, 4  ;;  %v2083_v11 = vrot.slane %v881_v60, 5  ;;  %v1072_v61 = vld [vmem:[#allocation2 + $0x24] sm:$0x1] }
  0x63   : > { %v2079_v7 = vrot.slane %v878_v59, 4  ;;  %v821_v10 = vrot.slane %v819_v62, 5  ;;  %v544_v43 = vsel %vm1984_vm12, %v539_v1, %v543_v37  ;;  %v839_v25 = vshll.u32 %v778_v57, 16  ;;  %v1071_v37 = vld [vmem:[#allocation2 + $0x20] sm:$0xf] }
  0x64   : > { %v832_v30 = vrot.slane %v830_v4, 4  ;;  %v835_v12 = vrot.slane %v833_v5, 5  ;;  %v1600_v14 = vcombine.low %v530_v55, %v544_v43  ;;  %v827_v20 = vrot.slane %v825_v2, 5  ;;  %v1073_v55 = vld [vmem:[#allocation2 + $0x28] sm:$0xf] }
  0x65   : > { %v822_v58 = vor.u32 %v821_v10, %v818_v8  ;;  %v1625_v23 = vrot.slane %v932_v63, 9  ;;  %v841_v24 = vrot.slane %v839_v25, 5  ;;  %v884_v32 = vsel %vm1984_vm12, %v2079_v7, %v2083_v11  ;;  %v1735_v8 = vld [vmem:[#allocation2] ss:$8 sps:$4 sm:$0xff]  }
  0x66   : > { %v836_v21 = vor.u32 %v835_v12, %v832_v30  ;;  %615 = vrot.lane.b32.xlu0 %v1600_v14, %s1757_s7  ;;  %v786_v9 = vld [vmem:[#allocation2 + $0x44] sm:$0x1]  ;;  %v1629_v44 = vrot.slane %v940_v13, 9  ;;  %v986_v48 = vrot.slane %v941_v18, 5  ;;  %v970_v39 = vrot.slane %v933_v19, 5 }
  0x67   : > { %v823_v15 = vrot.slane %v822_v58, 4  ;;  %v943_v26 = vld [vmem:[#allocation2 + $0x44] sm:$0x1]  ;;  %v895_v36 = vshll.u32 %v786_v9, 16  ;;  %v1626_v3 = vrot.slane %v934_v22, 9  ;;  %v974_v50 = vrot.slane %v935_v28, 5 }
  0x68   : > { %v1727_v29 = vld [vmem:[#allocation2 + $0x38] ss:$8 sps:$4 sm:$0xff]   ;;  %v837_v47 = vrot.slane %v836_v21, 4  ;;  %v990_v41 = vrot.slane %v943_v26, 5  ;;  %v971_v38 = vsel %vm1916_vm9, %v1625_v23, %v970_v39  ;;  %v210_v59 = vsel %vm1789_vm2, 0, %v209_v33 }
  0x69   : > { %v785_v31 = vld [vmem:[#allocation2 + $0x40] sm:$0xf]  ;;  %760 = vrot.lane.b32.xlu1 %v1727_v29, %s1753_s24  ;;  %v828_v46 = vsel %vm1984_vm12, %v823_v15, %v827_v20  ;;  %v897_v17 = vrot.slane %v895_v36, 5  ;;  %v1080_v60 = vld [vmem:[#allocation2 + $0x44] sm:$0x1]  ;;  %v975_v62 = vsel %vm1916_vm9, %v1626_v3, %v974_v50  ;;  %v242_v63 = vsel %vm1801_vm4, 0, %v241_v45 }
  0x6a   : > { %v886_v34 = vshrl.u32 %v785_v31, 16  ;;  %v889_v35 = vshll.u32 %v785_v31, 16  ;;  %v942_v40 = vld [vmem:[#allocation2 + $0x40] sm:$0xe]  ;;  %756 = vrot.lane.b32.xlu0 %v1728_v16, %s1753_s24  ;;  %v842_v53 = vsel %vm1984_vm12, %v837_v47, %v841_v24  ;;  %211 = vst [vmem:[#allocation2 + $0x48] sm:$0x1] %v210_v59  ;;  %v987_v5 = vsel %vm1916_vm9, %v1629_v44, %v986_v48 }
  0x6b   : > { %v1630_v42 = vrot.slane %v942_v40, 9  ;;  %v1079_v52 = vld [vmem:[#allocation2 + $0x40] sm:$0xf]  ;;  %v1620_v57 = vcombine.low %v828_v46, %v842_v53  ;;  %v1632_v7 = vcombine.low %v971_v38, %v975_v62  ;;  %243 = vst [vmem:[#allocation2 + $0x4c] sm:$0x1] %v242_v63  ;;  %v1112_v0 = vshrl.u32 %v1071_v37, 16 }
  0x6c   : > { %v888_v49 = vrot.slane %v886_v34, 4  ;;  %v891_v51 = vrot.slane %v889_v35, 5  ;;  %v1168_v1 = vshrl.u32 %v1079_v52, 16  ;;  %v1171_v2 = vshll.u32 %v1079_v52, 16  ;;  %v1074_v30 = vld [vmem:[#allocation2 + $0x2c] sm:$0x1] }
  0x6d   : > { %v991_v10 = vsel %vm1916_vm9, %v1630_v42, %v990_v41  ;;  %v1115_v6 = vshll.u32 %v1071_v37, 16  ;;  %v1177_v13 = vshll.u32 %v1080_v60, 16  ;;  %v1114_v14 = vrot.slane %v1112_v0, 4  ;;  %v1737_v19 = vld [vmem:[#allocation2 + $0x20] ss:$8 sps:$4 sm:$0xff]  }
  0x6e   : > { %v892_v56 = vor.u32 %v891_v51, %v888_v49  ;;  %913 = vrot.lane.b32.xlu0 %v1620_v57, %s1758_s10  ;;  %v1170_v43 = vrot.slane %v1168_v1, 4  ;;  %v1173_v11 = vrot.slane %v1171_v2, 5  ;;  %v1126_v16 = vshrl.u32 %v1073_v55, 16  ;;  %v1730_v20 = vld [vmem:[#allocation2 + $0x20] ss:$8 sps:$4 sm:$0xff]  }
  0x6f   : > { %v1117_v25 = vrot.slane %v1115_v6, 5  ;;  %v1121_v18 = vshll.u32 %v1072_v61, 16  ;;  %v1129_v22 = vshll.u32 %v1073_v55, 16  ;;  %vm465_vm13 = vcmask 130048   ;;  %v1741_v42 = vld [vmem:[#allocation2 + $0x30] ss:$8 sps:$4 sm:$0xff]  }
  0x70   : > { %v893_v4 = vrot.slane %v892_v56, 4  ;;  %v1174_v21 = vor.u32 %v1173_v11, %v1170_v43  ;;  %v1634_v23 = vcombine.low %v987_v5, %v991_v10  ;;  %466 = vst.msk [vmem:[#allocation3] sm:$0xff] %vm465_vm13, %v1735_v8  ;;  %468 = vst.msk [vmem:[#allocation3 + $0x20] sm:$0xff] %vm465_vm13, %v1737_v19  ;;  %v1128_v24 = vrot.slane %v1126_v16, 4  ;;  %v1742_v53 = vld [vmem:[#allocation2 + $0x10] ss:$8 sps:$4 sm:$0xff]  }
  0x71   : > { %v1118_v9 = vor.u32 %v1117_v25, %v1114_v14  ;;  %v1081_v15 = vld [vmem:[#allocation2 + $0x48] sm:$0xf]  ;;  %v1135_v26 = vshll.u32 %v1074_v30, 16  ;;  %v1179_v29 = vrot.slane %v1177_v13, 5  ;;  %v1123_v33 = vrot.slane %v1121_v18, 5  ;;  %469 = vst.msk [vmem:[#allocation3 + $0x30] sm:$0xff] %vm465_vm13, %v1741_v42 }
  0x72   : > { %v898_v12 = vsel %vm1984_vm12, %v893_v4, %v897_v17  ;;  %1006 = vrot.lane.b32.xlu0 %v1632_v7, %s1755_s26  ;;  %v1082_v28 = vld [vmem:[#allocation2 + $0x4c] sm:$0x1]  ;;  %v1182_v31 = vshrl.u32 %v1081_v15, 16  ;;  %v1175_v34 = vrot.slane %v1174_v21, 4  ;;  %v1131_v40 = vrot.slane %v1129_v22, 5  ;;  %467 = vst.msk [vmem:[#allocation3 + $0x10] sm:$0xff] %vm465_vm13, %v1742_v53 }
  0x73   : > { %v1622_v58 = vcombine.low %v884_v32, %v898_v12  ;;  %v1185_v32 = vshll.u32 %v1081_v15, 16  ;;  %v1191_v35 = vshll.u32 %v1082_v28, 16  ;;  %v1119_v36 = vrot.slane %v1118_v9, 4  ;;  %v1729_v44 = vld [vmem:[#allocation2 + $0x40] ss:$8 sps:$4 sm:$0xff]  }
  0x74   : > { %v1184_v45 = vrot.slane %v1182_v31, 4  ;;  %v1132_v47 = vor.u32 %v1131_v40, %v1128_v24  ;;  %v1137_v48 = vrot.slane %v1135_v26, 5  ;;  %v1180_v3 = vsel %vm1984_vm12, %v1175_v34, %v1179_v29  ;;  %v1224_v38 = vld [vmem:[#allocation2 + $0x10] sm:$0xe]  ;;  %v1225_v56 = vld [vmem:[#allocation2 + $0x14] sm:$0x1] }
  0x75   : > { %917 = vrot.lane.b32.xlu1 %v1622_v58, %s1758_s10  ;;  %v1187_v46 = vrot.slane %v1185_v32, 5  ;;  %v1193_v37 = vrot.slane %v1191_v35, 5  ;;  %v1124_v49 = vsel %vm1984_vm12, %v1119_v36, %v1123_v33  ;;  %v1226_v17 = vld [vmem:[#allocation2 + $0x18] sm:$0xe]  ;;  %v1227_v57 = vld [vmem:[#allocation2 + $0x1c] sm:$0x1] }
  0x76   : > { %1052 = vrot.lane.b32.xlu0 %v1730_v20, %s1754_s25  ;;  %v1133_v51 = vrot.slane %v1132_v47, 4  ;;  %v1643_v60 = vrot.slane %v1224_v38, 9  ;;  %v1258_v61 = vrot.slane %v1225_v56, 5  ;;  %v1644_v62 = vrot.slane %v1226_v17, 9  ;;  %v1232_v63 = vld [vmem:[#allocation2 + $0x30] sm:$0xe] }
  0x77   : > { %v1188_v39 = vor.u32 %v1187_v46, %v1184_v45  ;;  %v1262_v1 = vrot.slane %v1227_v57, 5  ;;  %v1233_v2 = vld [vmem:[#allocation2 + $0x34] sm:$0x1]  ;;  %v1234_v4 = vld [vmem:[#allocation2 + $0x38] sm:$0xe]  ;;  %v1647_v5 = vrot.slane %v1232_v63, 9 }
  0x78   : > { %v1138_v41 = vsel %vm1984_vm12, %v1133_v51, %v1137_v48  ;;  %v1259_v27 = vsel %vm1916_vm9, %v1643_v60, %v1258_v61  ;;  %v1235_v7 = vld [vmem:[#allocation2 + $0x3c] sm:$0x1]  ;;  %v1274_v0 = vrot.slane %v1233_v2, 5  ;;  %v1648_v8 = vrot.slane %v1234_v4, 9  ;;  %v1228_v10 = vld [vmem:[#allocation2 + $0x20] sm:$0xe] }
  0x79   : > { %1010 = vrot.lane.b32.xlu1 %v1634_v23, %s1755_s26  ;;  %v1189_v52 = vrot.slane %v1188_v39, 4  ;;  %v1640_v55 = vcombine.low %v1124_v49, %v1138_v41  ;;  %v1263_v43 = vsel %vm1916_vm9, %v1644_v62, %v1262_v1  ;;  %v1278_v11 = vrot.slane %v1235_v7, 5  ;;  %v1229_v30 = vld [vmem:[#allocation2 + $0x24] sm:$0x1]  ;;  %v1230_v6 = vld [vmem:[#allocation2 + $0x28] sm:$0xe] }
  0x7a   : > { %v1645_v12 = vrot.slane %v1228_v10, 9  ;;  %v1651_v13 = vcombine.low %v1259_v27, %v1263_v43  ;;  %v1275_v14 = vsel %vm1916_vm9, %v1647_v5, %v1274_v0  ;;  %v1231_v16 = vld [vmem:[#allocation2 + $0x2c] sm:$0x1]  ;;  %v1266_v58 = vrot.slane %v1229_v30, 5  ;;  %v1236_v18 = vld [vmem:[#allocation2 + $0x40] sm:$0xe] }
  0x7b   : > { %v1194_v50 = vsel %vm1984_vm12, %v1189_v52, %v1193_v37  ;;  %1209 = vrot.lane.b32.xlu0 %v1640_v55, %s1759_s15  ;;  %v1646_v25 = vrot.slane %v1230_v6, 9  ;;  %v1279_v19 = vsel %vm1916_vm9, %v1648_v8, %v1278_v11  ;;  %v1270_v20 = vrot.slane %v1231_v16, 5  ;;  %v1237_v21 = vld [vmem:[#allocation2 + $0x44] sm:$0x1]  ;;  %v1238_v22 = vld [vmem:[#allocation2 + $0x48] sm:$0xe] }
  0x7c   : > { %v1642_v59 = vcombine.low %v1180_v3, %v1194_v50  ;;  %v1649_v23 = vrot.slane %v1236_v18, 9  ;;  %1304 = vst.msk [vmem:[#allocation3 + $0x8] sm:$0xff] %vm465_vm13, %v1651_v13  ;;  %v1653_v9 = vcombine.low %v1275_v14, %v1279_v19  ;;  %v1267_v15 = vsel %vm1916_vm9, %v1645_v12, %v1266_v58  ;;  %v1239_v24 = vld [vmem:[#allocation2 + $0x4c] sm:$0x1]  ;;  %v2144_v29 = vld [vmem:[%s2248_s2] ss:$0 sm:$0xff] }
  0x7d   : > { %1056 = vrot.lane.b32.xlu1 %v1729_v44, %s1754_s25  ;;  %v1282_v26 = vrot.slane %v1237_v21, 5  ;;  %v1650_v28 = vrot.slane %v1238_v22, 9  ;;  %v1271_v31 = vsel %vm1916_vm9, %v1646_v25, %v1270_v20  ;;  %v1286_v32 = vrot.slane %v1239_v24, 5 }
  0x7e   : > { %1306 = vst.msk [vmem:[#allocation3 + $0x28] sm:$0xff] %vm465_vm13, %v1653_v9  ;;  %v1652_v33 = vcombine.low %v1267_v15, %v1271_v31  ;;  %vm625_vm14 = vcmask 261248   ;;  %vm721_vm15 = vcmask 392448   ;;  %vm766_vm0 = vcmask 523648  }
  0x7f   : > { %1471 = vrot.lane.b32.xlu0 %v2144_v29, %s1756_s27  ;;  %v1283_v34 = vsel %vm1916_vm9, %v1649_v23, %v1282_v26  ;;  %v1287_v35 = vsel %vm1916_vm9, %v1650_v28, %v1286_v32  ;;  %vm923_vm1 = vcmask 654848   ;;  %vm1016_vm2 = vcmask 786048  }
  0x80   : > { %1305 = vst.msk [vmem:[#allocation3 + $0x18] sm:$0xff] %vm465_vm13, %v1652_v33  ;;  %v1654_v36 = vcombine.low %v1283_v34, %v1287_v35  ;;  %vm1062_vm3 = vcmask 917248   ;;  %vm1219_vm4 = vcmask 1048448   ;;  %vm1462_vm5 = vcmask 261120  }
  0x81   : > { %1213 = vrot.lane.b32.xlu1 %v1642_v59, %s1759_s15 }
  0x82   : > { %1307 = vst.msk [vmem:[#allocation3 + $0x38] sm:$0xff] %vm465_vm13, %v1654_v36 }
  0x83   : > { %v1309_v40 = vld [vmem:[#allocation3 + $0x8] sm:$0xff] }
  0x84   : > { %1664 = vmatprep.mubr.msk.bf16.mxu0 %vm465_vm13, %v1309_v40 }
  0x85   : > { %v1313_v44 = vld [vmem:[#allocation3 + $0x28] sm:$0xff] }
  0x86   : > { %1666 = vmatprep.mubr.msk.bf16.mxu1 %vm465_vm13, %v1313_v44 }
  0x87   : > { %v1311_v57 = vld [vmem:[#allocation3 + $0x18] sm:$0xff] }
  0x89   : > { %v1315_v55 = vld [vmem:[#allocation3 + $0x38] sm:$0xff] }
  0x97   : > { %v759_v46 = vpop.permute.xlu1 %758 }
  0x9a   : > { %v755_v45 = vpop.permute.xlu0 %754 }
  0x9b   : > { %v1055_v48 = vpop.permute.xlu1 %1054 }
  0x9e   : > { %v1051_v47 = vpop.permute.xlu0 %1050 }
  0xa1   : > { %v710_v37 = vpop.permute.xlu1 %709 }
  0xa2   : > { %v1005_v39 = vpop.permute.xlu0 %1004 }
  0xac   : > { %v712_v49 = vpop.permute.xlu0 %711 }
  0xb0   : > { %v714_v54 = vpop.permute.xlu1 %713 }
  0xb1   : > { %v614_v51 = vpop.permute.xlu0 %613 }
  0xb2   : > { %626 = vst.msk [vmem:[#allocation3] sm:$0xff] %vm625_vm14, %v614_v51 }
  0xb3   : > { %722 = vst.msk [vmem:[#allocation3] sm:$0xff] %vm721_vm15, %v710_v37 }
  0xb4   : > { %v1009_v42 = vpop.permute.xlu1 %1008  ;;  %767 = vst.msk [vmem:[#allocation3] sm:$0xff] %vm766_vm0, %v755_v45 }
  0xb8   : > { %v716_v3 = vpop.permute.xlu1 %715 }
  0xbb   : > { %v618_v52 = vpop.permute.xlu0 %617 }
  0xbc   : > { %628 = vst.msk [vmem:[#allocation3 + $0x20] sm:$0xff] %vm625_vm14, %v618_v52 }
  0xbd   : > { %724 = vst.msk [vmem:[#allocation3 + $0x20] sm:$0xff] %vm721_vm15, %v714_v54 }
  0xbe   : > { %769 = vst.msk [vmem:[#allocation3 + $0x20] sm:$0xff] %vm766_vm0, %v759_v46 }
  0xc0   : > { %v916_v53 = vpop.permute.xlu1 %915 }
  0xc1   : > { %926 = vst.msk [vmem:[#allocation3 + $0x20] sm:$0xff] %vm923_vm1, %v916_v53 }
  0xc2   : > { %1019 = vst.msk [vmem:[#allocation3 + $0x20] sm:$0xff] %vm1016_vm2, %v1009_v42 }
  0xc3   : > { %1065 = vst.msk [vmem:[#allocation3 + $0x20] sm:$0xff] %vm1062_vm3, %v1055_v48 }
  0xc4   : > { %v912_v41 = vpop.permute.xlu0 %911 }
  0xc5   : > { %924 = vst.msk [vmem:[#allocation3] sm:$0xff] %vm923_vm1, %v912_v41 }
  0xc6   : > { %1017 = vst.msk [vmem:[#allocation3] sm:$0xff] %vm1016_vm2, %v1005_v39 }
  0xc7   : > { %1063 = vst.msk [vmem:[#allocation3] sm:$0xff] %vm1062_vm3, %v1051_v47 }
  0xca   : > { %v1212_v38 = vpop.permute.xlu1 %1211 }
  0xcb   : > { %1222 = vst.msk [vmem:[#allocation3 + $0x20] sm:$0xff] %vm1219_vm4, %v1212_v38 }
  0xce   : > { %v1208_v50 = vpop.permute.xlu0 %1207 }
  0xcf   : > { %1220 = vst.msk [vmem:[#allocation3] sm:$0xff] %vm1219_vm4, %v1208_v50 }
  0xd2   : > { %v1312_v56 = vld [vmem:[#allocation3 + $0x20] sm:$0xff] }
  0xd3   : > { %1431 = vmatmul.mubr.bf16.vlgmr.msra.gmra.mrb[0].mxu1 %v1312_v56  ;;  %v620_v17 = vpop.permute.xlu1 %619 }
  0xd4   : > { %1667 = vmatprep.mubr.msk.bf16.mxu1 %vm465_vm13, %v1315_v55  ;;  %629 = vst.msk [vmem:[#allocation3 + $0x30] sm:$0xff] %vm625_vm14, %v620_v17 }
  0xd5   : > { %725 = vst.msk [vmem:[#allocation3 + $0x30] sm:$0xff] %vm721_vm15, %v716_v3 }
  0xd6   : > { %v1308_v59 = vld [vmem:[#allocation3] sm:$0xff] }
  0xd7   : > { %1415 = vmatmul.mubr.bf16.vlgmr.msra.gmra.mrb[0].mxu0 %v1308_v59 }
  0xd8   : > { %v616_v60 = vpop.permute.xlu0 %615  ;;  %1665 = vmatprep.mubr.msk.bf16.mxu0 %vm465_vm13, %v1311_v57 }
  0xd9   : > { %627 = vst.msk [vmem:[#allocation3 + $0x10] sm:$0xff] %vm625_vm14, %v616_v60 }
  0xda   : > { %723 = vst.msk [vmem:[#allocation3 + $0x10] sm:$0xff] %vm721_vm15, %v712_v49 }
  0xdb   : > { %v761_v61 = vpop.permute.xlu1 %760 }
  0xdc   : > { %770 = vst.msk [vmem:[#allocation3 + $0x30] sm:$0xff] %vm766_vm0, %v761_v61  ;;  %v757_v62 = vpop.permute.xlu0 %756 }
  0xdd   : > { %768 = vst.msk [vmem:[#allocation3 + $0x10] sm:$0xff] %vm766_vm0, %v757_v62 }
  0xe0   : > { %v914_v63 = vpop.permute.xlu0 %913 }
  0xe1   : > { %925 = vst.msk [vmem:[#allocation3 + $0x10] sm:$0xff] %vm923_vm1, %v914_v63 }
  0xe4   : > { %v1007_v1 = vpop.permute.xlu0 %1006 }
  0xe5   : > { %1018 = vst.msk [vmem:[#allocation3 + $0x10] sm:$0xff] %vm1016_vm2, %v1007_v1 }
  0xe7   : > { %v918_v2 = vpop.permute.xlu1 %917 }
  0xe8   : > { %927 = vst.msk [vmem:[#allocation3 + $0x30] sm:$0xff] %vm923_vm1, %v918_v2  ;;  %v1053_v4 = vpop.permute.xlu0 %1052 }
  0xe9   : > { %1064 = vst.msk [vmem:[#allocation3 + $0x10] sm:$0xff] %vm1062_vm3, %v1053_v4 }
  0xeb   : > { %v1011_v5 = vpop.permute.xlu1 %1010 }
  0xec   : > { %1020 = vst.msk [vmem:[#allocation3 + $0x30] sm:$0xff] %vm1016_vm2, %v1011_v5 }
  0xed   : > { %v1210_v7 = vpop.permute.xlu0 %1209 }
  0xee   : > { %1221 = vst.msk [vmem:[#allocation3 + $0x10] sm:$0xff] %vm1219_vm4, %v1210_v7 }
  0xef   : > { %v1057_v27 = vpop.permute.xlu1 %1056 }
  0xf0   : > { %1066 = vst.msk [vmem:[#allocation3 + $0x30] sm:$0xff] %vm1062_vm3, %v1057_v27 }
  0xf1   : > { %v1472_v12 = vpop.permute.xlu0 %1471 }
  0xf3   : > { %v1214_v0 = vpop.permute.xlu1 %1213 }
  0xf4   : > { %1223 = vst.msk [vmem:[#allocation3 + $0x30] sm:$0xff] %vm1219_vm4, %v1214_v0 }
  0xf5   : > { %v1310_v8 = vld [vmem:[#allocation3 + $0x10] sm:$0xff] }
  0xf6   : > { %1423 = vmatmul.mubr.bf16.gmra.mrb[4].mxu0 %v1310_v8 }
  0xfb   : > { %v1314_v10 = vld [vmem:[#allocation3 + $0x30] sm:$0xff] }
  0xfc   : > { %1439 = vmatmul.mubr.bf16.gmra.mrb[4].mxu1 %v1314_v10 }
 0x1a6   : > { %v1432_v43 = vpop.f32.mrb[0].mxu1 }
 0x1a7   : > { %v1458_v11 = vadd.f32 %v2144_v29, %v1432_v43  ;;  %v1434_v30 = vpop.f32.mrb[1].mxu1  ;;  %v1478_v20 = vadd.f32 %v1472_v12, %v1432_v43 }
 0x1a8   : > { %v1435_v6 = vpop.f32.mrb[2].mxu1 }
 0x1a9   : > { %1467 = vst.msk [vmem:[%s2194_s23 + $0x20] sm:$0xff] %vm1462_vm5, %v1458_v11  ;;  %v1459_v13 = vadd.f32 %v2144_v29, %v1435_v6  ;;  %v1437_v14 = vpop.f32.mrb[3].mxu1  ;;  %v1479_v9 = vadd.f32 %v1472_v12, %v1435_v6 }
 0x1aa   : > { %v1416_v16 = vpop.f32.mrb[0].mxu0 }
 0x1ab   : > { %1468 = vst.msk [vmem:[%s2194_s23 + $0x28] sm:$0xff] %vm1462_vm5, %v1459_v13  ;;  %v1454_v58 = vadd.f32 %v2144_v29, %v1416_v16  ;;  %v1474_v25 = vadd.f32 %v1472_v12, %v1416_v16  ;;  %v1418_v18 = vpop.f32.mrb[1].mxu0 }
 0x1ac   : > { %v1419_v19 = vpop.f32.mrb[2].mxu0 }
 0x1ad   : > { %1463 = vst.msk [vmem:[%s2194_s23] sm:$0xff] %vm1462_vm5, %v1454_v58  ;;  %v1455_v21 = vadd.f32 %v2144_v29, %v1419_v19  ;;  %v1475_v22 = vadd.f32 %v1472_v12, %v1419_v19  ;;  %1490 = vrot.lane.b32.xlu1 %v1474_v25, %s1754_s25  ;;  %v1421_v23 = vpop.f32.mrb[3].mxu0 }
 0x1af   : > { %1464 = vst.msk [vmem:[%s2194_s23 + $0x8] sm:$0xff] %vm1462_vm5, %v1455_v21  ;;  %1492 = vrot.lane.b32.xlu0 %v1475_v22, %s1754_s25 }
 0x1b1   : > { %1498 = vrot.lane.b32.xlu1 %v1478_v20, %s1754_s25 }
 0x1b3   : > { %1500 = vrot.lane.b32.xlu0 %v1479_v9, %s1754_s25 }
 0x1c9   : > { %v1424_v15 = vpop.f32.mrb[4].mxu0 }
 0x1ca   : > { %v1456_v24 = vadd.f32 %v2144_v29, %v1424_v15  ;;  %v1476_v26 = vadd.f32 %v1472_v12, %v1424_v15  ;;  %v1426_v31 = vpop.f32.mrb[5].mxu0 }
 0x1cb   : > { %v1427_v34 = vpop.f32.mrb[6].mxu0 }
 0x1cc   : > { %1465 = vst.msk [vmem:[%s2194_s23 + $0x10] sm:$0xff] %vm1462_vm5, %v1456_v24  ;;  %v1457_v35 = vadd.f32 %v2144_v29, %v1427_v34  ;;  %v1477_v36 = vadd.f32 %v1472_v12, %v1427_v34  ;;  %1494 = vrot.lane.b32.xlu1 %v1476_v26, %s1754_s25  ;;  %v1429_v44 = vpop.f32.mrb[7].mxu0 }
 0x1ce   : > { %1466 = vst.msk [vmem:[%s2194_s23 + $0x18] sm:$0xff] %vm1462_vm5, %v1457_v35  ;;  %1496 = vrot.lane.b32.xlu0 %v1477_v36, %s1754_s25 }
 0x1cf   : > { %v1440_v28 = vpop.f32.mrb[4].mxu1 }
 0x1d0   : > { %v1460_v32 = vadd.f32 %v2144_v29, %v1440_v28  ;;  %v1442_v33 = vpop.f32.mrb[5].mxu1  ;;  %v1480_v47 = vadd.f32 %v1472_v12, %v1440_v28 }
 0x1d1   : > { %v1443_v40 = vpop.f32.mrb[6].mxu1 }
 0x1d2   : > { %1469 = vst.msk [vmem:[%s2194_s23 + $0x30] sm:$0xff] %vm1462_vm5, %v1460_v32  ;;  %v1461_v45 = vadd.f32 %v2144_v29, %v1443_v40  ;;  %v1445_v46 = vpop.f32.mrb[7].mxu1  ;;  %v1481_v48 = vadd.f32 %v1472_v12, %v1443_v40  ;;  %1502 = vrot.lane.b32.xlu1 %v1480_v47, %s1754_s25 }
 0x1d4   : > { %1470 = vst.msk [vmem:[%s2194_s23 + $0x38] sm:$0xff] %vm1462_vm5, %v1461_v45  ;;  %1504 = vrot.lane.b32.xlu0 %v1481_v48, %s1754_s25 }
 0x21f   : > { %v1491_v39 = vpop.permute.xlu1 %1490 }
 0x220   : > { %1669 = vst.msk [vmem:[%s2194_s23 + $0x40] sm:$0xff] %vm1462_vm5, %v1491_v39 }
 0x221   : > { %v1493_v29 = vpop.permute.xlu0 %1492 }
 0x222   : > { %1670 = vst.msk [vmem:[%s2194_s23 + $0x48] sm:$0xff] %vm1462_vm5, %v1493_v29 }
 0x223   : > { %v1499_v37 = vpop.permute.xlu1 %1498 }
 0x224   : > { %1673 = vst.msk [vmem:[%s2194_s23 + $0x60] sm:$0xff] %vm1462_vm5, %v1499_v37 }
 0x225   : > { %v1501_v49 = vpop.permute.xlu0 %1500 }
 0x226   : > { %1674 = vst.msk [vmem:[%s2194_s23 + $0x68] sm:$0xff] %vm1462_vm5, %v1501_v49 }
 0x23e   : > { %v1495_v54 = vpop.permute.xlu1 %1494 }
 0x23f   : > { %1671 = vst.msk [vmem:[%s2194_s23 + $0x50] sm:$0xff] %vm1462_vm5, %v1495_v54 }
 0x240   : > { %v1497_v51 = vpop.permute.xlu0 %1496 }
 0x241   : > { %1672 = vst.msk [vmem:[%s2194_s23 + $0x58] sm:$0xff] %vm1462_vm5, %v1497_v51 }
 0x244   : > { %v1503_v42 = vpop.permute.xlu1 %1502 }
 0x245   : > { %1675 = vst.msk [vmem:[%s2194_s23 + $0x70] sm:$0xff] %vm1462_vm5, %v1503_v42 }
 0x246   : > { %v1505_v3 = vpop.permute.xlu0 %1504 }
 0x247   : > { %1676 = vst.msk [vmem:[%s2194_s23 + $0x78] sm:$0xff] %vm1462_vm5, %v1505_v3 }
 0x248 PF: > { %s13_s12 = sadd.s32 1, %s1750_s12  }
 0x249   : > { %p10_p4 = scmp.ge.s32.totalorder %s13_s12, 4  }
 0x24b   :  { %12 = sbr.rel (!%p10_p4) target bundleno = 1 (0x1), region = 66 }

// kernel: pare_up_block2d_forward.2
= control target key start
LH: loop header
LB: loop body
LE: loop exit
PB: predicated region body
PF: predicated region fallthrough
CT: control target
= control target key end

     0   :  { %s4732_s18 = smov 0   ;;  %s5874_s0 = inlined_call_operand.vmem [shape: f32[2,8,8,16], index: 0, kind: input, shape index: {}]   ;;  %s5875_s1 = inlined_call_operand.vmem [shape: f32[2,8,8,16], index: 1, kind: input, shape index: {}]   ;;  %s5876_s2 = inlined_call_operand.vmem [shape: f32[32,32], index: 2, kind: input, shape index: {}]   ;;  %s5877_s3 = inlined_call_operand.vmem [shape: f32[1,32], index: 3, kind: input, shape index: {}]   ;;  %s5878_s4 = inlined_call_operand.vmem [shape: f32[1,32], index: 4, kind: input, shape index: {}]   ;;  %s5879_s5 = inlined_call_operand.vmem [shape: bf16[288,16], index: 5, kind: input, shape index: {}]   ;;  %s5880_s6 = inlined_call_operand.vmem [shape: f32[1,16], index: 6, kind: input, shape index: {}]   ;;  %s5881_s7 = inlined_call_operand.vmem [shape: f32[2,1,16], index: 7, kind: input, shape index: {}]   ;;  %s5882_s8 = inlined_call_operand.vmem [shape: f32[16,16], index: 8, kind: input, shape index: {}]   ;;  %s5883_s9 = inlined_call_operand.vmem [shape: f32[1,16], index: 9, kind: input, shape index: {}]   ;;  %s5884_s10 = inlined_call_operand.vmem [shape: f32[1,16], index: 10, kind: input, shape index: {}]   ;;  %s5885_s11 = inlined_call_operand.vmem [shape: bf16[144,16], index: 11, kind: input, shape index: {}]   ;;  %s5886_s12 = inlined_call_operand.vmem [shape: f32[1,16], index: 12, kind: input, shape index: {}]   ;;  %s5887_s13 = inlined_call_operand.vmem [shape: bf16[32,16], index: 13, kind: input, shape index: {}]   ;;  %s5888_s14 = inlined_call_operand.vmem [shape: f32[1,16], index: 14, kind: input, shape index: {}]   ;;  %s5889_s15 = inlined_call_operand.vmem [shape: f32[2,8,8,16], index: 15, kind: output, shape index: {}]  }
   0x1 LB: > { %s4102_s19 = sadd.s32 4294967295, %s4639_s18   ;;  %p4106_p0 = scmp.ge.s32.totalorder %s4639_s18, 1  ;;  %s4639_s18 = sphi %s4732_s18, %s25_s18  }
   0x2   : > { %p455_p1 = scmp.lt.s32.totalorder %s4639_s18, 3 }
   0x4   : > { %p456_p2 = pnand %p4106_p0, %p455_p1 }
   0x5   : > { %p511_p3 = scmp.lt.s32.totalorder (!%p456_p2), %s4102_s19, 1  ;;  %s4641_s27 = smov (!%p456_p2), 16   ;;  %vm680_vm0 = vcmask (!%p456_p2), 130048   ;;  %v4642_v4 = vmov (!%p456_p2), 0.0|0.0   ;;  %vm4643_vm1 = vmmov (!%p456_p2), 0   ;;  %v4644_v5 = vmov (!%p456_p2), 0.0  }
   0x6   : > { %459 = sbr.rel (%p456_p2) target bundleno = 2079 (0x81f), region = 80  ;;  %4467 = vmatprep.subr.bf16.mxu0 (!%p456_p2), %v4642_v4  ;;  %4415 = vmatprep.mubr.msk.f32.mxu0 (!%p456_p2), %vm4643_vm1, %v4644_v5  ;;  %v746_v16 = vld [vmem:[%s5876_s2] sm:$0xff] (!%p456_p2)  ;;  %v747_v17 = vld [vmem:[%s5876_s2 + $0x8] sm:$0xff] (!%p456_p2)  ;;  %v748_v18 = vld [vmem:[%s5876_s2 + $0x10] sm:$0xff] (!%p456_p2)  ;;  %vm729_vm2 = vcmask (!%p456_p2), 261248   ;;  %vm752_vm3 = vcmask (!%p456_p2), 261120  }
   0x7   : > { %v4468_v19 = vpack.c.bf16 (!%p456_p2), %v747_v17, %v746_v16  ;;  %v749_v20 = vld [vmem:[%s5876_s2 + $0x18] sm:$0xff] (!%p456_p2)  ;;  %vm532_vm4 = vcmask (!%p456_p2), 253952   ;;  %vm570_vm5 = vsmask.f32 (!%p456_p2), 7938  ;;  %v590_v61 = vld [vmem:[#allocation3 + $0x34] sm:$0x1] (!%p456_p2) }
   0x8   : > { %v4471_v23 = vpack.c.bf16 (!%p456_p2), %v749_v20, %v748_v18  ;;  %v593_v62 = vld [vmem:[#allocation3 + $0x3c] sm:$0x1] (!%p456_p2)  ;;  %vm4818_vm6 = vmand (!%p456_p2), %vm532_vm4, %vm570_vm5  ;;  %vm538_vm7 = vsmask.f32 (!%p456_p2), 256  ;;  %vm530_vm9 = vcmask (!%p456_p2), 257024   ;;  %v4515_v63 = vld [vmem:[%s5879_s5] sm:$0xff] (!%p456_p2)  }
   0x9   : > { %4469 = vmatpush3.bf16.msra.mxu0 (!%p456_p2), %v4468_v19  ;;  %vm4874_vm8 = vmand (!%p456_p2), %vm532_vm4, %vm538_vm7  ;;  %vm1485_vm11 = vcmask (!%p456_p2), 1042432   ;;  %vm1486_vm12 = vcmask (!%p456_p2), 1046532   ;;  %s4646_s22 = smov (!%p456_p2), 64   ;;  %s4647_s24 = smov (!%p456_p2), 96   ;;  %vm1309_vm14 = vsmask.f32 (!%p456_p2), 3328 }
   0xa   : > { %4470 = vmatprep.subr.bf16.mxu0 (!%p456_p2), %v4642_v4  ;;  %vm5014_vm10 = vmand (!%p456_p2), %vm530_vm9, %vm570_vm5  ;;  %vm1310_vm15 = vsmask.f32 (!%p456_p2), 7440  ;;  %s4648_s21 = smov (!%p456_p2), 32   ;;  %s4649_s25 = smov (!%p456_p2), 48  }
   0xb   : > { %vm5099_vm13 = vmor (!%p456_p2), %vm1485_vm11, %vm1486_vm12  ;;  %s4650_s29 = smov (!%p456_p2), 80   ;;  %s4651_s16 = smov (!%p456_p2), 112   ;;  %vm3218_vm12 = vcmask (!%p456_p2), 523648  }
   0xd   : > { %s5907_s19 = smov (!%p511_p3, %s4102_s19), 1  ;;  %4472 = vmatpush3.bf16.msra.mxu0 %v4471_v23 }
   0xe   : > { %s4743_s20 = sshll.u32 %s5907_s19, 6  ;;  %4473 = vmatprep.subr.bf16.mxu0 %v4642_v4 }
   0xf   : > { %s4749_s23 = scalar_lea.vmem %s5875_s1, %s4743_s20  ;;  %s515_s26 = scalar_lea.vmem %s5874_s0, %s4743_s20 }
  0x10   : > { %v691_v0 = vld [vmem:[%s4749_s23 + $0x10] sm:$0xff]  ;;  %v689_v1 = vld [vmem:[%s4749_s23] sm:$0xff]  ;;  %v692_v2 = vld [vmem:[%s4749_s23 + $0x18] sm:$0xff] }
  0x11   : > { %709 = vrot.lane.b32.xlu1 %v691_v0, %s4641_s27  ;;  %705 = vrot.lane.b32.xlu0 %v689_v1, %s4641_s27  ;;  %v690_v3 = vld [vmem:[%s4749_s23 + $0x8] sm:$0xff]  ;;  %v674_v6 = vld [vmem:[%s515_s26 + $0x10] sm:$0xff]  ;;  %v596_v0 = vld [vmem:[#allocation3 + $0x44] sm:$0x1]  ;;  %v591_v1 = vsel %vm4818_vm6, 0, %v590_v61 }
  0x12   : > { %v672_v7 = vld [vmem:[%s515_s26] sm:$0xff]  ;;  %v675_v8 = vld [vmem:[%s515_s26 + $0x18] sm:$0xff]  ;;  %v694_v9 = vld [vmem:[%s4749_s23 + $0x28] sm:$0xff]  ;;  %683 = vst.msk [vmem:[#allocation2 + $0x10] sm:$0xff] %vm680_vm0, %v674_v6  ;;  %v847_v6 = vlaneseq }
  0x13   : > { %v693_v10 = vld [vmem:[%s4749_s23 + $0x20] sm:$0xff]  ;;  %681 = vst.msk [vmem:[#allocation2] sm:$0xff] %vm680_vm0, %v672_v7  ;;  %684 = vst.msk [vmem:[#allocation2 + $0x18] sm:$0xff] %vm680_vm0, %v675_v8  ;;  %v673_v11 = vld [vmem:[%s515_s26 + $0x8] sm:$0xff] }
  0x14   : > { %v677_v12 = vld [vmem:[%s515_s26 + $0x28] sm:$0xff]  ;;  %v676_v13 = vld [vmem:[%s515_s26 + $0x20] sm:$0xff]  ;;  %682 = vst.msk [vmem:[#allocation2 + $0x8] sm:$0xff] %vm680_vm0, %v673_v11  ;;  %v679_v14 = vld [vmem:[%s515_s26 + $0x38] sm:$0xff]  ;;  %v848_v7 = vshrl.u32 %v847_v6, 7 }
  0x15   : > { %711 = vrot.lane.b32.xlu1 %v692_v2, %s4641_s27  ;;  %707 = vrot.lane.b32.xlu0 %v690_v3, %s4641_s27  ;;  %686 = vst.msk [vmem:[#allocation2 + $0x28] sm:$0xff] %vm680_vm0, %v677_v12  ;;  %685 = vst.msk [vmem:[#allocation2 + $0x20] sm:$0xff] %vm680_vm0, %v676_v13  ;;  %v678_v15 = vld [vmem:[%s515_s26 + $0x30] sm:$0xff]  ;;  %v696_v21 = vld [vmem:[%s4749_s23 + $0x38] sm:$0xff]  ;;  %v594_v2 = vsel %vm4818_vm6, 0, %v593_v62  ;;  %v597_v3 = vsel %vm4818_vm6, 0, %v596_v0 }
  0x16   : > { %688 = vst.msk [vmem:[#allocation2 + $0x38] sm:$0xff] %vm680_vm0, %v679_v14  ;;  %687 = vst.msk [vmem:[#allocation2 + $0x30] sm:$0xff] %vm680_vm0, %v678_v15  ;;  %v695_v22 = vld [vmem:[%s4749_s23 + $0x30] sm:$0xff]  ;;  %v4828_v8 = vsub.s32 0, %v848_v7  ;;  %v543_v0 = vld [vmem:[#allocation3 + $0x8] sm:$0x1]  ;;  %s523_s23 = scalar_lea.vmem %s5881_s7, %s5907_s19  ;;  %s5846_s19 = scalar_lea.vmem %s5889_s15, %s4743_s20 }
  0x17   : > { %592 = vst [vmem:[#allocation3 + $0x34] sm:$0x1] %v591_v1  ;;  %595 = vst [vmem:[#allocation3 + $0x3c] sm:$0x1] %v594_v2  ;;  %v552_v1 = vld [vmem:[#allocation3 + $0x20] sm:$0x1] }
  0x18   : > { %598 = vst [vmem:[#allocation3 + $0x44] sm:$0x1] %v597_v3  ;;  %v544_v2 = vsel %vm4874_vm8, 0, %v543_v0  ;;  %v553_v3 = vsel %vm4874_vm8, 0, %v552_v1  ;;  %v555_v6 = vld [vmem:[#allocation3 + $0x28] sm:$0x1] }
  0x19   : > { %715 = vrot.lane.b32.xlu1 %v694_v9, %s4641_s27  ;;  %713 = vrot.lane.b32.xlu0 %v693_v10, %s4641_s27  ;;  %v584_v7 = vld [vmem:[#allocation3 + $0x24] sm:$0x1]  ;;  %545 = vst [vmem:[#allocation3 + $0x8] sm:$0x1] %v544_v2  ;;  %554 = vst [vmem:[#allocation3 + $0x20] sm:$0x1] %v553_v3 }
  0x1d   : > { %719 = vrot.lane.b32.xlu1 %v696_v21, %s4641_s27  ;;  %717 = vrot.lane.b32.xlu0 %v695_v22, %s4641_s27 }
  0x83   : > { %v710_v24 = vpop.permute.xlu1 %709  ;;  %v706_v25 = vpop.permute.xlu0 %705 }
  0x84   : > { %732 = vst.msk [vmem:[#allocation2 + $0x10] sm:$0xff] %vm729_vm2, %v710_v24  ;;  %730 = vst.msk [vmem:[#allocation2] sm:$0xff] %vm729_vm2, %v706_v25 }
  0x87   : > { %v712_v26 = vpop.permute.xlu1 %711  ;;  %v708_v27 = vpop.permute.xlu0 %707 }
  0x88   : > { %733 = vst.msk [vmem:[#allocation2 + $0x18] sm:$0xff] %vm729_vm2, %v712_v26  ;;  %731 = vst.msk [vmem:[#allocation2 + $0x8] sm:$0xff] %vm729_vm2, %v708_v27 }
  0x8b   : > { %v716_v28 = vpop.permute.xlu1 %715  ;;  %v714_v29 = vpop.permute.xlu0 %713  ;;  %v738_v30 = vld [vmem:[#allocation2] sm:$0xff]  ;;  %v740_v34 = vld [vmem:[#allocation2 + $0x10] sm:$0xff] }
  0x8c   : > { %735 = vst.msk [vmem:[#allocation2 + $0x28] sm:$0xff] %vm729_vm2, %v716_v28  ;;  %734 = vst.msk [vmem:[#allocation2 + $0x20] sm:$0xff] %vm729_vm2, %v714_v29  ;;  %v753_v35 = vsel %vm752_vm3, %v738_v30, 0.0  ;;  %v756_v39 = vsel %vm752_vm3, %v740_v34, 0.0 }
  0x8f   : > { %v720_v31 = vpop.permute.xlu1 %719  ;;  %v718_v32 = vpop.permute.xlu0 %717  ;;  %v739_v33 = vld [vmem:[#allocation2 + $0x8] sm:$0xff]  ;;  %v741_v37 = vld [vmem:[#allocation2 + $0x18] sm:$0xff] }
  0x90   : > { %737 = vst.msk [vmem:[#allocation2 + $0x38] sm:$0xff] %vm729_vm2, %v720_v31  ;;  %736 = vst.msk [vmem:[#allocation2 + $0x30] sm:$0xff] %vm729_vm2, %v718_v32  ;;  %v754_v36 = vsel %vm752_vm3, %v739_v33, 0.0  ;;  %v758_v40 = vsel %vm752_vm3, %v741_v37, 0.0 }
  0x91   : > { %v755_v38 = vadd.f32 %v754_v36, %v753_v35 }
  0x93   : > { %v742_v41 = vld [vmem:[#allocation2 + $0x20] sm:$0xff]  ;;  %v757_v42 = vadd.f32 %v756_v39, %v755_v38  ;;  %v743_v44 = vld [vmem:[#allocation2 + $0x28] sm:$0xff] }
  0x94   : > { %v760_v43 = vsel %vm752_vm3, %v742_v41, 0.0  ;;  %v762_v46 = vsel %vm752_vm3, %v743_v44, 0.0 }
  0x95   : > { %v759_v45 = vadd.f32 %v758_v40, %v757_v42 }
  0x97   : > { %v744_v47 = vld [vmem:[#allocation2 + $0x30] sm:$0xff]  ;;  %v761_v48 = vadd.f32 %v760_v43, %v759_v45  ;;  %v745_v50 = vld [vmem:[#allocation2 + $0x38] sm:$0xff] }
  0x98   : > { %v764_v49 = vsel %vm752_vm3, %v744_v47, 0.0  ;;  %v766_v52 = vsel %vm752_vm3, %v745_v50, 0.0 }
  0x99   : > { %v763_v51 = vadd.f32 %v762_v46, %v761_v48 }
  0x9b   : > { %v765_v53 = vadd.f32 %v764_v49, %v763_v51  ;;  %v549_v51 = vld [vmem:[#allocation3 + $0x18] sm:$0x1] }
  0x9d   : > { %v767_v54 = vadd.f32 %v766_v52, %v765_v53  ;;  %v558_v52 = vld [vmem:[#allocation3 + $0x30] sm:$0x1] }
  0x9f   : > { %v768_v55 = vrot.slane %v767_v54, 4 }
  0xa1   : > { %v769_v56 = vadd.f32 %v768_v55, %v767_v54  ;;  %v550_v54 = vsel %vm4874_vm8, 0, %v549_v51  ;;  %v561_v55 = vld [vmem:[#allocation3 + $0x38] sm:$0x1] }
  0xa2   : > { %551 = vst [vmem:[#allocation3 + $0x18] sm:$0x1] %v550_v54 }
  0xa3   : > { %v770_v57 = vrot.slane %v769_v56, 2 }
  0xa5   : > { %v771_v58 = vadd.f32 %v770_v57, %v769_v56  ;;  %v4645_v56 = vmov 0   ;;  %v559_v57 = vsel %vm4874_vm8, 0, %v558_v52 }
  0xa6   : > { %535 = vst.msk [vmem:[#allocation3 + $0x48] sm:$0xf] %vm530_vm9, %v4645_v56  ;;  %531 = vst.msk [vmem:[#allocation3] sm:$0xf] %vm530_vm9, %v4645_v56  ;;  %vm1589_vm9 = vcmask 1048320  }
  0xa7   : > { %v772_v59 = vrot.slane %v771_v58, 1  ;;  %533 = vst.msk [vmem:[#allocation3 + $0x4] sm:$0x1] %vm532_vm4, %v4645_v56  ;;  %536 = vst.msk [vmem:[#allocation3 + $0x4c] sm:$0x1] %vm532_vm4, %v4645_v56 }
  0xa8   : > { %560 = vst [vmem:[#allocation3 + $0x30] sm:$0x1] %v559_v57  ;;  %vm5153_vm4 = vmor %vm1309_vm14, %vm1310_vm15  ;;  %vm3468_vm14 = vcmask 786048   ;;  %vm3514_vm15 = vcmask 917248  }
  0xa9   : > { %v773_v60 = vadd.f32 %v772_v59, %v771_v58  ;;  %v562_v58 = vsel %vm4874_vm8, 0, %v561_v55  ;;  %v564_v59 = vld [vmem:[#allocation3 + $0x40] sm:$0x1] }
  0xaa   : > { %563 = vst [vmem:[#allocation3 + $0x38] sm:$0x1] %v562_v58  ;;  %v565_v61 = vsel %vm4874_vm8, 0, %v564_v59 }
  0xab   : > { %4416 = vmatmul.mubr.msk.f32.vlgmr.msra.gmra.mrb[0].mxu0 %vm752_vm3, %v773_v60  ;;  %v581_v60 = vld [vmem:[#allocation3 + $0x1c] sm:$0x1]  ;;  %566 = vst [vmem:[#allocation3 + $0x40] sm:$0x1] %v565_v61 }
  0xac   : > { %4475 = vmatpush3.bf16.msra.mxu0 %v4468_v19  ;;  %4426 = vmatprep.mubr.msk.f32.mxu0 %vm4643_vm1, %v4644_v5  ;;  %v582_v62 = vsel %vm4818_vm6, 0, %v581_v60 }
  0xad   : > { %4476 = vmatprep.subr.bf16.mxu0 %v4642_v4  ;;  %583 = vst [vmem:[#allocation3 + $0x1c] sm:$0x1] %v582_v62 }
  0xb0   : > { %4478 = vmatpush3.bf16.msra.mxu0 %v4471_v23 }
 0x17e   : > { %v843_v9 = vpop.f32.mrb[0].mxu0 }
 0x17f   : > { %v850_v10 = vrot.slane %v843_v9, %v4828_v8  ;;  %v4417_v11 = vpop.f32.mrb[1].mxu0  ;;  %v556_v9 = vsel %vm4874_vm8, 0, %v555_v6 }
 0x180   : > { %v587_v11 = vld [vmem:[#allocation3 + $0x2c] sm:$0x1]  ;;  %557 = vst [vmem:[#allocation3 + $0x28] sm:$0x1] %v556_v9 }
 0x181   : > { %v4831_v12 = vsub.f32 %v738_v30, %v850_v10  ;;  %v4833_v13 = vsub.f32 %v739_v33, %v850_v10  ;;  %v4835_v14 = vsub.f32 %v740_v34, %v850_v10  ;;  %v4837_v15 = vsub.f32 %v741_v37, %v850_v10 }
 0x182   : > { %v4839_v16 = vsub.f32 %v742_v41, %v850_v10  ;;  %v4847_v20 = vsub.f32 %v743_v44, %v850_v10  ;;  %v4853_v25 = vsub.f32 %v744_v47, %v850_v10  ;;  %v4858_v29 = vsub.f32 %v745_v50, %v850_v10  ;;  %v546_v50 = vld [vmem:[#allocation3 + $0x10] sm:$0x1] }
 0x183   : > { %v859_v17 = vmul.f32 %v4831_v12, %v4831_v12  ;;  %v860_v18 = vmul.f32 %v4833_v13, %v4833_v13  ;;  %v861_v19 = vmul.f32 %v4835_v14, %v4835_v14  ;;  %v862_v21 = vmul.f32 %v4837_v15, %v4837_v15 }
 0x184   : > { %v863_v26 = vmul.f32 %v4839_v16, %v4839_v16  ;;  %v864_v30 = vmul.f32 %v4847_v20, %v4847_v20  ;;  %v865_v33 = vmul.f32 %v4853_v25, %v4853_v25  ;;  %v866_v36 = vmul.f32 %v4858_v29, %v4858_v29 }
 0x185   : > { %v867_v22 = vsel %vm752_vm3, %v859_v17, 0.0  ;;  %v868_v23 = vsel %vm752_vm3, %v860_v18, 0.0  ;;  %v870_v27 = vsel %vm752_vm3, %v861_v19, 0.0  ;;  %v872_v31 = vsel %vm752_vm3, %v862_v21, 0.0  ;;  %v575_v18 = vld [vmem:[#allocation3 + $0xc] sm:$0x1] }
 0x186   : > { %v869_v24 = vadd.f32 %v868_v23, %v867_v22  ;;  %v874_v34 = vsel %vm752_vm3, %v863_v26, 0.0  ;;  %v876_v37 = vsel %vm752_vm3, %v864_v30, 0.0  ;;  %v878_v39 = vsel %vm752_vm3, %v865_v33, 0.0  ;;  %v578_v19 = vld [vmem:[#allocation3 + $0x14] sm:$0x1]  ;;  %v4506_v23 = vld [vmem:[%s5879_s5 + $0x80] sm:$0xff]  }
 0x187   : > { %v880_v41 = vsel %vm752_vm3, %v866_v36, 0.0  ;;  %v547_v53 = vsel %vm4874_vm8, 0, %v546_v50  ;;  %v585_v10 = vsel %vm4818_vm6, 0, %v584_v7  ;;  %v588_v17 = vsel %vm4818_vm6, 0, %v587_v11  ;;  %4429 = vmatprep.subr.bf16.mxu1 %v4506_v23  ;;  %v599_v30 = vld [vmem:[#allocation3 + $0x4c] sm:$0x1] }
 0x188   : > { %v871_v28 = vadd.f32 %v870_v27, %v869_v24  ;;  %548 = vst [vmem:[#allocation3 + $0x10] sm:$0x1] %v547_v53  ;;  %586 = vst [vmem:[#allocation3 + $0x24] sm:$0x1] %v585_v10  ;;  %v576_v21 = vsel %vm4818_vm6, 0, %v575_v18  ;;  %v579_v22 = vsel %vm4818_vm6, 0, %v578_v19  ;;  %4430 = vmatpush3.bf16.msra.mxu1 %v4506_v23 }
 0x189   : > { %589 = vst [vmem:[#allocation3 + $0x2c] sm:$0x1] %v588_v17  ;;  %577 = vst [vmem:[#allocation3 + $0xc] sm:$0x1] %v576_v21  ;;  %v572_v24 = vld [vmem:[#allocation3 + $0x4] sm:$0x1] }
 0x18a   : > { %v873_v32 = vadd.f32 %v872_v31, %v871_v28  ;;  %580 = vst [vmem:[#allocation3 + $0x14] sm:$0x1] %v579_v22  ;;  %v573_v26 = vsel %vm4818_vm6, 0, %v572_v24  ;;  %v540_v27 = vld [vmem:[#allocation3] sm:$0x1]  ;;  %v4509_v31 = vld [vmem:[%s5879_s5 + $0x88] sm:$0xff]  }
 0x18b   : > { %574 = vst [vmem:[#allocation3 + $0x4] sm:$0x1] %v573_v26  ;;  %v541_v28 = vsel %vm4874_vm8, 0, %v540_v27  ;;  %4431 = vmatprep.subr.bf16.mxu1 %v4509_v31  ;;  %v567_v33 = vld [vmem:[#allocation3 + $0x48] sm:$0x1] }
 0x18c   : > { %v875_v35 = vadd.f32 %v874_v34, %v873_v32  ;;  %542 = vst [vmem:[#allocation3] sm:$0x1] %v541_v28  ;;  %v600_v32 = vsel %vm4818_vm6, 0, %v599_v30  ;;  %4432 = vmatpush3.bf16.msra.mxu1 %v4509_v31  ;;  %v568_v34 = vsel %vm4874_vm8, 0, %v567_v33  ;;  %vm1448_vm6 = vcmask 523520  }
 0x18d   : > { %601 = vst [vmem:[#allocation3 + $0x4c] sm:$0x1] %v600_v32  ;;  %4479 = vmatprep.subr.bf16.mxu1 %v4642_v4  ;;  %569 = vst [vmem:[#allocation3 + $0x48] sm:$0x1] %v568_v34 }
 0x18e   : > { %v877_v38 = vadd.f32 %v876_v37, %v875_v35 }
 0x190   : > { %v879_v40 = vadd.f32 %v878_v39, %v877_v38  ;;  %v4514_v38 = vld [vmem:[%s5879_s5 + $0x40] sm:$0xff]  }
 0x191   : > { %4349 = vmatprep.subr.bf16.mxu0 %v4514_v38 }
 0x192   : > { %v881_v42 = vadd.f32 %v880_v41, %v879_v40  ;;  %v4115_v41 = vld [vmem:[%s5877_s3] ss:$0 sm:$0xff] }
 0x193   : > { %v1293_v27 = vld [vmem:[#allocation3] sm:$0xf] }
 0x194   : > { %v882_v43 = vrot.slane %v881_v42, 4  ;;  %v1893_v31 = vld [vmem:[#allocation3 + $0x48] sm:$0xf] }
 0x195   : > { %v1997_v38 = vshll.u32 %v1893_v31, 16 }
 0x196   : > { %v883_v44 = vadd.f32 %v882_v43, %v881_v42 }
 0x198   : > { %v884_v45 = vrot.slane %v883_v44, 2 }
 0x19a   : > { %v885_v46 = vadd.f32 %v884_v45, %v883_v44 }
 0x19c   : > { %v886_v47 = vrot.slane %v885_v46, 1 }
 0x19e   : > { %v887_v48 = vadd.f32 %v886_v47, %v885_v46  ;;  %v4116_v46 = vld [vmem:[%s5878_s4] ss:$0 sm:$0xff] }
 0x1a0   : > { %4427 = vmatmul.mubr.msk.f32.vlgmr.msra.gmra.mrb[2].mxu0 %vm752_vm3, %v887_v48 }
 0x1a1   : > { %4350 = vmatpush3.bf16.msra.mxu0 %v4515_v63  ;;  %v4972_v63 = vld [vmem:[#allocation3] sm:$0xe] }
 0x273   : > { %v957_v35 = vpop.f32.mrb[2].mxu0 }
 0x274   : > { %v958_v36 = vadd.f32 1e-06, %v957_v35  ;;  %v4428_v37 = vpop.f32.mrb[3].mxu0  ;;  %v1313_v35 = vshrl.u32 %v1293_v27, 16 }
 0x275   : > { %v1994_v37 = vshrl.u32 %v1893_v31, 16 }
 0x276   : > { %4557 = vrsqrt.f32 %v958_v36  ;;  %v1316_v36 = vshll.u32 %v1293_v27, 16 }
 0x280   : > { %v4558_v39 = vpop.eup %4557 }
 0x281   : > { %v965_v40 = vrot.slane %v4558_v39, %v4828_v8  ;;  %v4974_v39 = vld [vmem:[#allocation3 + $0x4] sm:$0x1] }
 0x283   : > { %v966_v42 = vmul.f32 %v965_v40, %v4831_v12  ;;  %v967_v43 = vmul.f32 %v965_v40, %v4833_v13  ;;  %v968_v44 = vmul.f32 %v965_v40, %v4835_v14  ;;  %v969_v45 = vmul.f32 %v965_v40, %v4837_v15 }
 0x284   : > { %v970_v47 = vmul.f32 %v965_v40, %v4839_v16  ;;  %v971_v48 = vmul.f32 %v965_v40, %v4847_v20  ;;  %v972_v50 = vmul.f32 %v965_v40, %v4853_v25  ;;  %v973_v51 = vmul.f32 %v965_v40, %v4858_v29 }
 0x285   : > { %v980_v52 = vmul.f32 %v4115_v41, %v966_v42  ;;  %v981_v12 = vmul.f32 %v4115_v41, %v967_v43  ;;  %v982_v53 = vmul.f32 %v4115_v41, %v968_v44  ;;  %v983_v13 = vmul.f32 %v4115_v41, %v969_v45  ;;  %v4980_v43 = vld [vmem:[#allocation3 + $0x48] sm:$0xe] }
 0x286   : > { %v984_v54 = vmul.f32 %v4115_v41, %v970_v47  ;;  %v985_v14 = vmul.f32 %v4115_v41, %v971_v48  ;;  %v986_v55 = vmul.f32 %v4115_v41, %v972_v50  ;;  %v987_v15 = vmul.f32 %v4115_v41, %v973_v51  ;;  %v4987_v48 = vld [vmem:[#allocation3 + $0x4] sm:$0x1] }
 0x287   : > { %v4948_v57 = vadd.f32 %v4116_v46, %v980_v52  ;;  %v4950_v58 = vadd.f32 %v4116_v46, %v981_v12  ;;  %v4952_v59 = vadd.f32 %v4116_v46, %v982_v53  ;;  %v4954_v16 = vadd.f32 %v4116_v46, %v983_v13 }
 0x288   : > { %v4956_v20 = vadd.f32 %v4116_v46, %v984_v54  ;;  %v4958_v25 = vadd.f32 %v4116_v46, %v985_v14  ;;  %v4960_v29 = vadd.f32 %v4116_v46, %v986_v55  ;;  %v4965_v0 = vadd.f32 %v4116_v46, %v987_v15 }
 0x289   : > { %v4117_v60 = vmul.f32 -1.442695, %v4948_v57  ;;  %v4118_v61 = vmul.f32 -1.442695, %v4950_v58  ;;  %v4119_v62 = vmul.f32 -1.442695, %v4952_v59 }
 0x28a   : > { %v4120_v1 = vmul.f32 -1.442695, %v4954_v16  ;;  %v4121_v2 = vmul.f32 -1.442695, %v4956_v20  ;;  %v4122_v3 = vmul.f32 -1.442695, %v4958_v25 }
 0x28b   : > { %4559 = vpow2.f32 %v4117_v60  ;;  %v4123_v6 = vmul.f32 -1.442695, %v4960_v29  ;;  %v4124_v7 = vmul.f32 -1.442695, %v4965_v0  ;;  %v4976_v40 = vrot.slane %v1313_v35, 4 }
 0x28c   : > { %4561 = vpow2.f32 %v4118_v61  ;;  %v4978_v41 = vrot.slane %v1316_v36, 5  ;;  %v4982_v44 = vrot.slane %v1994_v37, 4  ;;  %v4984_v45 = vrot.slane %v1997_v38, 5  ;;  %v1173_v35 = vld [vmem:[#allocation3 + $0x8] sm:$0xf] }
 0x28d   : > { %4563 = vpow2.f32 %v4119_v62  ;;  %v4141_v52 = vrot.slane %v4972_v63, 9  ;;  %v1490_v12 = vrot.slane %v4974_v39, 5  ;;  %v4188_v55 = vrot.slane %v4980_v43, 9  ;;  %v4516_v36 = vld [vmem:[%s5879_s5 + $0x48] sm:$0xff]   ;;  %v4521_v39 = vld [vmem:[%s5879_s5 + $0x18] sm:$0xff]  }
 0x28e   : > { %4565 = vpow2.f32 %v4120_v1  ;;  %v1319_v14 = vor.u32 %v4978_v41, %v4976_v40  ;;  %v1322_v61 = vshll.u32 %v4987_v48, 16  ;;  %v4517_v37 = vld [vmem:[%s5879_s5 + $0x8] sm:$0xff]   ;;  %4351 = vmatprep.subr.bf16.mxu0 %v4516_v36 }
 0x28f   : > { %4567 = vpow2.f32 %v4121_v2  ;;  %4352 = vmatpush3.bf16.msra.mxu0 %v4517_v37 }
 0x290   : > { %4569 = vpow2.f32 %v4122_v3 }
 0x291   : > { %4571 = vpow2.f32 %v4123_v6 }
 0x292   : > { %4573 = vpow2.f32 %v4124_v7 }
 0x295   : > { %v4560_v9 = vpop.eup %4559 }
 0x296   : > { %v4562_v10 = vpop.eup %4561  ;;  %v1026_v11 = vadd.f32 1.0, %v4560_v9 }
 0x297   : > { %v4564_v17 = vpop.eup %4563  ;;  %v1027_v18 = vadd.f32 1.0, %v4562_v10 }
 0x298   : > { %v4566_v19 = vpop.eup %4565  ;;  %v1028_v21 = vadd.f32 1.0, %v4564_v17  ;;  %4575 = vrcp.f32 %v1026_v11 }
 0x299   : > { %v4568_v22 = vpop.eup %4567  ;;  %v1029_v23 = vadd.f32 1.0, %v4566_v19  ;;  %4577 = vrcp.f32 %v1027_v18 }
 0x29a   : > { %v4570_v24 = vpop.eup %4569  ;;  %v1030_v26 = vadd.f32 1.0, %v4568_v22  ;;  %4579 = vrcp.f32 %v1028_v21 }
 0x29b   : > { %v4572_v28 = vpop.eup %4571  ;;  %v1031_v30 = vadd.f32 1.0, %v4570_v24  ;;  %4581 = vrcp.f32 %v1029_v23 }
 0x29c   : > { %v4574_v32 = vpop.eup %4573  ;;  %v1032_v33 = vadd.f32 1.0, %v4572_v28  ;;  %4583 = vrcp.f32 %v1030_v26  ;;  %v1185_v28 = vld [vmem:[#allocation3 + $0x18] sm:$0xf] }
 0x29d   : > { %v1033_v34 = vadd.f32 1.0, %v4574_v32  ;;  %4585 = vrcp.f32 %v1031_v30 }
 0x29e   : > { %4587 = vrcp.f32 %v1032_v33 }
 0x29f   : > { %4589 = vrcp.f32 %v1033_v34 }
 0x2a2   : > { %v4576_v42 = vpop.eup %4575 }
 0x2a3   : > { %v4578_v46 = vpop.eup %4577  ;;  %v1050_v47 = vmul.f32 %v4576_v42, %v4948_v57 }
 0x2a4   : > { %v4580_v50 = vpop.eup %4579  ;;  %v1051_v51 = vmul.f32 %v4578_v46, %v4950_v58  ;;  %v2000_v58 = vor.u32 %v4984_v45, %v4982_v44  ;;  %v1206_v46 = vld [vmem:[#allocation3 + $0x34] sm:$0x1] }
 0x2a5   : > { %v4582_v53 = vpop.eup %4581  ;;  %v1052_v13 = vmul.f32 %v4580_v50, %v4952_v59  ;;  %v4323_v54 = vpack.c.bf16 %v1050_v47, %v1050_v47 }
 0x2a6   : > { %v4584_v15 = vpop.eup %4583  ;;  %v4324_v57 = vpack.c.bf16 %v1051_v51, %v1051_v51  ;;  %v1053_v60 = vmul.f32 %v4582_v53, %v4954_v16  ;;  %v1188_v51 = vld [vmem:[#allocation3 + $0x1c] sm:$0x1] }
 0x2a7   : > { %v4586_v62 = vpop.eup %4585  ;;  %v4325_v1 = vpack.c.bf16 %v1052_v13, %v1052_v13  ;;  %v1091_v2 = vshrl.u32 %v4323_v54, 16  ;;  %v1094_v3 = vshll.u32 %v4323_v54, 16  ;;  %v1054_v59 = vmul.f32 %v4584_v15, %v4956_v20  ;;  %v1212_v15 = vld [vmem:[#allocation3 + $0x3c] sm:$0x1] }
 0x2a8   : > { %v4588_v6 = vpop.eup %4587  ;;  %v1055_v7 = vmul.f32 %v4586_v62, %v4958_v25  ;;  %v1099_v9 = vshrl.u32 %v4324_v57, 16  ;;  %v1102_v10 = vshll.u32 %v4324_v57, 16  ;;  %v5002_v11 = vpack.c.bf16 %v1053_v60, %v1053_v60  ;;  %v1218_v62 = vld [vmem:[#allocation3 + $0x44] sm:$0x1] }
 0x2a9   : > { %v4590_v17 = vpop.eup %4589  ;;  %v1056_v16 = vmul.f32 %v4588_v6, %v4960_v29  ;;  %v1107_v18 = vshrl.u32 %v4325_v1, 16  ;;  %v1110_v19 = vshll.u32 %v4325_v1, 16  ;;  %v5005_v21 = vrot.slane %v1091_v2, 7  ;;  %v1179_v29 = vld [vmem:[#allocation3 + $0x10] sm:$0xf] }
 0x2aa   : > { %v1057_v22 = vmul.f32 %v4590_v17, %v4965_v0  ;;  %v4328_v23 = vpack.c.bf16 %v1055_v7, %v1055_v7  ;;  %v5008_v24 = vrot.slane %v1099_v9, 7  ;;  %v5010_v20 = vpack.c.bf16 %v1054_v59, %v1054_v59  ;;  %v1209_v17 = vld [vmem:[#allocation3 + $0x38] sm:$0xf] }
 0x2ab   : > { %v4329_v26 = vpack.c.bf16 %v1056_v16, %v1056_v16  ;;  %v1109_v25 = vrot.slane %v1107_v18, 7  ;;  %v1096_v30 = vor.u32 %v1094_v3, %v5005_v21  ;;  %v1097_v31 = vrot.slane %v5005_v21, 4  ;;  %v1203_v3 = vld [vmem:[#allocation3 + $0x30] sm:$0xf]  ;;  %v1215_v16 = vld [vmem:[#allocation3 + $0x40] sm:$0xf] }
 0x2ac   : > { %v4330_v0 = vpack.c.bf16 %v1057_v22, %v1057_v22  ;;  %v1131_v32 = vshrl.u32 %v4328_v23, 16  ;;  %v1134_v33 = vshll.u32 %v4328_v23, 16  ;;  %v1104_v34 = vor.u32 %v1102_v10, %v5008_v24  ;;  %v4519_v21 = vld [vmem:[%s5879_s5 + $0x10] sm:$0xff]  }
 0x2ad   : > { %v1139_v38 = vshrl.u32 %v4329_v26, 16  ;;  %v1142_v42 = vshll.u32 %v4329_v26, 16  ;;  %v1105_v47 = vrot.slane %v5008_v24, 4  ;;  %v1112_v50 = vor.u32 %v1110_v19, %v1109_v25  ;;  %v1176_v24 = vld [vmem:[#allocation3 + $0xc] sm:$0x1] }
 0x2ae   : > { %v1133_v53 = vrot.slane %v1131_v32, 7  ;;  %v1147_v13 = vshrl.u32 %v4330_v0, 16  ;;  %v1150_v54 = vshll.u32 %v4330_v0, 16  ;;  %v1113_v57 = vrot.slane %v1109_v25, 4 }
 0x2af   : > { %v1141_v60 = vrot.slane %v1139_v38, 7  ;;  %v1180_v1 = vsel %vm5014_vm10, %v1104_v34, %v1179_v29  ;;  %v1186_v2 = vsel %vm5014_vm10, %v1112_v50, %v1185_v28  ;;  %v1174_v59 = vsel %vm5014_vm10, %v1096_v30, %v1173_v35  ;;  %v1182_v30 = vld [vmem:[#allocation3 + $0x14] sm:$0x1]  ;;  %v5047_v34 = vld [vmem:[#allocation3 + $0x4c] sm:$0x1] }
 0x2b0   : > { %v1136_v6 = vor.u32 %v1134_v33, %v1133_v53  ;;  %v1137_v7 = vrot.slane %v1133_v53, 4  ;;  %v1149_v9 = vrot.slane %v1147_v13, 7  ;;  %1181 = vst [vmem:[#allocation3 + $0x10] sm:$0xf] %v1180_v1  ;;  %1187 = vst [vmem:[#allocation3 + $0x18] sm:$0xf] %v1186_v2  ;;  %v1189_v10 = vsel %vm4874_vm8, %v1113_v57, %v1188_v51 }
 0x2b1   : > { %1175 = vst [vmem:[#allocation3 + $0x8] sm:$0xf] %v1174_v59  ;;  %v1144_v18 = vor.u32 %v1142_v42, %v1141_v60  ;;  %v1145_v19 = vrot.slane %v1141_v60, 4  ;;  %1190 = vst [vmem:[#allocation3 + $0x1c] sm:$0x1] %v1189_v10  ;;  %v1115_v22 = vshrl.u32 %v5002_v11, 16  ;;  %v1177_v50 = vsel %vm4874_vm8, %v1097_v31, %v1176_v24 }
 0x2b2   : > { %v1118_v23 = vshll.u32 %v5002_v11, 16  ;;  %v1152_v26 = vor.u32 %v1150_v54, %v1149_v9  ;;  %v1153_v25 = vrot.slane %v1149_v9, 4  ;;  %v1207_v29 = vsel %vm4874_vm8, %v1137_v7, %v1206_v46  ;;  %v5049_v35 = vld [vmem:[#allocation3 + $0x4c] sm:$0x1]  ;;  %v1191_v42 = vld [vmem:[#allocation3 + $0x20] sm:$0xf] }
 0x2b3   : > { %v1204_v28 = vsel %vm5014_vm10, %v1136_v6, %v1203_v3  ;;  %1208 = vst [vmem:[#allocation3 + $0x34] sm:$0x1] %v1207_v29  ;;  %v1213_v0 = vsel %vm4874_vm8, %v1145_v19, %v1212_v15  ;;  %v1210_v32 = vsel %vm5014_vm10, %v1144_v18, %v1209_v17  ;;  %v1117_v11 = vrot.slane %v1115_v22, 7  ;;  %v1194_v46 = vld [vmem:[#allocation3 + $0x24] sm:$0x1]  ;;  %v4520_v10 = vld [vmem:[%s5879_s5 + $0x58] sm:$0xff]  }
 0x2b4   : > { %1205 = vst [vmem:[#allocation3 + $0x30] sm:$0xf] %v1204_v28  ;;  %v1123_v33 = vshrl.u32 %v5010_v20, 16  ;;  %1214 = vst [vmem:[#allocation3 + $0x3c] sm:$0x1] %v1213_v0  ;;  %v1219_v36 = vsel %vm4874_vm8, %v1153_v25, %v1218_v62  ;;  %v1216_v37 = vsel %vm5014_vm10, %v1152_v26, %v1215_v16  ;;  %v1126_v38 = vshll.u32 %v5010_v20, 16 }
 0x2b5   : > { %1211 = vst [vmem:[#allocation3 + $0x38] sm:$0xf] %v1210_v32  ;;  %1220 = vst [vmem:[#allocation3 + $0x44] sm:$0x1] %v1219_v36  ;;  %v1120_v51 = vor.u32 %v1118_v23, %v1117_v11  ;;  %v1121_v53 = vrot.slane %v1117_v11, 4  ;;  %v1183_v15 = vsel %vm4874_vm8, %v1105_v47, %v1182_v30  ;;  %v4518_v20 = vld [vmem:[%s5879_s5 + $0x50] sm:$0xff]   ;;  %v1491_v11 = vsel %vm5099_vm13, %v4141_v52, %v1490_v12 }
 0x2b6   : > { %1217 = vst [vmem:[#allocation3 + $0x40] sm:$0xf] %v1216_v37  ;;  %v1125_v13 = vrot.slane %v1123_v33, 7  ;;  %v1197_v54 = vld [vmem:[#allocation3 + $0x28] sm:$0xf]  ;;  %v5071_v31 = vrot.slane %v1319_v14, 4  ;;  %4353 = vmatprep.subr.bf16.mxu0 %v4518_v20 }
 0x2b7   : > { %1178 = vst [vmem:[#allocation3 + $0xc] sm:$0x1] %v1177_v50  ;;  %v1200_v57 = vld [vmem:[#allocation3 + $0x2c] sm:$0x1]  ;;  %1184 = vst [vmem:[#allocation3 + $0x14] sm:$0x1] %v1183_v15  ;;  %v1192_v3 = vsel %vm5014_vm10, %v1120_v51, %v1191_v42  ;;  %v1195_v59 = vsel %vm4874_vm8, %v1121_v53, %v1194_v46  ;;  %4354 = vmatpush3.bf16.msra.mxu0 %v4519_v21 }
 0x2b8   : > { %v5075_v60 = vrot.slane %v1322_v61, 5  ;;  %v2097_v47 = vrot.slane %v5047_v34, 5  ;;  %v2003_v62 = vshll.u32 %v5049_v35, 16  ;;  %v4504_v1 = vld [vmem:[#allocation3 + $0x10] ss:$8 sps:$4 sm:$0xff]   ;;  %v1128_v2 = vor.u32 %v1126_v38, %v1125_v13  ;;  %4355 = vmatprep.subr.bf16.mxu0 %v4520_v10  ;;  %v4522_v15 = vld [vmem:[%s5879_s5 + $0x60] sm:$0xff]  }
 0x2b9   : > { %v4505_v40 = vld [vmem:[#allocation3 + $0x8] ss:$8 sps:$4 sm:$0xff]   ;;  %1193 = vst [vmem:[#allocation3 + $0x20] sm:$0xf] %v1192_v3  ;;  %1196 = vst [vmem:[#allocation3 + $0x24] sm:$0x1] %v1195_v59  ;;  %1863 = vrot.lane.b32.xlu0 %v4504_v1, %s4646_s22 }
 0x2ba   : > { %v1129_v41 = vrot.slane %v1125_v13, 4  ;;  %v1198_v48 = vsel %vm5014_vm10, %v1128_v2, %v1197_v54  ;;  %v1742_v14 = vld [vmem:[#allocation3 + $0x8] sm:$0xe]  ;;  %v5089_v61 = vrot.slane %v2000_v58, 4  ;;  %1577 = vrot.lane.b32.xlu1 %v4505_v40, %s4647_s24  ;;  %v1744_v6 = vld [vmem:[#allocation3 + $0x10] sm:$0xe]  ;;  %v2098_v35 = vsel %vm5099_vm13, %v4188_v55, %v2097_v47 }
 0x2bb   : > { %1199 = vst [vmem:[#allocation3 + $0x28] sm:$0xf] %v1198_v48  ;;  %v4161_v7 = vrot.slane %v1742_v14, 9  ;;  %v1455_v9 = vld [vmem:[#allocation3 + $0x8] sm:$0xe]  ;;  %v4162_v17 = vrot.slane %v1744_v6, 9  ;;  %4356 = vmatpush3.bf16.msra.mxu0 %v4521_v39  ;;  %v1325_v43 = vsel %vm5153_vm4, %v5071_v31, %v5075_v60 }
 0x2bc   : > { %v1201_v27 = vsel %vm4874_vm8, %v1129_v41, %v1200_v57  ;;  %v4142_v16 = vrot.slane %v1455_v9, 9  ;;  %v2035_v18 = vld [vmem:[#allocation3 + $0x10] sm:$0xe]  ;;  %v2037_v44 = vld [vmem:[#allocation3 + $0x18] sm:$0xe]  ;;  %4357 = vmatprep.subr.bf16.mxu0 %v4522_v15  ;;  %v4523_v14 = vld [vmem:[%s5879_s5 + $0x20] sm:$0xff]  }
 0x2bd   : > { %1202 = vst [vmem:[#allocation3 + $0x2c] sm:$0x1] %v1201_v27  ;;  %v2038_v19 = vld [vmem:[#allocation3 + $0x1c] sm:$0x1]  ;;  %v4181_v29 = vrot.slane %v2035_v18, 9  ;;  %v4182_v30 = vrot.slane %v2037_v44, 9 }
 0x2be   : > { %v1743_v45 = vld [vmem:[#allocation3 + $0xc] sm:$0x1]  ;;  %v1745_v23 = vld [vmem:[#allocation3 + $0x14] sm:$0x1]  ;;  %v1746_v32 = vld [vmem:[#allocation3 + $0x18] sm:$0xe] }
 0x2bf   : > { %v1456_v58 = vld [vmem:[#allocation3 + $0xc] sm:$0x1]  ;;  %v1776_v24 = vrot.slane %v1743_v45, 5  ;;  %v2036_v49 = vld [vmem:[#allocation3 + $0x14] sm:$0x1]  ;;  %v1780_v25 = vrot.slane %v1745_v23, 5  ;;  %4358 = vmatpush3.bf16.msra.mxu0 %v4523_v14 }
 0x2c0   : > { %v1494_v26 = vrot.slane %v1456_v58, 5  ;;  %v2069_v28 = vrot.slane %v2036_v49, 5  ;;  %v4508_v0 = vld [vmem:[#allocation3 + $0x18] ss:$8 sps:$4 sm:$0xff]   ;;  %v2073_v37 = vrot.slane %v2038_v19, 5  ;;  %v4163_v40 = vrot.slane %v1746_v32, 9 }
 0x2c1   : > { %v2039_v38 = vld [vmem:[#allocation3 + $0x20] sm:$0xe]  ;;  %v2040_v42 = vld [vmem:[#allocation3 + $0x24] sm:$0x1]  ;;  %1579 = vrot.lane.b32.xlu1 %v4508_v0, %s4647_s24  ;;  %v1777_v63 = vsel %vm5099_vm13, %v4161_v7, %v1776_v24  ;;  %v1781_v52 = vsel %vm5099_vm13, %v4162_v17, %v1780_v25  ;;  %v1747_v54 = vld [vmem:[#allocation3 + $0x1c] sm:$0x1] }
 0x2c2   : > { %v1495_v33 = vsel %vm5099_vm13, %v4142_v16, %v1494_v26  ;;  %v2070_v36 = vsel %vm5099_vm13, %v4181_v29, %v2069_v28  ;;  %v4507_v46 = vld [vmem:[#allocation3 + $0x20] ss:$8 sps:$4 sm:$0xff]   ;;  %v2074_v50 = vsel %vm5099_vm13, %v4182_v30, %v2073_v37  ;;  %v4183_v51 = vrot.slane %v2039_v38, 9  ;;  %v1749_v2 = vld [vmem:[#allocation3 + $0x24] sm:$0x1] }
 0x2c3   : > { %v2041_v12 = vld [vmem:[#allocation3 + $0x28] sm:$0xe]  ;;  %v2077_v53 = vrot.slane %v2040_v42, 5  ;;  %1865 = vrot.lane.b32.xlu0 %v4507_v46, %s4646_s22  ;;  %v4149_v20 = vcombine.low %v1491_v11, %v1495_v33  ;;  %v4189_v21 = vcombine.low %v2070_v36, %v2074_v50  ;;  %v1748_v1 = vld [vmem:[#allocation3 + $0x20] sm:$0xe]  ;;  %v1784_v41 = vrot.slane %v1747_v54, 5 }
 0x2c4   : > { %v4184_v13 = vrot.slane %v2041_v12, 9  ;;  %v2042_v57 = vld [vmem:[#allocation3 + $0x2c] sm:$0x1]  ;;  %v1457_v48 = vld [vmem:[#allocation3 + $0x10] sm:$0xe]  ;;  %v4169_v6 = vcombine.low %v1777_v63, %v1781_v52  ;;  %v4164_v7 = vrot.slane %v1748_v1, 9 }
 0x2c5   : > { %v2078_v3 = vsel %vm5099_vm13, %v4183_v51, %v2077_v53  ;;  %v2081_v59 = vrot.slane %v2042_v57, 5  ;;  %1532 = vrot.lane.b32.xlu1 %v4149_v20, %s4646_s22  ;;  %2115 = vst.msk [vmem:[#allocation5 + $0x10] sm:$0xff] %vm752_vm3, %v4189_v21  ;;  %v1788_v9 = vrot.slane %v1749_v2, 5  ;;  %v1458_v10 = vld [vmem:[#allocation3 + $0x14] sm:$0x1]  ;;  %v1785_v16 = vsel %vm5099_vm13, %v4163_v40, %v1784_v41  ;;  %v4525_v40 = vld [vmem:[%s5879_s5 + $0x68] sm:$0xff]  }
 0x2c6   : > { %v1459_v27 = vld [vmem:[#allocation3 + $0x18] sm:$0xe]  ;;  %v1460_v18 = vld [vmem:[#allocation3 + $0x1c] sm:$0x1]  ;;  %v4143_v44 = vrot.slane %v1457_v48, 9  ;;  %v1498_v45 = vrot.slane %v1458_v10, 5  ;;  %4359 = vmatprep.subr.bf16.mxu0 %v4525_v40 }
 0x2c7   : > { %v2082_v17 = vsel %vm5099_vm13, %v4184_v13, %v2081_v59  ;;  %v2043_v58 = vld [vmem:[#allocation3 + $0x30] sm:$0xe]  ;;  %1818 = vrot.lane.b32.xlu0 %v4169_v6, %s4648_s21  ;;  %v1789_v23 = vsel %vm5099_vm13, %v4164_v7, %v1788_v9  ;;  %v4144_v24 = vrot.slane %v1459_v27, 9  ;;  %v1502_v26 = vrot.slane %v1460_v18, 5  ;;  %v2044_v49 = vld [vmem:[#allocation3 + $0x34] sm:$0x1] }
 0x2c8   : > { %v4190_v19 = vcombine.low %v2078_v3, %v2082_v17  ;;  %v2045_v25 = vld [vmem:[#allocation3 + $0x38] sm:$0xe]  ;;  %v1499_v29 = vsel %vm5099_vm13, %v4143_v44, %v1498_v45  ;;  %v2046_v28 = vld [vmem:[#allocation3 + $0x3c] sm:$0x1]  ;;  %v4185_v30 = vrot.slane %v2043_v58, 9  ;;  %v2085_v0 = vrot.slane %v2044_v49, 5 }
 0x2c9   : > { %v1750_v32 = vld [vmem:[#allocation3 + $0x28] sm:$0xe]  ;;  %v4170_v11 = vcombine.low %v1785_v16, %v1789_v23  ;;  %v1503_v33 = vsel %vm5099_vm13, %v4144_v24, %v1502_v26  ;;  %v4186_v36 = vrot.slane %v2045_v25, 9  ;;  %v2089_v37 = vrot.slane %v2046_v28, 5  ;;  %v1751_v38 = vld [vmem:[#allocation3 + $0x2c] sm:$0x1] }
 0x2ca   : > { %2116 = vst.msk [vmem:[#allocation5 + $0x28] sm:$0xff] %vm752_vm3, %v4190_v19  ;;  %v1752_v42 = vld [vmem:[#allocation3 + $0x30] sm:$0xe]  ;;  %v4150_v39 = vcombine.low %v1499_v29, %v1503_v33  ;;  %v2086_v46 = vsel %vm5099_vm13, %v4185_v30, %v2085_v0  ;;  %v1753_v63 = vld [vmem:[#allocation3 + $0x34] sm:$0x1]  ;;  %v4165_v52 = vrot.slane %v1750_v32, 9 }
 0x2cb   : > { %v1792_v12 = vrot.slane %v1751_v38, 5  ;;  %v1295_v50 = vld [vmem:[#allocation3 + $0x8] sm:$0xf]  ;;  %1820 = vrot.lane.b32.xlu0 %v4170_v11, %s4648_s21  ;;  %v2090_v51 = vsel %vm5099_vm13, %v4186_v36, %v2089_v37  ;;  %v4166_v53 = vrot.slane %v1752_v42, 9  ;;  %v1796_v13 = vrot.slane %v1753_v63, 5  ;;  %v4527_v26 = vld [vmem:[%s5879_s5 + $0x70] sm:$0xff]  }
 0x2cc   : > { %v1296_v54 = vld [vmem:[#allocation3 + $0xc] sm:$0x1]  ;;  %v1327_v20 = vshrl.u32 %v1295_v50, 16  ;;  %v2121_v21 = vld [vmem:[#allocation5 + $0x10] sm:$0xff]  ;;  %1534 = vrot.lane.b32.xlu1 %v4150_v39, %s4646_s22  ;;  %v4191_v57 = vcombine.low %v2086_v46, %v2090_v51  ;;  %v1330_v2 = vshll.u32 %v1295_v50, 16  ;;  %v5162_v59 = vrot.slane %v2003_v62, 5 }
 0x2cd   : > { %v1793_v1 = vsel %vm5099_vm13, %v4165_v52, %v1792_v12  ;;  %v2047_v3 = vld [vmem:[#allocation3 + $0x40] sm:$0xe]  ;;  %4433 = vmatprep.mubr.msk.bf16.mxu1 %vm752_vm3, %v2121_v21  ;;  %v1797_v41 = vsel %vm5099_vm13, %v4166_v53, %v1796_v13  ;;  %v2048_v14 = vld [vmem:[#allocation3 + $0x44] sm:$0x1]  ;;  %v1879_v62 = vld [vmem:[#allocation3 + $0x10] sm:$0xf] }
 0x2ce   : > { %v1329_v48 = vrot.slane %v1327_v20, 4  ;;  %v4187_v6 = vrot.slane %v2047_v3, 9  ;;  %2117 = vst.msk [vmem:[#allocation5 + $0x40] sm:$0xff] %vm752_vm3, %v4191_v57  ;;  %v4171_v7 = vcombine.low %v1793_v1, %v1797_v41  ;;  %v1332_v9 = vrot.slane %v1330_v2, 5  ;;  %v1880_v17 = vld [vmem:[#allocation3 + $0x14] sm:$0x1] }
 0x2cf   : > { %v1336_v10 = vshll.u32 %v1296_v54, 16  ;;  %v2093_v27 = vrot.slane %v2048_v14, 5  ;;  %v4526_v16 = vld [vmem:[%s5879_s5 + $0x28] sm:$0xff]   ;;  %v1881_v34 = vld [vmem:[#allocation3 + $0x18] sm:$0xf]  ;;  %v1896_v47 = vshrl.u32 %v1879_v62, 16 }
 0x2d0   : > { %v1882_v55 = vld [vmem:[#allocation3 + $0x1c] sm:$0x1]  ;;  %v1899_v18 = vshll.u32 %v1879_v62, 16  ;;  %1822 = vrot.lane.b32.xlu0 %v4171_v7, %s4648_s21  ;;  %v1333_v45 = vor.u32 %v1332_v9, %v1329_v48  ;;  %v1905_v19 = vshll.u32 %v1880_v17, 16  ;;  %v1910_v23 = vshrl.u32 %v1881_v34, 16  ;;  %4360 = vmatpush3.bf16.msra.mxu0 %v4526_v16  ;;  %v4528_v28 = vld [vmem:[%s5879_s5 + $0x30] sm:$0xff]  }
 0x2d1   : > { %v2124_v44 = vld [vmem:[#allocation5 + $0x28] sm:$0xff]  ;;  %v2094_v58 = vsel %vm5099_vm13, %v4187_v6, %v2093_v27  ;;  %v1461_v24 = vld [vmem:[#allocation3 + $0x20] sm:$0xe]  ;;  %v1898_v60 = vrot.slane %v1896_v47, 4  ;;  %v1913_v25 = vshll.u32 %v1881_v34, 16  ;;  %v1338_v0 = vrot.slane %v1336_v10, 5  ;;  %4361 = vmatprep.subr.bf16.mxu0 %v4527_v26 }
 0x2d2   : > { %4434 = vmatmul.mubr.msk.bf16.vlgmr.msra.gmra.mrb[0].mxu1 %vm752_vm3, %v2124_v44  ;;  %v4192_v31 = vcombine.low %v2094_v58, %v2098_v35  ;;  %v1901_v49 = vrot.slane %v1899_v18, 5  ;;  %v1462_v29 = vld [vmem:[#allocation3 + $0x24] sm:$0x1]  ;;  %v1334_v30 = vrot.slane %v1333_v45, 4  ;;  %v1912_v32 = vrot.slane %v1910_v23, 4 }
 0x2d3   : > { %v1919_v11 = vshll.u32 %v1882_v55, 16  ;;  %v1463_v33 = vld [vmem:[#allocation3 + $0x28] sm:$0xe]  ;;  %v1915_v37 = vrot.slane %v1913_v25, 5  ;;  %v1464_v38 = vld [vmem:[#allocation3 + $0x2c] sm:$0x1] }
 0x2d4   : > { %2118 = vst.msk [vmem:[#allocation5 + $0x58] sm:$0xff] %vm752_vm3, %v4192_v31  ;;  %v1902_v36 = vor.u32 %v1901_v49, %v1898_v60  ;;  %v4145_v42 = vrot.slane %v1461_v24, 9  ;;  %v1506_v39 = vrot.slane %v1462_v29, 5  ;;  %v1339_v46 = vsel %vm5153_vm4, %v1334_v30, %v1338_v0  ;;  %4362 = vmatpush3.bf16.msra.mxu0 %v4528_v28  ;;  %v1297_v57 = vld [vmem:[#allocation3 + $0x10] sm:$0xf]  ;;  %v4530_v29 = vld [vmem:[%s5879_s5 + $0x78] sm:$0xff]  }
 0x2d5   : > { %v1907_v63 = vrot.slane %v1905_v19, 5  ;;  %v4146_v52 = vrot.slane %v1463_v33, 9  ;;  %v1510_v12 = vrot.slane %v1464_v38, 5  ;;  %v2127_v50 = vld [vmem:[#allocation5 + $0x40] sm:$0xff]  ;;  %v4137_v51 = vcombine.low %v1325_v43, %v1339_v46  ;;  %v1298_v1 = vld [vmem:[#allocation3 + $0x14] sm:$0x1]  ;;  %4363 = vmatprep.subr.bf16.mxu0 %v4530_v29 }
 0x2d6   : > { %v1903_v53 = vrot.slane %v1902_v36, 4  ;;  %v1916_v13 = vor.u32 %v1915_v37, %v1912_v32  ;;  %v1921_v54 = vrot.slane %v1919_v11, 5  ;;  %4437 = vmatprep.mubr.msk.bf16.mxu1 %vm752_vm3, %v2127_v50  ;;  %v1507_v20 = vsel %vm5099_vm13, %v4145_v42, %v1506_v39  ;;  %v1299_v2 = vld [vmem:[#allocation3 + $0x18] sm:$0xf]  ;;  %v1300_v41 = vld [vmem:[#allocation3 + $0x1c] sm:$0x1] }
 0x2d7   : > { %v1511_v21 = vsel %vm5099_vm13, %v4146_v52, %v1510_v12  ;;  %1436 = vrot.lane.b32.xlu1 %v4137_v51, %s4648_s21  ;;  %v1341_v48 = vshrl.u32 %v1297_v57, 16  ;;  %v1883_v14 = vld [vmem:[#allocation3 + $0x20] sm:$0xf]  ;;  %v1344_v6 = vshll.u32 %v1297_v57, 16  ;;  %v1350_v35 = vshll.u32 %v1298_v1, 16  ;;  %v4531_v33 = vld [vmem:[%s5879_s5 + $0x38] sm:$0xff]  }
 0x2d8   : > { %v1908_v3 = vsel %vm5153_vm4, %v1903_v53, %v1907_v63  ;;  %v1917_v40 = vrot.slane %v1916_v13, 4  ;;  %v1355_v62 = vshrl.u32 %v1299_v2, 16  ;;  %v1358_v7 = vshll.u32 %v1299_v2, 16  ;;  %v1884_v9 = vld [vmem:[#allocation3 + $0x24] sm:$0x1]  ;;  %4364 = vmatpush3.bf16.msra.mxu0 %v4531_v33 }
 0x2d9   : > { %v4151_v27 = vcombine.low %v1507_v20, %v1511_v21  ;;  %v1343_v17 = vrot.slane %v1341_v48, 4  ;;  %v1364_v16 = vshll.u32 %v1300_v41, 16  ;;  %v1885_v43 = vld [vmem:[#allocation3 + $0x28] sm:$0xf]  ;;  %v1886_v34 = vld [vmem:[#allocation3 + $0x2c] sm:$0x1] }
 0x2da   : > { %v1922_v10 = vsel %vm5153_vm4, %v1917_v40, %v1921_v54  ;;  %v1346_v18 = vrot.slane %v1344_v6, 5  ;;  %v1352_v44 = vrot.slane %v1350_v35, 5  ;;  %v1357_v45 = vrot.slane %v1355_v62, 4  ;;  %v4510_v26 = vld [vmem:[#allocation3 + $0x30] ss:$8 sps:$4 sm:$0xff]  }
 0x2db   : > { %v2130_v55 = vld [vmem:[#allocation5 + $0x58] sm:$0xff]  ;;  %v4177_v47 = vcombine.low %v1908_v3, %v1922_v10  ;;  %1536 = vrot.lane.b32.xlu1 %v4151_v27, %s4646_s22  ;;  %v1360_v58 = vrot.slane %v1358_v7, 5  ;;  %v1366_v19 = vrot.slane %v1364_v16, 5  ;;  %v1924_v23 = vshrl.u32 %v1883_v14, 16  ;;  %v1756_v12 = vld [vmem:[#allocation3 + $0x40] sm:$0xe] }
 0x2dc   : > { %4438 = vmatmul.mubr.msk.bf16.gmra.mrb[4].mxu1 %vm752_vm3, %v2130_v55  ;;  %v1927_v24 = vshll.u32 %v1883_v14, 16  ;;  %v1347_v31 = vor.u32 %v1346_v18, %v1343_v17  ;;  %v1933_v60 = vshll.u32 %v1884_v9, 16  ;;  %v1938_v49 = vshrl.u32 %v1885_v43, 16  ;;  %v1754_v11 = vld [vmem:[#allocation3 + $0x38] sm:$0xe] }
 0x2dd   : > { %2019 = vrot.lane.b32.xlu0 %v4177_v47, %s4647_s24  ;;  %v1941_v25 = vshll.u32 %v1885_v43, 16  ;;  %4445 = vmatprep.mubr.msk.f32.mxu1 %vm4643_vm1, %v4644_v5  ;;  %v1361_v28 = vor.u32 %v1360_v58, %v1357_v45  ;;  %v1926_v30 = vrot.slane %v1924_v23, 4  ;;  %v1947_v32 = vshll.u32 %v1886_v34, 16  ;;  %v1755_v39 = vld [vmem:[#allocation3 + $0x3c] sm:$0x1] }
 0x2de   : > { %v1929_v0 = vrot.slane %v1927_v24, 5  ;;  %v1348_v36 = vrot.slane %v1347_v31, 4  ;;  %v1935_v37 = vrot.slane %v1933_v60, 5  ;;  %v1940_v38 = vrot.slane %v1938_v49, 4  ;;  %v1757_v50 = vld [vmem:[#allocation3 + $0x44] sm:$0x1] }
 0x2df   : > { %v1943_v42 = vrot.slane %v1941_v25, 5  ;;  %v1362_v46 = vrot.slane %v1361_v28, 4  ;;  %v1949_v52 = vrot.slane %v1947_v32, 5  ;;  %v4167_v13 = vrot.slane %v1754_v11, 9  ;;  %v1301_v20 = vld [vmem:[#allocation3 + $0x20] sm:$0xf] }
 0x2e0   : > { %v1930_v63 = vor.u32 %v1929_v0, %v1926_v30  ;;  %v1353_v51 = vsel %vm5153_vm4, %v1348_v36, %v1352_v44  ;;  %v1800_v54 = vrot.slane %v1755_v39, 5  ;;  %v1302_v21 = vld [vmem:[#allocation3 + $0x24] sm:$0x1]  ;;  %v4168_v2 = vrot.slane %v1756_v12, 9  ;;  %v1303_v40 = vld [vmem:[#allocation3 + $0x28] sm:$0xf] }
 0x2e1   : > { %1867 = vrot.lane.b32.xlu0 %v4510_v26, %s4646_s22  ;;  %v1944_v53 = vor.u32 %v1943_v42, %v1940_v38  ;;  %v1367_v57 = vsel %vm5153_vm4, %v1362_v46, %v1366_v19  ;;  %v1804_v3 = vrot.slane %v1757_v50, 5  ;;  %v1369_v6 = vshrl.u32 %v1301_v20, 16  ;;  %v1304_v7 = vld [vmem:[#allocation3 + $0x2c] sm:$0x1]  ;;  %v1887_v27 = vld [vmem:[#allocation3 + $0x30] sm:$0xf] }
 0x2e2   : > { %v1931_v1 = vrot.slane %v1930_v63, 4  ;;  %v4138_v41 = vcombine.low %v1353_v51, %v1367_v57  ;;  %v1801_v14 = vsel %vm5099_vm13, %v4167_v13, %v1800_v54  ;;  %v1372_v9 = vshll.u32 %v1301_v20, 16  ;;  %v4511_v16 = vld [vmem:[#allocation3 + $0x28] ss:$8 sps:$4 sm:$0xff]   ;;  %v1888_v47 = vld [vmem:[#allocation3 + $0x34] sm:$0x1] }
 0x2e3   : > { %v1945_v48 = vrot.slane %v1944_v53, 4  ;;  %v1805_v62 = vsel %vm5099_vm13, %v4168_v2, %v1804_v3  ;;  %v1378_v10 = vshll.u32 %v1302_v21, 16  ;;  %v1371_v34 = vrot.slane %v1369_v6, 4  ;;  %v1889_v18 = vld [vmem:[#allocation3 + $0x38] sm:$0xf] }
 0x2e4   : > { %v1936_v35 = vsel %vm5153_vm4, %v1931_v1, %v1935_v37  ;;  %1438 = vrot.lane.b32.xlu1 %v4138_v41, %s4648_s21  ;;  %v4172_v43 = vcombine.low %v1801_v14, %v1805_v62  ;;  %v1383_v55 = vshrl.u32 %v1303_v40, 16  ;;  %v1374_v45 = vrot.slane %v1372_v9, 5  ;;  %v1890_v23 = vld [vmem:[#allocation3 + $0x3c] sm:$0x1]  ;;  %v1465_v24 = vld [vmem:[#allocation3 + $0x30] sm:$0xe] }
 0x2e5   : > { %v1950_v17 = vsel %vm5153_vm4, %v1945_v48, %v1949_v52  ;;  %v1380_v58 = vrot.slane %v1378_v10, 5  ;;  %v1386_v19 = vshll.u32 %v1303_v40, 16  ;;  %v1392_v31 = vshll.u32 %v1304_v7, 16  ;;  %v1466_v25 = vld [vmem:[#allocation3 + $0x34] sm:$0x1] }
 0x2e6   : > { %v4178_v44 = vcombine.low %v1936_v35, %v1950_v17  ;;  %v1385_v26 = vrot.slane %v1383_v55, 4  ;;  %v1952_v60 = vshrl.u32 %v1887_v27, 16  ;;  %v1955_v49 = vshll.u32 %v1887_v27, 16  ;;  %v1467_v32 = vld [vmem:[#allocation3 + $0x38] sm:$0xe] }
 0x2e7   : > { %v1375_v29 = vor.u32 %v1374_v45, %v1371_v34  ;;  %v1388_v28 = vrot.slane %v1386_v19, 5  ;;  %v1961_v30 = vshll.u32 %v1888_v47, 16  ;;  %v1966_v0 = vshrl.u32 %v1889_v18, 16  ;;  %v1468_v63 = vld [vmem:[#allocation3 + $0x3c] sm:$0x1] }
 0x2e8   : > { %2021 = vrot.lane.b32.xlu0 %v4178_v44, %s4647_s24  ;;  %1581 = vrot.lane.b32.xlu1 %v4511_v16, %s4647_s24  ;;  %v1394_v11 = vrot.slane %v1392_v31, 5  ;;  %v1954_v33 = vrot.slane %v1952_v60, 4  ;;  %v1957_v36 = vrot.slane %v1955_v49, 5  ;;  %v1969_v37 = vshll.u32 %v1889_v18, 16  ;;  %v1305_v53 = vld [vmem:[#allocation3 + $0x30] sm:$0xf] }
 0x2e9   : > { %v1376_v38 = vrot.slane %v1375_v29, 4  ;;  %v1389_v42 = vor.u32 %v1388_v28, %v1385_v26  ;;  %v1963_v39 = vrot.slane %v1961_v30, 5  ;;  %v1968_v46 = vrot.slane %v1966_v0, 4  ;;  %v1306_v40 = vld [vmem:[#allocation3 + $0x34] sm:$0x1] }
 0x2ea   : > { %v1958_v52 = vor.u32 %v1957_v36, %v1954_v33  ;;  %v1971_v12 = vrot.slane %v1969_v37, 5  ;;  %v1975_v50 = vshll.u32 %v1890_v23, 16  ;;  %v4147_v51 = vrot.slane %v1465_v24, 9  ;;  %v1307_v14 = vld [vmem:[#allocation3 + $0x38] sm:$0xf] }
 0x2eb   : > { %v1381_v13 = vsel %vm5153_vm4, %v1376_v38, %v1380_v58  ;;  %v1390_v54 = vrot.slane %v1389_v42, 4  ;;  %v1514_v20 = vrot.slane %v1466_v25, 5  ;;  %v4148_v21 = vrot.slane %v1467_v32, 9  ;;  %v1308_v6 = vld [vmem:[#allocation3 + $0x3c] sm:$0x1] }
 0x2ec   : > { %1824 = vrot.lane.b32.xlu0 %v4172_v43, %s4648_s21  ;;  %v1959_v57 = vrot.slane %v1958_v52, 4  ;;  %v1972_v1 = vor.u32 %v1971_v12, %v1968_v46  ;;  %v1977_v2 = vrot.slane %v1975_v50, 5  ;;  %v1518_v3 = vrot.slane %v1468_v63, 5  ;;  %v1891_v17 = vld [vmem:[#allocation3 + $0x40] sm:$0xf] }
 0x2ed   : > { %v1395_v41 = vsel %vm5153_vm4, %v1390_v54, %v1394_v11  ;;  %v1515_v48 = vsel %vm5099_vm13, %v4147_v51, %v1514_v20  ;;  %v1397_v35 = vshrl.u32 %v1305_v53, 16  ;;  %v1400_v62 = vshll.u32 %v1305_v53, 16  ;;  %v1892_v58 = vld [vmem:[#allocation3 + $0x44] sm:$0x1]  ;;  %v1595_v31 = vld [vmem:[#allocation3 + $0xc] sm:$0x1] }
 0x2ee   : > { %v4139_v7 = vcombine.low %v1381_v13, %v1395_v41  ;;  %v1964_v9 = vsel %vm5153_vm4, %v1959_v57, %v1963_v39  ;;  %v1973_v10 = vrot.slane %v1972_v1, 4  ;;  %v1519_v27 = vsel %vm5099_vm13, %v4148_v21, %v1518_v3  ;;  %v1596_v60 = vld [vmem:[#allocation3 + $0x10] sm:$0xf]  ;;  %v1597_v30 = vld [vmem:[#allocation3 + $0x14] sm:$0x1] }
 0x2ef   : > { %v1399_v16 = vrot.slane %v1397_v35, 4  ;;  %v1402_v43 = vrot.slane %v1400_v62, 5  ;;  %v1406_v34 = vshll.u32 %v1306_v40, 16  ;;  %v2006_v55 = vsel %vm5153_vm4, %v5089_v61, %v5162_v59  ;;  %v1594_v36 = vld [vmem:[#allocation3 + $0x8] sm:$0xf] }
 0x2f0   : > { %1440 = vrot.lane.b32.xlu1 %v4139_v7, %s4648_s21  ;;  %v1978_v47 = vsel %vm5153_vm4, %v1973_v10, %v1977_v2  ;;  %v1411_v18 = vshrl.u32 %v1307_v14, 16  ;;  %v1414_v44 = vshll.u32 %v1307_v14, 16  ;;  %v1420_v45 = vshll.u32 %v1308_v6, 16  ;;  %v1598_v46 = vld [vmem:[#allocation3 + $0x18] sm:$0xf] }
 0x2f1   : > { %v4179_v19 = vcombine.low %v1964_v9, %v1978_v47  ;;  %v4152_v23 = vcombine.low %v1515_v48, %v1519_v27  ;;  %v1403_v24 = vor.u32 %v1402_v43, %v1399_v16  ;;  %v1980_v26 = vshrl.u32 %v1891_v17, 16  ;;  %v4512_v63 = vld [vmem:[#allocation3 + $0x40] ss:$8 sps:$4 sm:$0xff]   ;;  %v1599_v21 = vld [vmem:[#allocation3 + $0x1c] sm:$0x1] }
 0x2f2   : > { %v1408_v49 = vrot.slane %v1406_v34, 5  ;;  %v1413_v25 = vrot.slane %v1411_v18, 4  ;;  %v1416_v29 = vrot.slane %v1414_v44, 5  ;;  %v1983_v28 = vshll.u32 %v1891_v17, 16  ;;  %v1600_v3 = vld [vmem:[#allocation3 + $0x20] sm:$0xf] }
 0x2f3   : > { %2023 = vrot.lane.b32.xlu0 %v4179_v19, %s4647_s24  ;;  %v1404_v0 = vrot.slane %v1403_v24, 4  ;;  %v1422_v32 = vrot.slane %v1420_v45, 5  ;;  %v1982_v11 = vrot.slane %v1980_v26, 4  ;;  %v1989_v33 = vshll.u32 %v1892_v58, 16  ;;  %v1601_v6 = vld [vmem:[#allocation3 + $0x24] sm:$0x1] }
 0x2f4   : > { %1538 = vrot.lane.b32.xlu1 %v4152_v23, %s4646_s22  ;;  %v1417_v37 = vor.u32 %v1416_v29, %v1413_v25  ;;  %v1985_v38 = vrot.slane %v1983_v28, 5  ;;  %v1625_v42 = vshrl.u32 %v1596_v60, 16  ;;  %v1628_v39 = vshll.u32 %v1596_v60, 16  ;;  %v1602_v62 = vld [vmem:[#allocation3 + $0x28] sm:$0xf]  ;;  %v5264_v44 = vld [vmem:[%s5887_s13] sm:$0xff]  }
 0x2f5   : > { %v1409_v52 = vsel %vm5153_vm4, %v1404_v0, %v1408_v49  ;;  %v1991_v12 = vrot.slane %v1989_v33, 5  ;;  %v1620_v50 = vshll.u32 %v1595_v31, 16  ;;  %v1634_v51 = vshll.u32 %v1597_v30, 16  ;;  %v1603_v17 = vld [vmem:[#allocation3 + $0x2c] sm:$0x1]  ;;  %4455 = vmatprep.subr.bf16.mxu0 %v5264_v44 }
 0x2f6   : > { %v1418_v53 = vrot.slane %v1417_v37, 4  ;;  %v1986_v13 = vor.u32 %v1985_v38, %v1982_v11  ;;  %v1627_v54 = vrot.slane %v1625_v42, 4  ;;  %v1630_v20 = vrot.slane %v1628_v39, 5  ;;  %v1604_v18 = vld [vmem:[#allocation3 + $0x30] sm:$0xf] }
 0x2f7   : > { %1869 = vrot.lane.b32.xlu0 %v4512_v63, %s4646_s22  ;;  %v1636_v57 = vrot.slane %v1634_v51, 5  ;;  %v1611_v1 = vshrl.u32 %v1594_v36, 16  ;;  %v1614_v2 = vshll.u32 %v1594_v36, 16  ;;  %v1639_v40 = vshrl.u32 %v1598_v46, 16  ;;  %v4513_v58 = vld [vmem:[#allocation3 + $0x38] ss:$8 sps:$4 sm:$0xff]  }
 0x2f8   : > { %v1423_v41 = vsel %vm5153_vm4, %v1418_v53, %v1422_v32  ;;  %v1987_v48 = vrot.slane %v1986_v13, 4  ;;  %v1631_v14 = vor.u32 %v1630_v20, %v1627_v54  ;;  %v1642_v35 = vshll.u32 %v1598_v46, 16  ;;  %v4524_v26 = vld [vmem:[#allocation3] ss:$8 sps:$4 sm:$0xff]   ;;  %v4529_v59 = vld [vmem:[#allocation3 + $0x10] ss:$8 sps:$4 sm:$0xff]  }
 0x2f9   : > { %v4140_v7 = vcombine.low %v1409_v52, %v1423_v41  ;;  %v1613_v9 = vrot.slane %v1611_v1, 4  ;;  %v1616_v10 = vrot.slane %v1614_v2, 5  ;;  %v1641_v27 = vrot.slane %v1639_v40, 4  ;;  %1289 = vst.msk [vmem:[#allocation5] sm:$0xff] %vm752_vm3, %v4524_v26  ;;  %v1605_v32 = vld [vmem:[#allocation3 + $0x34] sm:$0x1] }
 0x2fa   : > { %v1992_v16 = vsel %vm5153_vm4, %v1987_v48, %v1991_v12  ;;  %v1632_v43 = vrot.slane %v1631_v14, 4  ;;  %v1644_v34 = vrot.slane %v1642_v35, 5  ;;  %v1648_v47 = vshll.u32 %v1599_v21, 16  ;;  %1290 = vst.msk [vmem:[#allocation5 + $0x18] sm:$0xff] %vm752_vm3, %v4529_v59  ;;  %v1606_v39 = vld [vmem:[#allocation3 + $0x38] sm:$0xf] }
 0x2fb   : > { %1442 = vrot.lane.b32.xlu1 %v4140_v7, %s4648_s21  ;;  %v4180_v45 = vcombine.low %v1992_v16, %v2006_v55  ;;  %v1617_v19 = vor.u32 %v1616_v10, %v1613_v9  ;;  %v1653_v23 = vshrl.u32 %v1600_v3, 16  ;;  %v1656_v24 = vshll.u32 %v1600_v3, 16  ;;  %v1607_v46 = vld [vmem:[#allocation3 + $0x3c] sm:$0x1]  ;;  %v4532_v2 = vld [vmem:[#allocation3 + $0x20] ss:$8 sps:$4 sm:$0xff]  }
 0x2fc   : > { %v1622_v31 = vrot.slane %v1620_v50, 5  ;;  %v1637_v60 = vsel %vm5153_vm4, %v1632_v43, %v1636_v57  ;;  %v1645_v49 = vor.u32 %v1644_v34, %v1641_v27  ;;  %v1662_v25 = vshll.u32 %v1601_v6, 16  ;;  %v1608_v50 = vld [vmem:[#allocation3 + $0x40] sm:$0xf]  ;;  %v1609_v41 = vld [vmem:[#allocation3 + $0x44] sm:$0x1] }
 0x2fd   : > { %2025 = vrot.lane.b32.xlu0 %v4180_v45, %s4647_s24  ;;  %v1618_v29 = vrot.slane %v1617_v19, 4  ;;  %v1655_v28 = vrot.slane %v1653_v23, 4  ;;  %v1658_v30 = vrot.slane %v1656_v24, 5  ;;  %v1667_v61 = vshrl.u32 %v1602_v62, 16  ;;  %1291 = vst.msk [vmem:[#allocation5 + $0x30] sm:$0xff] %vm752_vm3, %v4532_v2 }
 0x2fe   : > { %v1646_v55 = vrot.slane %v1645_v49, 4  ;;  %v1650_v0 = vrot.slane %v1648_v47, 5  ;;  %v1670_v11 = vshll.u32 %v1602_v62, 16  ;;  %v1676_v33 = vshll.u32 %v1603_v17, 16  ;;  %v4533_v17 = vld [vmem:[#allocation3 + $0x30] ss:$8 sps:$4 sm:$0xff]  }
 0x2ff   : > { %1583 = vrot.lane.b32.xlu1 %v4513_v58, %s4647_s24  ;;  %v1623_v36 = vsel %vm5153_vm4, %v1618_v29, %v1622_v31  ;;  %v1659_v37 = vor.u32 %v1658_v30, %v1655_v28  ;;  %v1669_v38 = vrot.slane %v1667_v61, 4  ;;  %v1681_v42 = vshrl.u32 %v1604_v18, 16  ;;  %1292 = vst.msk [vmem:[#allocation5 + $0x48] sm:$0xff] %vm752_vm3, %v4533_v17  ;;  %v4630_v17 = vld [vmem:[#allocation2 + $0x28] sm:$0xff] }
 0x300   : > { %v4157_v63 = vcombine.low %v1623_v36, %v1637_v60  ;;  %v1664_v52 = vrot.slane %v1662_v25, 5  ;;  %v1672_v12 = vrot.slane %v1670_v11, 5  ;;  %v1651_v51 = vsel %vm5153_vm4, %v1646_v55, %v1650_v0 }
 0x301   : > { %v1660_v53 = vrot.slane %v1659_v37, 4  ;;  %v1683_v13 = vrot.slane %v1681_v42, 4  ;;  %v1684_v54 = vshll.u32 %v1604_v18, 16  ;;  %v1678_v21 = vrot.slane %v1676_v33, 5 }
 0x302   : > { %1738 = vst.msk [vmem:[#allocation5 + $0x8] sm:$0xff] %vm752_vm3, %v4157_v63  ;;  %v1673_v20 = vor.u32 %v1672_v12, %v1669_v38  ;;  %v1690_v57 = vshll.u32 %v1605_v32, 16  ;;  %v1695_v1 = vshrl.u32 %v1606_v39, 16  ;;  %v1698_v48 = vshll.u32 %v1606_v39, 16 }
 0x303   : > { %v1665_v3 = vsel %vm5153_vm4, %v1660_v53, %v1664_v52  ;;  %v1686_v40 = vrot.slane %v1684_v54, 5  ;;  %v1704_v62 = vshll.u32 %v1607_v46, 16  ;;  %v1709_v10 = vshrl.u32 %v1608_v50, 16  ;;  %v4535_v52 = vld [vmem:[%s5887_s13 + $0x8] sm:$0xff]  }
 0x304   : > { %v4158_v14 = vcombine.low %v1651_v51, %v1665_v3  ;;  %v1674_v6 = vrot.slane %v1673_v20, 4  ;;  %v1697_v35 = vrot.slane %v1695_v1, 4  ;;  %v1700_v9 = vrot.slane %v1698_v48, 5 }
 0x305   : > { %v1687_v7 = vor.u32 %v1686_v40, %v1683_v13  ;;  %v1712_v27 = vshll.u32 %v1608_v50, 16  ;;  %v1692_v43 = vrot.slane %v1690_v57, 5  ;;  %v1718_v34 = vshll.u32 %v1609_v41, 16 }
 0x306   : > { %1739 = vst.msk [vmem:[#allocation5 + $0x20] sm:$0xff] %vm752_vm3, %v4158_v14  ;;  %v1679_v16 = vsel %vm5153_vm4, %v1674_v6, %v1678_v21  ;;  %v1701_v18 = vor.u32 %v1700_v9, %v1697_v35  ;;  %v1711_v45 = vrot.slane %v1709_v10, 4  ;;  %v1706_v24 = vrot.slane %v1704_v62, 5  ;;  %v4625_v6 = vld [vmem:[#allocation2] sm:$0xff]  ;;  %v4626_v35 = vld [vmem:[#allocation2 + $0x8] sm:$0xff]  ;;  %v4628_v9 = vld [vmem:[#allocation2 + $0x18] sm:$0xff] }
 0x307   : > { %v1688_v47 = vrot.slane %v1687_v7, 4  ;;  %v1714_v58 = vrot.slane %v1712_v27, 5  ;;  %v1720_v25 = vrot.slane %v1718_v34, 5  ;;  %vm1544_vm8 = vcmask 785920   ;;  %v4627_v7 = vld [vmem:[#allocation2 + $0x10] sm:$0xff]  ;;  %v4629_v27 = vld [vmem:[#allocation2 + $0x20] sm:$0xff] }
 0x308   : > { %v1702_v23 = vrot.slane %v1701_v18, 4  ;;  %v3906_v62 = vpack.c.bf16 %v4626_v35, %v4625_v6  ;;  %v3907_v10 = vpack.c.bf16 %v4628_v9, %v4627_v7  ;;  %v4632_v34 = vld [vmem:[#allocation2 + $0x38] sm:$0xff] }
 0x309   : > { %v1693_v19 = vsel %vm5153_vm4, %v1688_v47, %v1692_v43  ;;  %v1715_v26 = vor.u32 %v1714_v58, %v1711_v45  ;;  %v4631_v43 = vld [vmem:[#allocation2 + $0x30] sm:$0xff] }
 0x30a   : > { %v4159_v31 = vcombine.low %v1679_v16, %v1693_v19  ;;  %v1707_v60 = vsel %vm5153_vm4, %v1702_v23, %v1706_v24  ;;  %v3908_v16 = vpack.c.bf16 %v4630_v17, %v4629_v27  ;;  %v3909_v47 = vpack.c.bf16 %v4632_v34, %v4631_v43 }
 0x30b   : > { %v1716_v49 = vrot.slane %v1715_v26, 4 }
 0x30c   : > { %1740 = vst.msk [vmem:[#allocation5 + $0x38] sm:$0xff] %vm752_vm3, %v4159_v31 }
 0x30d   : > { %v1721_v29 = vsel %vm5153_vm4, %v1716_v49, %v1720_v25  ;;  %v2404_v49 = vld [vmem:[%s5882_s8 + $0x8] sm:$0xff] }
 0x30e   : > { %v4160_v28 = vcombine.low %v1707_v60, %v1721_v29  ;;  %v2403_v60 = vld [vmem:[%s5882_s8] sm:$0xff] }
 0x30f   : > { %v5341_v25 = vpack.c.bf16 %v2404_v49, %v2403_v60 }
 0x310   : > { %1741 = vst.msk [vmem:[#allocation5 + $0x50] sm:$0xff] %vm752_vm3, %v4160_v28  ;;  %v4193_v28 = vld [vmem:[%s5880_s6] ss:$0 sm:$0xff] }
 0x311   : > { %4481 = vmatpush3.bf16.msra.mxu1 %v5341_v25 }
 0x312   : > { %4482 = vmatprep.subr.bf16.mxu1 %v4642_v4 }
 0x32b   : > { %v1864_v30 = vpop.permute.xlu0 %1863 }
 0x32c   : > { %v1578_v61 = vpop.permute.xlu1 %1577 }
 0x333   : > { %v1580_v55 = vpop.permute.xlu1 %1579 }
 0x335   : > { %v1866_v59 = vpop.permute.xlu0 %1865 }
 0x337   : > { %v1533_v32 = vpop.permute.xlu1 %1532 }
 0x339   : > { %v1819_v0 = vpop.permute.xlu0 %1818 }
 0x33a   : > { %1830 = vst.msk [vmem:[#allocation5 + $0x8] sm:$0xff] %vm1448_vm6, %v1819_v0 }
 0x33b   : > { %1875 = vst.msk [vmem:[#allocation5 + $0x8] sm:$0xff] %vm1544_vm8, %v1864_v30 }
 0x33d   : > { %v1821_v11 = vpop.permute.xlu0 %1820 }
 0x33e   : > { %1831 = vst.msk [vmem:[#allocation5 + $0x20] sm:$0xff] %vm1448_vm6, %v1821_v11  ;;  %v1535_v36 = vpop.permute.xlu1 %1534 }
 0x33f   : > { %1876 = vst.msk [vmem:[#allocation5 + $0x20] sm:$0xff] %vm1544_vm8, %v1866_v59 }
 0x342   : > { %v1823_v33 = vpop.permute.xlu0 %1822 }
 0x343   : > { %1832 = vst.msk [vmem:[#allocation5 + $0x38] sm:$0xff] %vm1448_vm6, %v1823_v33 }
 0x349   : > { %v1437_v37 = vpop.permute.xlu1 %1436 }
 0x34a   : > { %1449 = vst.msk [vmem:[#allocation5] sm:$0xff] %vm1448_vm6, %v1437_v37 }
 0x34b   : > { %1545 = vst.msk [vmem:[#allocation5] sm:$0xff] %vm1544_vm8, %v1533_v32 }
 0x34c   : > { %1590 = vst.msk [vmem:[#allocation5] sm:$0xff] %vm1589_vm9, %v1578_v61 }
 0x34d   : > { %v1537_v42 = vpop.permute.xlu1 %1536 }
 0x34f   : > { %v2020_v38 = vpop.permute.xlu0 %2019 }
 0x350   : > { %2031 = vst.msk [vmem:[#allocation5 + $0x8] sm:$0xff] %vm1589_vm9, %v2020_v38 }
 0x353   : > { %v1868_v39 = vpop.permute.xlu0 %1867  ;;  %v2119_v12 = vld [vmem:[#allocation5] sm:$0xff] }
 0x354   : > { %1877 = vst.msk [vmem:[#allocation5 + $0x38] sm:$0xff] %vm1544_vm8, %v1868_v39 }
 0x356   : > { %v1439_v46 = vpop.permute.xlu1 %1438 }
 0x357   : > { %v2120_v63 = vld [vmem:[#allocation5 + $0x8] sm:$0xff]  ;;  %1450 = vst.msk [vmem:[#allocation5 + $0x18] sm:$0xff] %vm1448_vm6, %v1439_v46 }
 0x358   : > { %2290 = vmatprep.mubr.bf16.mxu0 %v2120_v63  ;;  %1546 = vst.msk [vmem:[#allocation5 + $0x18] sm:$0xff] %vm1544_vm8, %v1535_v36 }
 0x359   : > { %2291 = vmatmul.mubr.bf16.vlgmr.msra.gmra.mrb[4].mxu0 %v2119_v12  ;;  %1591 = vst.msk [vmem:[#allocation5 + $0x18] sm:$0xff] %vm1589_vm9, %v1580_v55 }
 0x35a   : > { %v2022_v50 = vpop.permute.xlu0 %2021  ;;  %4456 = vmatpush3.bf16.msra.mxu0 %v5264_v44  ;;  %v1582_v51 = vpop.permute.xlu1 %1581 }
 0x35b   : > { %2032 = vst.msk [vmem:[#allocation5 + $0x20] sm:$0xff] %vm1589_vm9, %v2022_v50  ;;  %4457 = vmatprep.subr.bf16.mxu0 %v4535_v52 }
 0x35e   : > { %v1825_v53 = vpop.permute.xlu0 %1824  ;;  %4458 = vmatpush3.bf16.msra.mxu0 %v4535_v52 }
 0x35f   : > { %1833 = vst.msk [vmem:[#allocation5 + $0x50] sm:$0xff] %vm1448_vm6, %v1825_v53 }
 0x360   : > { %v2122_v20 = vld [vmem:[#allocation5 + $0x18] sm:$0xff] }
 0x362   : > { %v2123_v13 = vld [vmem:[#allocation5 + $0x20] sm:$0xff]  ;;  %v1441_v54 = vpop.permute.xlu1 %1440 }
 0x363   : > { %2298 = vmatprep.mubr.bf16.mxu0 %v2123_v13  ;;  %1451 = vst.msk [vmem:[#allocation5 + $0x30] sm:$0xff] %vm1448_vm6, %v1441_v54 }
 0x364   : > { %2299 = vmatmul.mubr.bf16.gmra.mrb[8].mxu0 %v2122_v20  ;;  %1547 = vst.msk [vmem:[#allocation5 + $0x30] sm:$0xff] %vm1544_vm8, %v1537_v42 }
 0x365   : > { %1592 = vst.msk [vmem:[#allocation5 + $0x30] sm:$0xff] %vm1589_vm9, %v1582_v51  ;;  %v2024_v44 = vpop.permute.xlu0 %2023  ;;  %v4216_v51 = vld [vmem:[%s523_s23] ss:$0 sm:$0xff] }
 0x366   : > { %2033 = vst.msk [vmem:[#allocation5 + $0x38] sm:$0xff] %vm1589_vm9, %v2024_v44  ;;  %v1539_v21 = vpop.permute.xlu1 %1538 }
 0x369   : > { %v1870_v57 = vpop.permute.xlu0 %1869 }
 0x36a   : > { %1878 = vst.msk [vmem:[#allocation5 + $0x50] sm:$0xff] %vm1544_vm8, %v1870_v57 }
 0x36c   : > { %v2125_v3 = vld [vmem:[#allocation5 + $0x30] sm:$0xff] }
 0x36d   : > { %v1443_v1 = vpop.permute.xlu1 %1442  ;;  %v2126_v2 = vld [vmem:[#allocation5 + $0x38] sm:$0xff] }
 0x36e   : > { %1452 = vst.msk [vmem:[#allocation5 + $0x48] sm:$0xff] %vm1448_vm6, %v1443_v1  ;;  %2306 = vmatprep.mubr.bf16.mxu0 %v2126_v2 }
 0x36f   : > { %1548 = vst.msk [vmem:[#allocation5 + $0x48] sm:$0xff] %vm1544_vm8, %v1539_v21  ;;  %v2026_v40 = vpop.permute.xlu0 %2025  ;;  %2307 = vmatmul.mubr.bf16.gmra.mrb[12].mxu0 %v2125_v3 }
 0x370   : > { %2034 = vst.msk [vmem:[#allocation5 + $0x50] sm:$0xff] %vm1589_vm9, %v2026_v40 }
 0x371   : > { %v1584_v41 = vpop.permute.xlu1 %1583 }
 0x372   : > { %1593 = vst.msk [vmem:[#allocation5 + $0x48] sm:$0xff] %vm1589_vm9, %v1584_v41 }
 0x377   : > { %v2129_v48 = vld [vmem:[#allocation5 + $0x50] sm:$0xff] }
 0x378   : > { %2314 = vmatprep.mubr.bf16.mxu0 %v2129_v48 }
 0x379   : > { %v2128_v14 = vld [vmem:[#allocation5 + $0x48] sm:$0xff] }
 0x37a   : > { %2315 = vmatmul.mubr.bf16.gmra.mrb[16].mxu0 %v2128_v14 }
 0x37b   : > { %4459 = vmatprep.mubr.msk.bf16.mxu0 %vm752_vm3, %v3906_v62 }
 0x382   : > { %4460 = vmatmul.mubr.msk.bf16.vlgmr.msra.gmra.mrb[20].mxu0 %vm752_vm3, %v3907_v10 }
 0x383   : > { %4463 = vmatprep.mubr.msk.bf16.mxu0 %vm752_vm3, %v3908_v16 }
 0x38a   : > { %4464 = vmatmul.mubr.msk.bf16.gmra.mrb[24].mxu0 %vm752_vm3, %v3909_v47  ;;  %vm604_vm3 = vcmask 122880  }
 0x38b   : > { %vm5430_vm10 = vmand %vm604_vm3, %vm538_vm7  ;;  %605 = vst.msk [vmem:[#allocation4 + $0x4] sm:$0x1] %vm604_vm3, %v4645_v56 }
 0x38c   : > { %608 = vst.msk [vmem:[#allocation4 + $0x4c] sm:$0x1] %vm604_vm3, %v4645_v56  ;;  %vm5445_vm7 = vmand %vm604_vm3, %vm570_vm5 }
 0x3a5   : > { %v4435_v18 = vpop.f32.mrb[0].mxu1 }
 0x3a6   : > { %v2357_v45 = vpop.f32.mrb[1].mxu1 }
 0x3a7   : > { %v4436_v58 = vpop.f32.mrb[2].mxu1 }
 0x3a8   : > { %v2360_v19 = vpop.f32.mrb[3].mxu1 }
 0x3af   : > { %v5331_v23 = vpop.f32.mrb[4].mxu1 }
 0x3b0   : > { %v2373_v24 = vpop.f32.mrb[5].mxu1 }
 0x3b1   : > { %v5333_v26 = vpop.f32.mrb[6].mxu1 }
 0x3b2   : > { %v2376_v31 = vpop.f32.mrb[7].mxu1 }
 0x42c   : > { %v4365_v29 = vpop.f32.mrb[4].mxu0 }
 0x42d   : > { %v4366_v30 = vpop.f32.mrb[5].mxu0 }
 0x42e   : > { %v4367_v61 = vadd.f32 %v4366_v30, %v4365_v29  ;;  %v4368_v59 = vpop.f32.mrb[6].mxu0 }
 0x42f   : > { %v4369_v55 = vpop.f32.mrb[7].mxu0 }
 0x430   : > { %v2293_v0 = vadd.f32 %v4367_v61, %v4193_v28  ;;  %v4370_v32 = vadd.f32 %v4369_v55, %v4368_v59 }
 0x432   : > { %v2358_v11 = vadd.f32 %v2357_v45, %v2293_v0  ;;  %v2296_v33 = vadd.f32 %v4370_v32, %v4193_v28 }
 0x434   : > { %v2361_v36 = vadd.f32 %v2360_v19, %v2296_v33  ;;  %v2395_v21 = vadd.f32 %v4216_v51, %v2358_v11 }
 0x436   : > { %v5352_v13 = vadd.f32 %v4216_v51, %v2361_v36  ;;  %v2407_v14 = vsel %vm680_vm0, %v2395_v21, 0.0 }
 0x437   : > { %v4371_v37 = vpop.f32.mrb[8].mxu0 }
 0x438   : > { %v4372_v38 = vpop.f32.mrb[9].mxu0  ;;  %v2408_v40 = vsel %vm680_vm0, %v5352_v13, 0.0 }
 0x439   : > { %v4373_v42 = vadd.f32 %v4372_v38, %v4371_v37  ;;  %v4374_v39 = vpop.f32.mrb[10].mxu0  ;;  %v2409_v62 = vadd.f32 %v2408_v40, %v2407_v14 }
 0x43a   : > { %v4375_v4 = vpop.f32.mrb[11].mxu0 }
 0x43b   : > { %v2301_v46 = vadd.f32 %v4373_v42, %v4193_v28  ;;  %v4376_v63 = vadd.f32 %v4375_v4, %v4374_v39 }
 0x43d   : > { %v2366_v52 = vadd.f32 %v4435_v18, %v2301_v46  ;;  %v2304_v12 = vadd.f32 %v4376_v63, %v4193_v28 }
 0x43f   : > { %v2369_v50 = vadd.f32 %v4436_v58, %v2304_v12  ;;  %v2397_v57 = vadd.f32 %v4216_v51, %v2366_v52 }
 0x441   : > { %v2410_v6 = vsel %vm680_vm0, %v2397_v57, 0.0  ;;  %v2398_v35 = vadd.f32 %v4216_v51, %v2369_v50 }
 0x442   : > { %v4377_v53 = vpop.f32.mrb[12].mxu0  ;;  %v2411_v10 = vadd.f32 %v2410_v6, %v2409_v62 }
 0x443   : > { %v4378_v54 = vpop.f32.mrb[13].mxu0  ;;  %v2412_v27 = vsel %vm680_vm0, %v2398_v35, 0.0 }
 0x444   : > { %v4379_v20 = vadd.f32 %v4378_v54, %v4377_v53  ;;  %v4380_v44 = vpop.f32.mrb[14].mxu0  ;;  %v2413_v45 = vadd.f32 %v2412_v27, %v2411_v10 }
 0x445   : > { %v4381_v1 = vpop.f32.mrb[15].mxu0 }
 0x446   : > { %v2309_v2 = vadd.f32 %v4379_v20, %v4193_v28  ;;  %v4382_v3 = vadd.f32 %v4381_v1, %v4380_v44 }
 0x448   : > { %v2374_v41 = vadd.f32 %v2373_v24, %v2309_v2  ;;  %v2312_v48 = vadd.f32 %v4382_v3, %v4193_v28 }
 0x44a   : > { %v2377_v7 = vadd.f32 %v2376_v31, %v2312_v48  ;;  %v2399_v9 = vadd.f32 %v4216_v51, %v2374_v41 }
 0x44c   : > { %v2414_v43 = vsel %vm680_vm0, %v2399_v9, 0.0  ;;  %v2400_v34 = vadd.f32 %v4216_v51, %v2377_v7 }
 0x44d   : > { %v4383_v17 = vpop.f32.mrb[16].mxu0  ;;  %v2415_v60 = vadd.f32 %v2414_v43, %v2413_v45 }
 0x44e   : > { %v4384_v16 = vpop.f32.mrb[17].mxu0  ;;  %v2416_v49 = vsel %vm680_vm0, %v2400_v34, 0.0 }
 0x44f   : > { %v4385_v47 = vadd.f32 %v4384_v16, %v4383_v17  ;;  %v4386_v18 = vpop.f32.mrb[18].mxu0  ;;  %v2417_v55 = vadd.f32 %v2416_v49, %v2415_v60 }
 0x450   : > { %v4387_v58 = vpop.f32.mrb[19].mxu0 }
 0x451   : > { %v2317_v19 = vadd.f32 %v4385_v47, %v4193_v28  ;;  %v4388_v24 = vadd.f32 %v4387_v58, %v4386_v18 }
 0x453   : > { %v2382_v31 = vadd.f32 %v5331_v23, %v2317_v19  ;;  %v2320_v29 = vadd.f32 %v4388_v24, %v4193_v28 }
 0x455   : > { %v2401_v30 = vadd.f32 %v4216_v51, %v2382_v31  ;;  %v2385_v61 = vadd.f32 %v5333_v26, %v2320_v29  ;;  %v5363_v59 = vpop.f32.mrb[20].mxu0 }
 0x456   : > { %v5365_v0 = vpop.f32.mrb[21].mxu0 }
 0x457   : > { %v2418_v32 = vsel %vm680_vm0, %v2401_v30, 0.0  ;;  %v2402_v11 = vadd.f32 %v4216_v51, %v2385_v61  ;;  %v5368_v33 = vpop.f32.mrb[22].mxu0 }
 0x458   : > { %v2419_v36 = vadd.f32 %v2418_v32, %v2417_v55  ;;  %v5370_v37 = vpop.f32.mrb[23].mxu0  ;;  %v617_v55 = vld [vmem:[#allocation4 + $0x10] sm:$0x1]  ;;  %v620_v32 = vld [vmem:[#allocation4 + $0x18] sm:$0x1] }
 0x459   : > { %v2420_v38 = vsel %vm680_vm0, %v2402_v11, 0.0 }
 0x45a   : > { %v2421_v23 = vadd.f32 %v2420_v38, %v2419_v36  ;;  %v648_v36 = vld [vmem:[#allocation4 + $0x14] sm:$0x1]  ;;  %v651_v38 = vld [vmem:[#allocation4 + $0x1c] sm:$0x1] }
 0x45c   : > { %v2422_v28 = vrot.slane %v2421_v23, 4 }
 0x45d   : > { %v5373_v42 = vpop.f32.mrb[24].mxu0 }
 0x45e   : > { %v2423_v26 = vadd.f32 %v2422_v28, %v2421_v23  ;;  %v5375_v39 = vpop.f32.mrb[25].mxu0  ;;  %v618_v23 = vsel %vm5430_vm10, 0, %v617_v55  ;;  %v621_v28 = vsel %vm5430_vm10, 0, %v620_v32 }
 0x45f   : > { %v5377_v4 = vpop.f32.mrb[26].mxu0  ;;  %619 = vst [vmem:[#allocation4 + $0x10] sm:$0x1] %v618_v23  ;;  %622 = vst [vmem:[#allocation4 + $0x18] sm:$0x1] %v621_v28 }
 0x460   : > { %v2424_v46 = vrot.slane %v2423_v26, 2  ;;  %v5379_v63 = vpop.f32.mrb[27].mxu0 }
 0x462   : > { %v2425_v52 = vadd.f32 %v2424_v46, %v2423_v26  ;;  %v649_v46 = vsel %vm5445_vm7, 0, %v648_v36  ;;  %v4220_v26 = vld [vmem:[%s5884_s10] ss:$0 sm:$0xff] }
 0x463   : > { %650 = vst [vmem:[#allocation4 + $0x14] sm:$0x1] %v649_v46 }
 0x464   : > { %v2426_v12 = vrot.slane %v2425_v52, 1 }
 0x466   : > { %v2427_v50 = vadd.f32 %v2426_v12, %v2425_v52  ;;  %v652_v52 = vsel %vm5445_vm7, 0, %v651_v38  ;;  %v614_v12 = vld [vmem:[#allocation4 + $0x8] sm:$0x1]  ;;  %v4219_v38 = vld [vmem:[%s5883_s9] ss:$0 sm:$0xff] }
 0x467   : > { %653 = vst [vmem:[#allocation4 + $0x1c] sm:$0x1] %v652_v52 }
 0x468   : > { %4446 = vmatmul.mubr.msk.f32.vlgmr.msra.gmra.mrb[8].mxu1 %vm680_vm0, %v2427_v50  ;;  %v623_v50 = vld [vmem:[#allocation4 + $0x20] sm:$0x1] }
 0x469   : > { %4484 = vmatpush3.bf16.msra.mxu1 %v5341_v25  ;;  %4452 = vmatprep.mubr.msk.f32.mxu1 %vm4643_vm1, %v4644_v5  ;;  %vm602_vm1 = vcmask 125952  }
 0x46a   : > { %3841 = vmatprep.subr.bf16.mxu1 %v4645_v56  ;;  %603 = vst.msk [vmem:[#allocation4] sm:$0xf] %vm602_vm1, %v4645_v56  ;;  %607 = vst.msk [vmem:[#allocation4 + $0x48] sm:$0xf] %vm602_vm1, %v4645_v56 }
 0x46b   : > { %vm5533_vm11 = vmand %vm602_vm1, %vm570_vm5  ;;  %vm3173_vm5 = vcmask 392448  }
 0x53b   : > { %v2497_v51 = vpop.f32.mrb[8].mxu1 }
 0x53c   : > { %v2504_v53 = vrot.slane %v2497_v51, %v4828_v8  ;;  %v4447_v54 = vpop.f32.mrb[9].mxu1  ;;  %v615_v51 = vsel %vm5430_vm10, 0, %v614_v12 }
 0x53d   : > { %616 = vst [vmem:[#allocation4 + $0x8] sm:$0x1] %v615_v51  ;;  %v626_v54 = vld [vmem:[#allocation4 + $0x28] sm:$0x1] }
 0x53e   : > { %v5387_v20 = vsub.f32 %v2395_v21, %v2504_v53  ;;  %v5390_v44 = vsub.f32 %v5352_v13, %v2504_v53  ;;  %v5392_v1 = vsub.f32 %v2397_v57, %v2504_v53  ;;  %v5394_v2 = vsub.f32 %v2398_v35, %v2504_v53 }
 0x53f   : > { %v5396_v3 = vsub.f32 %v2399_v9, %v2504_v53  ;;  %v5404_v21 = vsub.f32 %v2400_v34, %v2504_v53  ;;  %v5410_v14 = vsub.f32 %v2401_v30, %v2504_v53  ;;  %v5415_v7 = vsub.f32 %v2402_v11, %v2504_v53 }
 0x540   : > { %v2513_v5 = vmul.f32 %v5387_v20, %v5387_v20  ;;  %v2514_v25 = vmul.f32 %v5390_v44, %v5390_v44  ;;  %v2515_v40 = vmul.f32 %v5392_v1, %v5392_v1  ;;  %v2516_v13 = vmul.f32 %v5394_v2, %v5394_v2 }
 0x541   : > { %v2517_v6 = vmul.f32 %v5396_v3, %v5396_v3  ;;  %v2518_v9 = vmul.f32 %v5404_v21, %v5404_v21  ;;  %v2519_v17 = vmul.f32 %v5410_v14, %v5410_v14  ;;  %v2520_v34 = vmul.f32 %v5415_v7, %v5415_v7 }
 0x542   : > { %v2521_v57 = vsel %vm680_vm0, %v2513_v5, 0.0  ;;  %v2522_v41 = vsel %vm680_vm0, %v2514_v25, 0.0  ;;  %v2524_v35 = vsel %vm680_vm0, %v2515_v40, 0.0  ;;  %v2526_v10 = vsel %vm680_vm0, %v2516_v13, 0.0  ;;  %v629_v5 = vld [vmem:[#allocation4 + $0x30] sm:$0x1] }
 0x543   : > { %v2523_v48 = vadd.f32 %v2522_v41, %v2521_v57  ;;  %v2528_v16 = vsel %vm680_vm0, %v2517_v6, 0.0  ;;  %v2530_v47 = vsel %vm680_vm0, %v2518_v9, 0.0  ;;  %v2532_v45 = vsel %vm680_vm0, %v2519_v17, 0.0  ;;  %v642_v13 = vld [vmem:[#allocation4 + $0x4] sm:$0x1] }
 0x544   : > { %v2534_v19 = vsel %vm680_vm0, %v2520_v34, 0.0  ;;  %v624_v53 = vsel %vm5430_vm10, 0, %v623_v50  ;;  %v627_v25 = vsel %vm5430_vm10, 0, %v626_v54  ;;  %v630_v40 = vsel %vm5430_vm10, 0, %v629_v5  ;;  %v645_v57 = vld [vmem:[#allocation4 + $0xc] sm:$0x1] }
 0x545   : > { %v2525_v62 = vadd.f32 %v2524_v35, %v2523_v48  ;;  %625 = vst [vmem:[#allocation4 + $0x20] sm:$0x1] %v624_v53  ;;  %628 = vst [vmem:[#allocation4 + $0x28] sm:$0x1] %v627_v25  ;;  %v643_v41 = vsel %vm5445_vm7, 0, %v642_v13  ;;  %v646_v48 = vsel %vm5445_vm7, 0, %v645_v57 }
 0x546   : > { %631 = vst [vmem:[#allocation4 + $0x30] sm:$0x1] %v630_v40  ;;  %644 = vst [vmem:[#allocation4 + $0x4] sm:$0x1] %v643_v41  ;;  %v654_v6 = vld [vmem:[#allocation4 + $0x24] sm:$0x1] }
 0x547   : > { %v2527_v27 = vadd.f32 %v2526_v10, %v2525_v62  ;;  %647 = vst [vmem:[#allocation4 + $0xc] sm:$0x1] %v646_v48  ;;  %v657_v35 = vld [vmem:[#allocation4 + $0x2c] sm:$0x1]  ;;  %v655_v62 = vsel %vm5445_vm7, 0, %v654_v6 }
 0x548   : > { %v658_v9 = vsel %vm5445_vm7, 0, %v657_v35  ;;  %v632_v10 = vld [vmem:[#allocation4 + $0x38] sm:$0x1]  ;;  %656 = vst [vmem:[#allocation4 + $0x24] sm:$0x1] %v655_v62 }
 0x549   : > { %v2529_v43 = vadd.f32 %v2528_v16, %v2527_v27  ;;  %659 = vst [vmem:[#allocation4 + $0x2c] sm:$0x1] %v658_v9  ;;  %v633_v27 = vsel %vm5430_vm10, 0, %v632_v10  ;;  %v611_v17 = vld [vmem:[#allocation4] sm:$0x1] }
 0x54a   : > { %634 = vst [vmem:[#allocation4 + $0x38] sm:$0x1] %v633_v27  ;;  %v612_v16 = vsel %vm5430_vm10, 0, %v611_v17  ;;  %v635_v34 = vld [vmem:[#allocation4 + $0x40] sm:$0x1] }
 0x54b   : > { %v2531_v18 = vadd.f32 %v2530_v47, %v2529_v43  ;;  %613 = vst [vmem:[#allocation4] sm:$0x1] %v612_v16  ;;  %v660_v43 = vld [vmem:[#allocation4 + $0x34] sm:$0x1] }
 0x54c   : > { %v661_v47 = vsel %vm5445_vm7, 0, %v660_v43 }
 0x54d   : > { %v2533_v58 = vadd.f32 %v2532_v45, %v2531_v18  ;;  %v636_v18 = vsel %vm5430_vm10, 0, %v635_v34  ;;  %662 = vst [vmem:[#allocation4 + $0x34] sm:$0x1] %v661_v47  ;;  %v663_v45 = vld [vmem:[#allocation4 + $0x3c] sm:$0x1] }
 0x54e   : > { %637 = vst [vmem:[#allocation4 + $0x40] sm:$0x1] %v636_v18 }
 0x54f   : > { %v2535_v24 = vadd.f32 %v2534_v19, %v2533_v58  ;;  %v664_v58 = vsel %vm5445_vm7, 0, %v663_v45  ;;  %v666_v19 = vld [vmem:[#allocation4 + $0x44] sm:$0x1] }
 0x550   : > { %665 = vst [vmem:[#allocation4 + $0x3c] sm:$0x1] %v664_v58 }
 0x551   : > { %v2536_v60 = vrot.slane %v2535_v24, 4 }
 0x553   : > { %v2537_v49 = vadd.f32 %v2536_v60, %v2535_v24  ;;  %v667_v24 = vsel %vm5445_vm7, 0, %v666_v19 }
 0x554   : > { %668 = vst [vmem:[#allocation4 + $0x44] sm:$0x1] %v667_v24 }
 0x555   : > { %v2538_v31 = vrot.slane %v2537_v49, 2 }
 0x557   : > { %v2539_v29 = vadd.f32 %v2538_v31, %v2537_v49 }
 0x559   : > { %v2540_v30 = vrot.slane %v2539_v29, 1 }
 0x55b   : > { %v2541_v61 = vadd.f32 %v2540_v30, %v2539_v29  ;;  %v638_v29 = vld [vmem:[#allocation4 + $0x48] sm:$0x1]  ;;  %v669_v30 = vld [vmem:[#allocation4 + $0x4c] sm:$0x1] }
 0x55c   : > { %v670_v55 = vsel %vm5445_vm7, 0, %v669_v30 }
 0x55d   : > { %4453 = vmatmul.mubr.msk.f32.vlgmr.msra.gmra.mrb[10].mxu1 %vm680_vm0, %v2541_v61  ;;  %v639_v61 = vsel %vm5430_vm10, 0, %v638_v29  ;;  %671 = vst [vmem:[#allocation4 + $0x4c] sm:$0x1] %v670_v55 }
 0x55e   : > { %640 = vst [vmem:[#allocation4 + $0x48] sm:$0x1] %v639_v61 }
 0x630   : > { %v2611_v60 = vpop.f32.mrb[10].mxu1 }
 0x631   : > { %v2612_v49 = vadd.f32 1e-06, %v2611_v60  ;;  %v4454_v31 = vpop.f32.mrb[11].mxu1  ;;  %v2929_v60 = vld [vmem:[#allocation4] sm:$0xf] }
 0x632   : > { %v2946_v30 = vshrl.u32 %v2929_v60, 16  ;;  %v2949_v61 = vshll.u32 %v2929_v60, 16 }
 0x633   : > { %4591 = vrsqrt.f32 %v2612_v49 }
 0x63d   : > { %v4592_v32 = vpop.eup %4591 }
 0x63e   : > { %v2619_v36 = vrot.slane %v4592_v32, %v4828_v8  ;;  %v5515_v32 = vrot.slane %v2946_v30, 4 }
 0x640   : > { %v2620_v23 = vmul.f32 %v2619_v36, %v5387_v20  ;;  %v2621_v28 = vmul.f32 %v2619_v36, %v5390_v44  ;;  %v2622_v46 = vmul.f32 %v2619_v36, %v5392_v1  ;;  %v2623_v52 = vmul.f32 %v2619_v36, %v5394_v2 }
 0x641   : > { %v2624_v12 = vmul.f32 %v2619_v36, %v5396_v3  ;;  %v2625_v8 = vmul.f32 %v2619_v36, %v5404_v21  ;;  %v2626_v50 = vmul.f32 %v2619_v36, %v5410_v14  ;;  %v2627_v44 = vmul.f32 %v2619_v36, %v5415_v7 }
 0x642   : > { %v2634_v51 = vmul.f32 %v4219_v38, %v2620_v23  ;;  %v2635_v53 = vmul.f32 %v4219_v38, %v2621_v28  ;;  %v2636_v54 = vmul.f32 %v4219_v38, %v2622_v46  ;;  %v2637_v20 = vmul.f32 %v4219_v38, %v2623_v52  ;;  %v5519_v23 = vld [vmem:[#allocation4 + $0x4] sm:$0x1]  ;;  %v5521_v52 = vld [vmem:[#allocation4 + $0x48] sm:$0xf] }
 0x643   : > { %v2638_v5 = vmul.f32 %v4219_v38, %v2624_v12  ;;  %v2639_v1 = vmul.f32 %v4219_v38, %v2625_v8  ;;  %v2640_v21 = vmul.f32 %v4219_v38, %v2626_v50  ;;  %v2641_v35 = vmul.f32 %v4219_v38, %v2627_v44 }
 0x644   : > { %v2648_v25 = vadd.f32 %v4220_v26, %v2634_v51  ;;  %v2649_v2 = vadd.f32 %v4220_v26, %v2635_v53  ;;  %v2650_v40 = vadd.f32 %v4220_v26, %v2636_v54  ;;  %v5500_v13 = vadd.f32 %v4220_v26, %v2637_v20 }
 0x645   : > { %v5502_v57 = vadd.f32 %v4220_v26, %v2638_v5  ;;  %v5504_v3 = vadd.f32 %v4220_v26, %v2639_v1  ;;  %v5509_v9 = vadd.f32 %v4220_v26, %v2640_v21  ;;  %v5511_v10 = vadd.f32 %v4220_v26, %v2641_v35 }
 0x646   : > { %v4221_v41 = vmul.f32 -1.442695, %v2648_v25  ;;  %v4222_v14 = vmul.f32 -1.442695, %v2649_v2  ;;  %v4223_v48 = vmul.f32 -1.442695, %v2650_v40 }
 0x647   : > { %v4224_v6 = vmul.f32 -1.442695, %v5500_v13  ;;  %v4225_v7 = vmul.f32 -1.442695, %v5502_v57  ;;  %v4226_v62 = vmul.f32 -1.442695, %v5504_v3 }
 0x648   : > { %4593 = vpow2.f32 %v4221_v41  ;;  %v4227_v27 = vmul.f32 -1.442695, %v5509_v9  ;;  %v4228_v17 = vmul.f32 -1.442695, %v5511_v10  ;;  %v5517_v36 = vrot.slane %v2949_v61, 5 }
 0x649   : > { %4595 = vpow2.f32 %v4222_v14  ;;  %v2955_v53 = vshll.u32 %v5519_v23, 16  ;;  %v3634_v5 = vshrl.u32 %v5521_v52, 16  ;;  %v3637_v1 = vshll.u32 %v5521_v52, 16  ;;  %v4546_v23 = vld [vmem:[%s5885_s11 + $0x10] sm:$0xff]  }
 0x64a   : > { %4597 = vpow2.f32 %v4223_v48  ;;  %v2952_v51 = vor.u32 %v5517_v36, %v5515_v32 }
 0x64b   : > { %4599 = vpow2.f32 %v4224_v6 }
 0x64c   : > { %4601 = vpow2.f32 %v4225_v7 }
 0x64d   : > { %4603 = vpow2.f32 %v4226_v62 }
 0x64e   : > { %4605 = vpow2.f32 %v4227_v27 }
 0x64f   : > { %4607 = vpow2.f32 %v4228_v17 }
 0x652   : > { %v4594_v16 = vpop.eup %4593 }
 0x653   : > { %v4596_v43 = vpop.eup %4595  ;;  %v2680_v34 = vadd.f32 1.0, %v4594_v16 }
 0x654   : > { %v4598_v47 = vpop.eup %4597  ;;  %v2681_v18 = vadd.f32 1.0, %v4596_v43 }
 0x655   : > { %v4600_v45 = vpop.eup %4599  ;;  %v2682_v58 = vadd.f32 1.0, %v4598_v47  ;;  %4609 = vrcp.f32 %v2680_v34  ;;  %v2833_v34 = vld [vmem:[#allocation4 + $0x10] sm:$0xf]  ;;  %v2836_v47 = vld [vmem:[#allocation4 + $0x14] sm:$0x1] }
 0x656   : > { %v4602_v19 = vpop.eup %4601  ;;  %v2683_v24 = vadd.f32 1.0, %v4600_v45  ;;  %4611 = vrcp.f32 %v2681_v18 }
 0x657   : > { %v4604_v49 = vpop.eup %4603  ;;  %v2684_v31 = vadd.f32 1.0, %v4602_v19  ;;  %4613 = vrcp.f32 %v2682_v58  ;;  %v2839_v19 = vld [vmem:[#allocation4 + $0x18] sm:$0xf] }
 0x658   : > { %v2685_v29 = vadd.f32 1.0, %v4604_v49  ;;  %4615 = vrcp.f32 %v2683_v24  ;;  %v4606_v55 = vpop.eup %4605 }
 0x659   : > { %4617 = vrcp.f32 %v2684_v31  ;;  %v4608_v38 = vpop.eup %4607  ;;  %v2686_v46 = vadd.f32 1.0, %v4606_v55  ;;  %v2842_v31 = vld [vmem:[#allocation4 + $0x1c] sm:$0x1]  ;;  %v4544_v55 = vld [vmem:[%s5885_s11] sm:$0xff]  }
 0x65a   : > { %4619 = vrcp.f32 %v2685_v29  ;;  %v2687_v41 = vadd.f32 1.0, %v4608_v38  ;;  %3842 = vmatpush1.bf16.msra.mxu1 %v4544_v55  ;;  %v5584_v55 = vrot.slane %v2952_v51, 4 }
 0x65b   : > { %4621 = vrcp.f32 %v2686_v46  ;;  %3843 = vmatprep.subr.bf16.mxu1 %v4645_v56 }
 0x65c   : > { %4623 = vrcp.f32 %v2687_v41 }
 0x65f   : > { %v4610_v28 = vpop.eup %4609 }
 0x660   : > { %v4612_v26 = vpop.eup %4611  ;;  %v2704_v12 = vmul.f32 %v4610_v28, %v2648_v25 }
 0x661   : > { %v4614_v8 = vpop.eup %4613  ;;  %v2705_v50 = vmul.f32 %v4612_v26, %v2649_v2  ;;  %v2845_v26 = vld [vmem:[#allocation4 + $0x20] sm:$0xf] }
 0x662   : > { %v4616_v54 = vpop.eup %4615  ;;  %v2706_v20 = vmul.f32 %v4614_v8, %v2650_v40  ;;  %v4331_v44 = vpack.c.bf16 %v2704_v12, %v2704_v12  ;;  %v5542_v8 = vld [vmem:[#allocation4] sm:$0xe] }
 0x663   : > { %v4618_v21 = vpop.eup %4617  ;;  %v4332_v14 = vpack.c.bf16 %v2705_v50, %v2705_v50  ;;  %v2707_v25 = vmul.f32 %v4616_v54, %v5500_v13 }
 0x664   : > { %v4620_v48 = vpop.eup %4619  ;;  %v4333_v2 = vpack.c.bf16 %v2706_v20, %v2706_v20  ;;  %v2745_v6 = vshrl.u32 %v4331_v44, 16  ;;  %v2748_v35 = vshll.u32 %v4331_v44, 16  ;;  %v2708_v7 = vmul.f32 %v4618_v21, %v5502_v57  ;;  %v2827_v57 = vld [vmem:[#allocation4 + $0x8] sm:$0xf] }
 0x665   : > { %v2753_v62 = vshrl.u32 %v4332_v14, 16  ;;  %v2756_v27 = vshll.u32 %v4332_v14, 16  ;;  %v4334_v40 = vpack.c.bf16 %v2707_v25, %v2707_v25  ;;  %v2709_v17 = vmul.f32 %v4620_v48, %v5504_v3  ;;  %v2851_v21 = vld [vmem:[#allocation4 + $0x28] sm:$0xf]  ;;  %v2830_v14 = vld [vmem:[#allocation4 + $0xc] sm:$0x1] }
 0x666   : > { %v2761_v16 = vshrl.u32 %v4333_v2, 16  ;;  %v2764_v43 = vshll.u32 %v4333_v2, 16  ;;  %v2747_v18 = vrot.slane %v2745_v6, 7  ;;  %v4335_v45 = vpack.c.bf16 %v2708_v7, %v2708_v7  ;;  %v2854_v7 = vld [vmem:[#allocation4 + $0x2c] sm:$0x1] }
 0x667   : > { %v2755_v58 = vrot.slane %v2753_v62, 7  ;;  %v2769_v24 = vshrl.u32 %v4334_v40, 16  ;;  %v2772_v60 = vshll.u32 %v4334_v40, 16  ;;  %v5537_v49 = vpack.c.bf16 %v2709_v17, %v2709_v17 }
 0x668   : > { %v2763_v3 = vrot.slane %v2761_v16, 7  ;;  %v2750_v29 = vor.u32 %v2748_v35, %v2747_v18  ;;  %v2751_v30 = vrot.slane %v2747_v18, 4  ;;  %v2777_v61 = vshrl.u32 %v4335_v45, 16  ;;  %v2848_v35 = vld [vmem:[#allocation4 + $0x24] sm:$0x1] }
 0x669   : > { %v2758_v38 = vor.u32 %v2756_v27, %v2755_v58  ;;  %v2759_v28 = vrot.slane %v2755_v58, 4  ;;  %v2771_v46 = vrot.slane %v2769_v24, 7  ;;  %v2780_v12 = vshll.u32 %v4335_v45, 16  ;;  %v5555_v16 = vld [vmem:[#allocation4 + $0x4] sm:$0x1] }
 0x66a   : > { %v2766_v50 = vor.u32 %v2764_v43, %v2763_v3  ;;  %v2767_v54 = vrot.slane %v2763_v3, 4  ;;  %v2828_v20 = vsel %vm5533_vm11, %v2750_v29, %v2827_v57  ;;  %v2779_v44 = vrot.slane %v2777_v61, 7  ;;  %v4545_v43 = vld [vmem:[%s5885_s11 + $0x8] sm:$0xff]   ;;  %v3534_v24 = vld [vmem:[#allocation4 + $0x4c] sm:$0x1] }
 0x66b   : > { %v2834_v25 = vsel %vm5533_vm11, %v2758_v38, %v2833_v34  ;;  %v2837_v48 = vsel %vm5430_vm10, %v2759_v28, %v2836_v47  ;;  %2829 = vst [vmem:[#allocation4 + $0x8] sm:$0xf] %v2828_v20  ;;  %v2774_v2 = vor.u32 %v2772_v60, %v2771_v46  ;;  %v2775_v6 = vrot.slane %v2771_v46, 4  ;;  %v4622_v34 = vpop.eup %4621  ;;  %3844 = vmatpush1.bf16.msra.mxu1 %v4545_v43  ;;  %v5572_v60 = vld [vmem:[#allocation4 + $0x48] sm:$0xe] }
 0x66c   : > { %2835 = vst [vmem:[#allocation4 + $0x10] sm:$0xf] %v2834_v25  ;;  %2838 = vst [vmem:[#allocation4 + $0x14] sm:$0x1] %v2837_v48  ;;  %v2840_v62 = vsel %vm5533_vm11, %v2766_v50, %v2839_v19  ;;  %v2843_v27 = vsel %vm5430_vm10, %v2767_v54, %v2842_v31  ;;  %v2782_v40 = vor.u32 %v2780_v12, %v2779_v44  ;;  %v2783_v17 = vrot.slane %v2779_v44, 4 }
 0x66d   : > { %2841 = vst [vmem:[#allocation4 + $0x18] sm:$0xf] %v2840_v62  ;;  %2844 = vst [vmem:[#allocation4 + $0x1c] sm:$0x1] %v2843_v27  ;;  %v2846_v47 = vsel %vm5533_vm11, %v2774_v2, %v2845_v26  ;;  %v2785_v18 = vshrl.u32 %v5537_v49, 16  ;;  %v2831_v45 = vsel %vm5430_vm10, %v2751_v30, %v2830_v14  ;;  %v4245_v19 = vrot.slane %v5542_v8, 9  ;;  %3845 = vmatprep.subr.bf16.mxu1 %v4645_v56 }
 0x66e   : > { %2847 = vst [vmem:[#allocation4 + $0x20] sm:$0xf] %v2846_v47  ;;  %v2852_v58 = vsel %vm5533_vm11, %v2782_v40, %v2851_v21  ;;  %2832 = vst [vmem:[#allocation4 + $0xc] sm:$0x1] %v2831_v45  ;;  %v2849_v41 = vsel %vm5430_vm10, %v2775_v6, %v2848_v35  ;;  %v2855_v57 = vsel %vm5430_vm10, %v2783_v17, %v2854_v7  ;;  %v2788_v31 = vshll.u32 %v5537_v49, 16  ;;  %v4624_v21 = vpop.eup %4623 }
 0x66f   : > { %2853 = vst [vmem:[#allocation4 + $0x28] sm:$0xf] %v2852_v58  ;;  %v2787_v3 = vrot.slane %v2785_v18, 7  ;;  %v2857_v29 = vld [vmem:[#allocation4 + $0x30] sm:$0xf]  ;;  %v3119_v30 = vrot.slane %v5555_v16, 5  ;;  %3846 = vmatpush1.bf16.msra.mxu1 %v4546_v23  ;;  %v2710_v27 = vmul.f32 %v4622_v34, %v5509_v9  ;;  %v2711_v9 = vmul.f32 %v4624_v21, %v5511_v10 }
 0x670   : > { %2850 = vst [vmem:[#allocation4 + $0x24] sm:$0x1] %v2849_v41  ;;  %2856 = vst [vmem:[#allocation4 + $0x2c] sm:$0x1] %v2855_v57  ;;  %v5578_v61 = vrot.slane %v2955_v53, 5  ;;  %v5588_v49 = vrot.slane %v3634_v5, 4  ;;  %3847 = vmatprep.subr.bf16.mxu1 %v4645_v56 }
 0x671   : > { %v2860_v38 = vld [vmem:[#allocation4 + $0x34] sm:$0x1]  ;;  %v5592_v28 = vrot.slane %v3637_v1, 5  ;;  %v2790_v53 = vor.u32 %v2788_v31, %v2787_v3  ;;  %v2791_v46 = vrot.slane %v2787_v3, 4  ;;  %v3643_v26 = vshll.u32 %v3534_v24, 16 }
 0x672   : > { %v5597_v12 = vld [vmem:[#allocation4 + $0x4c] sm:$0x1]  ;;  %v4292_v32 = vrot.slane %v5572_v60, 9  ;;  %v3087_v36 = vld [vmem:[#allocation4 + $0x8] sm:$0xe]  ;;  %v3120_v40 = vsel %vm5099_vm13, %v4245_v19, %v3119_v30 }
 0x673   : > { %v3380_v51 = vld [vmem:[#allocation4 + $0x8] sm:$0xe]  ;;  %v2858_v52 = vsel %vm5533_vm11, %v2790_v53, %v2857_v29  ;;  %v2861_v1 = vsel %vm5430_vm10, %v2791_v46, %v2860_v38  ;;  %v5606_v50 = vrot.slane %v3643_v26, 5  ;;  %v3738_v54 = vrot.slane %v5597_v12, 5  ;;  %v3676_v48 = vld [vmem:[#allocation4 + $0x10] sm:$0xe] }
 0x674   : > { %v4537_v5 = vld [vmem:[#allocation4 + $0x8] ss:$8 sps:$4 sm:$0xff]   ;;  %2859 = vst [vmem:[#allocation4 + $0x30] sm:$0xf] %v2858_v52  ;;  %2862 = vst [vmem:[#allocation4 + $0x34] sm:$0x1] %v2861_v1  ;;  %v4337_v46 = vpack.c.bf16 %v2710_v27, %v2710_v27 }
 0x675   : > { %v4536_v8 = vld [vmem:[#allocation4 + $0x10] ss:$8 sps:$4 sm:$0xff]   ;;  %3206 = vrot.lane.b32.xlu0 %v4537_v5, %s4649_s25  ;;  %v3088_v14 = vld [vmem:[#allocation4 + $0xc] sm:$0x1]  ;;  %v4246_v25 = vrot.slane %v3087_v36, 9  ;;  %v4265_v2 = vrot.slane %v3380_v51, 9 }
 0x676   : > { %3502 = vrot.lane.b32.xlu1 %v4536_v8, %s4647_s24  ;;  %v4538_v20 = vld [vmem:[#allocation4 + $0x18] ss:$8 sps:$4 sm:$0xff]   ;;  %v3123_v6 = vrot.slane %v3088_v14, 5  ;;  %v3677_v35 = vld [vmem:[#allocation4 + $0x14] sm:$0x1]  ;;  %v4285_v62 = vrot.slane %v3676_v48, 9  ;;  %v5628_v14 = vpack.c.bf16 %v2711_v9, %v2711_v9 }
 0x677   : > { %v4539_v44 = vld [vmem:[#allocation4 + $0x20] ss:$8 sps:$4 sm:$0xff]   ;;  %v3678_v7 = vld [vmem:[#allocation4 + $0x18] sm:$0xe]  ;;  %v3679_v17 = vld [vmem:[#allocation4 + $0x1c] sm:$0x1] }
 0x678   : > { %v3710_v16 = vrot.slane %v3677_v35, 5  ;;  %v4286_v43 = vrot.slane %v3678_v7, 9  ;;  %v3381_v47 = vld [vmem:[#allocation4 + $0xc] sm:$0x1]  ;;  %v3124_v18 = vsel %vm5099_vm13, %v4246_v25, %v3123_v6  ;;  %v3714_v45 = vrot.slane %v3679_v17, 5 }
 0x679   : > { %3504 = vrot.lane.b32.xlu0 %v4539_v44, %s4647_s24  ;;  %v3382_v58 = vld [vmem:[#allocation4 + $0x10] sm:$0xe]  ;;  %v3383_v41 = vld [vmem:[#allocation4 + $0x14] sm:$0x1]  ;;  %v3414_v57 = vrot.slane %v3381_v47, 5  ;;  %v4253_v31 = vcombine.low %v3120_v40, %v3124_v18  ;;  %v4547_v7 = vld [vmem:[%s5885_s11 + $0x18] sm:$0xff]  }
 0x67a   : > { %3208 = vrot.lane.b32.xlu1 %v4538_v20, %s4649_s25  ;;  %v3711_v24 = vsel %vm5099_vm13, %v4285_v62, %v3710_v16  ;;  %v4266_v19 = vrot.slane %v3382_v58, 9  ;;  %v3418_v3 = vrot.slane %v3383_v41, 5  ;;  %v3715_v29 = vsel %vm5099_vm13, %v4286_v43, %v3714_v45  ;;  %v3384_v38 = vld [vmem:[#allocation4 + $0x18] sm:$0xe]  ;;  %v3385_v23 = vld [vmem:[#allocation4 + $0x1c] sm:$0x1]  ;;  %3848 = vmatpush1.bf16.msra.mxu1 %v4547_v7 }
 0x67b   : > { %v4540_v34 = vld [vmem:[#allocation4 + $0x28] ss:$8 sps:$4 sm:$0xff]   ;;  %v3415_v30 = vsel %vm5099_vm13, %v4265_v2, %v3414_v57  ;;  %v3386_v53 = vld [vmem:[#allocation4 + $0x20] sm:$0xe]  ;;  %v4293_v10 = vcombine.low %v3711_v24, %v3715_v29  ;;  %v3387_v36 = vld [vmem:[#allocation4 + $0x24] sm:$0x1]  ;;  %3849 = vmatprep.subr.bf16.mxu1 %v4645_v56 }
 0x67c   : > { %v3419_v26 = vsel %vm5099_vm13, %v4266_v19, %v3418_v3  ;;  %v4267_v51 = vrot.slane %v3384_v38, 9  ;;  %v3422_v5 = vrot.slane %v3385_v23, 5  ;;  %v3089_v52 = vld [vmem:[#allocation4 + $0x10] sm:$0xe]  ;;  %v4268_v8 = vrot.slane %v3386_v53, 9 }
 0x67d   : > { %3210 = vrot.lane.b32.xlu0 %v4540_v34, %s4649_s25  ;;  %v4273_v1 = vcombine.low %v3415_v30, %v3419_v26  ;;  %v3426_v20 = vrot.slane %v3387_v36, 5  ;;  %v3090_v44 = vld [vmem:[#allocation4 + $0x14] sm:$0x1]  ;;  %v3091_v21 = vld [vmem:[#allocation4 + $0x18] sm:$0xe]  ;;  %3756 = vst.msk [vmem:[#allocation5 + $0x8] sm:$0xff] %vm680_vm0, %v4293_v10 }
 0x67e   : > { %3161 = vrot.lane.b32.xlu1 %v4253_v31, %s4648_s21  ;;  %v3423_v25 = vsel %vm5099_vm13, %v4267_v51, %v3422_v5  ;;  %v3092_v48 = vld [vmem:[#allocation4 + $0x1c] sm:$0x1]  ;;  %v4247_v2 = vrot.slane %v3089_v52, 9  ;;  %v3127_v6 = vrot.slane %v3090_v44, 5  ;;  %v4248_v35 = vrot.slane %v3091_v21, 9  ;;  %v4548_v31 = vld [vmem:[%s5885_s11 + $0x20] sm:$0xff]  }
 0x67f   : > { %v3427_v62 = vsel %vm5099_vm13, %v4268_v8, %v3426_v20  ;;  %v3131_v27 = vrot.slane %v3092_v48, 5  ;;  %v3093_v40 = vld [vmem:[#allocation4 + $0x20] sm:$0xe]  ;;  %v3094_v17 = vld [vmem:[#allocation4 + $0x24] sm:$0x1]  ;;  %v2793_v16 = vshrl.u32 %v4337_v46, 16  ;;  %3850 = vmatpush1.bf16.msra.mxu1 %v4548_v31 }
 0x680   : > { %v4274_v43 = vcombine.low %v3423_v25, %v3427_v62  ;;  %v3128_v47 = vsel %vm5099_vm13, %v4247_v2, %v3127_v6  ;;  %v3095_v18 = vld [vmem:[#allocation4 + $0x28] sm:$0xe]  ;;  %v3096_v45 = vld [vmem:[#allocation4 + $0x2c] sm:$0x1]  ;;  %v4249_v58 = vrot.slane %v3093_v40, 9  ;;  %v3135_v41 = vrot.slane %v3094_v17, 5  ;;  %3851 = vmatprep.subr.bf16.mxu1 %v4645_v56 }
 0x681   : > { %3456 = vrot.lane.b32.xlu0 %v4273_v1, %s4650_s29  ;;  %v2866_v57 = vld [vmem:[#allocation4 + $0x3c] sm:$0x1]  ;;  %v3132_v9 = vsel %vm5099_vm13, %v4248_v35, %v3131_v27  ;;  %v4250_v34 = vrot.slane %v3095_v18, 9  ;;  %v3139_v24 = vrot.slane %v3096_v45, 5  ;;  %v2795_v19 = vrot.slane %v2793_v16, 7 }
 0x682   : > { %v2863_v3 = vld [vmem:[#allocation4 + $0x38] sm:$0xf]  ;;  %3458 = vrot.lane.b32.xlu1 %v4274_v43, %s4650_s29  ;;  %v4254_v29 = vcombine.low %v3128_v47, %v3132_v9  ;;  %v3136_v30 = vsel %vm5099_vm13, %v4249_v58, %v3135_v41  ;;  %v2796_v38 = vshll.u32 %v4337_v46, 16  ;;  %v2931_v23 = vld [vmem:[#allocation4 + $0x8] sm:$0xf]  ;;  %v2801_v10 = vshrl.u32 %v5628_v14, 16 }
 0x683   : > { %v2932_v53 = vld [vmem:[#allocation4 + $0xc] sm:$0x1]  ;;  %v3140_v26 = vsel %vm5099_vm13, %v4250_v34, %v3139_v24  ;;  %v2799_v36 = vrot.slane %v2795_v19, 4  ;;  %v2960_v51 = vshrl.u32 %v2931_v23, 16  ;;  %v2963_v5 = vshll.u32 %v2931_v23, 16  ;;  %v4550_v1 = vld [vmem:[%s5885_s11 + $0x28] sm:$0xff]  }
 0x684   : > { %v3223_v52 = vld [vmem:[#allocation4 + $0x8] sm:$0xf]  ;;  %v4255_v8 = vcombine.low %v3136_v30, %v3140_v26  ;;  %v2798_v20 = vor.u32 %v2796_v38, %v2795_v19  ;;  %v2969_v46 = vshll.u32 %v2932_v53, 16  ;;  %v3224_v44 = vld [vmem:[#allocation4 + $0xc] sm:$0x1]  ;;  %v3761_v48 = vld [vmem:[#allocation5 + $0x8] sm:$0xff]  ;;  %3852 = vmatpush1.bf16.msra.mxu1 %v4550_v1 }
 0x685   : > { %3163 = vrot.lane.b32.xlu0 %v4254_v29, %s4648_s21  ;;  %v3225_v21 = vld [vmem:[#allocation4 + $0x10] sm:$0xf]  ;;  %v3240_v25 = vshrl.u32 %v3223_v52, 16  ;;  %v2962_v2 = vrot.slane %v2960_v51, 4  ;;  %v2965_v6 = vrot.slane %v2963_v5, 5  ;;  %v3243_v7 = vshll.u32 %v3223_v52, 16  ;;  %4307 = vmatprep.mubr.msk.bf16.mxu1 %vm680_vm0, %v3761_v48 }
 0x686   : > { %v3226_v35 = vld [vmem:[#allocation4 + $0x14] sm:$0x1]  ;;  %v2867_v62 = vsel %vm5430_vm10, %v2799_v36, %v2866_v57  ;;  %3165 = vrot.lane.b32.xlu1 %v4255_v8, %s4648_s21  ;;  %v2864_v27 = vsel %vm5533_vm11, %v2798_v20, %v2863_v3  ;;  %v2971_v40 = vrot.slane %v2969_v46, 5  ;;  %v3249_v16 = vshll.u32 %v3224_v44, 16  ;;  %v3388_v43 = vld [vmem:[#allocation4 + $0x28] sm:$0xe]  ;;  %3853 = vmatprep.subr.bf16.mxu1 %v4645_v56 }
 0x687   : > { %v3242_v17 = vrot.slane %v3240_v25, 4  ;;  %2868 = vst [vmem:[#allocation4 + $0x3c] sm:$0x1] %v2867_v62  ;;  %2865 = vst [vmem:[#allocation4 + $0x38] sm:$0xf] %v2864_v27  ;;  %v2966_v47 = vor.u32 %v2965_v6, %v2962_v2  ;;  %v3245_v18 = vrot.slane %v3243_v7, 5  ;;  %v2958_v57 = vsel %vm5153_vm4, %v5584_v55, %v5578_v61 }
 0x688   : > { %v3254_v45 = vshrl.u32 %v3225_v21, 16  ;;  %v3257_v58 = vshll.u32 %v3225_v21, 16  ;;  %v3389_v41 = vld [vmem:[#allocation4 + $0x2c] sm:$0x1]  ;;  %v3251_v9 = vrot.slane %v3249_v16, 5  ;;  %v3263_v34 = vshll.u32 %v3226_v35, 16 }
 0x689   : > { %v3390_v24 = vld [vmem:[#allocation4 + $0x30] sm:$0xe]  ;;  %v3391_v19 = vld [vmem:[#allocation4 + $0x34] sm:$0x1]  ;;  %v2967_v3 = vrot.slane %v2966_v47, 4  ;;  %v3246_v31 = vor.u32 %v3245_v18, %v3242_v17  ;;  %v4551_v23 = vld [vmem:[%s5885_s11 + $0x30] sm:$0xff]   ;;  %v3640_v17 = vor.u32 %v5592_v28, %v5588_v49 }
 0x68a   : > { %v3256_v29 = vrot.slane %v3254_v45, 4  ;;  %v3259_v30 = vrot.slane %v3257_v58, 5  ;;  %v2933_v38 = vld [vmem:[#allocation4 + $0x10] sm:$0xf]  ;;  %v3265_v53 = vrot.slane %v3263_v34, 5  ;;  %v4269_v26 = vrot.slane %v3388_v43, 9  ;;  %3854 = vmatpush1.bf16.msra.mxu1 %v4551_v23 }
 0x68b   : > { %v3430_v36 = vrot.slane %v3389_v41, 5  ;;  %v4270_v61 = vrot.slane %v3390_v24, 9  ;;  %v2934_v55 = vld [vmem:[#allocation4 + $0x14] sm:$0x1]  ;;  %v2972_v51 = vsel %vm5153_vm4, %v2967_v3, %v2971_v40  ;;  %v3247_v5 = vrot.slane %v3246_v31, 4  ;;  %3855 = vmatprep.subr.bf16.mxu1 %v4645_v56 }
 0x68c   : > { %v3260_v52 = vor.u32 %v3259_v30, %v3256_v29  ;;  %v3434_v1 = vrot.slane %v3391_v19, 5  ;;  %v4241_v8 = vcombine.low %v2958_v57, %v2972_v51  ;;  %v2935_v46 = vld [vmem:[#allocation4 + $0x18] sm:$0xf]  ;;  %v2974_v44 = vshrl.u32 %v2933_v38, 16  ;;  %v2936_v2 = vld [vmem:[#allocation4 + $0x1c] sm:$0x1] }
 0x68d   : > { %v3431_v20 = vsel %vm5099_vm13, %v4269_v26, %v3430_v36  ;;  %v2977_v21 = vshll.u32 %v2933_v38, 16  ;;  %v2983_v6 = vshll.u32 %v2934_v55, 16  ;;  %v3519_v35 = vld [vmem:[#allocation4 + $0x10] sm:$0xf]  ;;  %v3252_v62 = vsel %vm5153_vm4, %v3247_v5, %v3251_v9  ;;  %v3520_v45 = vld [vmem:[#allocation4 + $0x14] sm:$0x1] }
 0x68e   : > { %v3261_v25 = vrot.slane %v3260_v52, 4  ;;  %v3435_v48 = vsel %vm5099_vm13, %v4270_v61, %v3434_v1  ;;  %v4541_v7 = vld [vmem:[#allocation4 + $0x30] ss:$8 sps:$4 sm:$0xff]   ;;  %3069 = vrot.lane.b32.xlu0 %v4241_v8, %s4641_s27  ;;  %v2976_v27 = vrot.slane %v2974_v44, 4  ;;  %v2988_v47 = vshrl.u32 %v2935_v46, 16  ;;  %v4553_v1 = vld [vmem:[%s5885_s11 + $0x38] sm:$0xff]  }
 0x68f   : > { %v2979_v40 = vrot.slane %v2977_v21, 5  ;;  %v4275_v43 = vcombine.low %v3431_v20, %v3435_v48  ;;  %v2991_v18 = vshll.u32 %v2935_v46, 16  ;;  %v3521_v58 = vld [vmem:[#allocation4 + $0x18] sm:$0xf]  ;;  %3506 = vrot.lane.b32.xlu1 %v4541_v7, %s4647_s24  ;;  %v2985_v57 = vrot.slane %v2983_v6, 5  ;;  %3856 = vmatpush1.bf16.msra.mxu1 %v4553_v1 }
 0x690   : > { %v3266_v16 = vsel %vm5153_vm4, %v3261_v25, %v3265_v53  ;;  %v2997_v34 = vshll.u32 %v2936_v2, 16  ;;  %v3522_v24 = vld [vmem:[#allocation4 + $0x1c] sm:$0x1]  ;;  %v3536_v9 = vshrl.u32 %v3519_v35, 16  ;;  %v2990_v3 = vrot.slane %v2988_v47, 4  ;;  %3857 = vmatprep.subr.bf16.mxu1 %v4645_v56 }
 0x691   : > { %v2980_v41 = vor.u32 %v2979_v40, %v2976_v27  ;;  %v4261_v19 = vcombine.low %v3252_v62, %v3266_v16  ;;  %v2993_v31 = vrot.slane %v2991_v18, 5  ;;  %v3539_v29 = vshll.u32 %v3519_v35, 16  ;;  %v3523_v30 = vld [vmem:[#allocation4 + $0x20] sm:$0xf]  ;;  %v3524_v36 = vld [vmem:[#allocation4 + $0x24] sm:$0x1] }
 0x692   : > { %3460 = vrot.lane.b32.xlu0 %v4275_v43, %s4650_s29  ;;  %v3538_v23 = vrot.slane %v3536_v9, 4  ;;  %v3545_v53 = vshll.u32 %v3520_v45, 16  ;;  %v3550_v26 = vshrl.u32 %v3521_v58, 16  ;;  %v2999_v55 = vrot.slane %v2997_v34, 5  ;;  %v3525_v52 = vld [vmem:[#allocation4 + $0x28] sm:$0xf] }
 0x693   : > { %v2981_v38 = vrot.slane %v2980_v41, 4  ;;  %v2994_v61 = vor.u32 %v2993_v31, %v2990_v3  ;;  %v3541_v51 = vrot.slane %v3539_v29, 5  ;;  %v3553_v5 = vshll.u32 %v3521_v58, 16  ;;  %3363 = vrot.lane.b32.xlu1 %v4261_v19, %s4646_s22  ;;  %v3526_v2 = vld [vmem:[#allocation4 + $0x2c] sm:$0x1] }
 0x694   : > { %v3552_v20 = vrot.slane %v3550_v26, 4  ;;  %v3559_v46 = vshll.u32 %v3522_v24, 16  ;;  %v3564_v44 = vshrl.u32 %v3523_v30, 16  ;;  %v3567_v6 = vshll.u32 %v3523_v30, 16  ;;  %v3227_v18 = vld [vmem:[#allocation4 + $0x18] sm:$0xf] }
 0x695   : > { %v2986_v8 = vsel %vm5153_vm4, %v2981_v38, %v2985_v57  ;;  %v2995_v21 = vrot.slane %v2994_v61, 4  ;;  %v3542_v25 = vor.u32 %v3541_v51, %v3538_v23  ;;  %v3555_v48 = vrot.slane %v3553_v5, 5  ;;  %v3228_v45 = vld [vmem:[#allocation4 + $0x1c] sm:$0x1]  ;;  %v3229_v24 = vld [vmem:[#allocation4 + $0x20] sm:$0xf] }
 0x696   : > { %v3547_v35 = vrot.slane %v3545_v53, 5  ;;  %v3566_v7 = vrot.slane %v3564_v44, 4  ;;  %v3573_v62 = vshll.u32 %v3524_v36, 16  ;;  %v3578_v27 = vshrl.u32 %v3525_v52, 16  ;;  %v3230_v26 = vld [vmem:[#allocation4 + $0x24] sm:$0x1] }
 0x697   : > { %v3000_v40 = vsel %vm5153_vm4, %v2995_v21, %v2999_v55  ;;  %v3543_v16 = vrot.slane %v3542_v25, 4  ;;  %v3556_v43 = vor.u32 %v3555_v48, %v3552_v20  ;;  %v3569_v47 = vrot.slane %v3567_v6, 5  ;;  %v2937_v1 = vld [vmem:[#allocation4 + $0x20] sm:$0xf]  ;;  %v2938_v6 = vld [vmem:[#allocation4 + $0x24] sm:$0x1] }
 0x698   : > { %v4242_v58 = vcombine.low %v2986_v8, %v3000_v40  ;;  %v3561_v41 = vrot.slane %v3559_v46, 5  ;;  %v3580_v57 = vrot.slane %v3578_v27, 4  ;;  %v3581_v34 = vshll.u32 %v3525_v52, 16  ;;  %v2939_v27 = vld [vmem:[#allocation4 + $0x28] sm:$0xf] }
 0x699   : > { %v3548_v9 = vsel %vm5153_vm4, %v3543_v16, %v3547_v35  ;;  %v3557_v19 = vrot.slane %v3556_v43, 4  ;;  %v3570_v3 = vor.u32 %v3569_v47, %v3566_v7  ;;  %v3587_v31 = vshll.u32 %v3526_v2, 16  ;;  %v4554_v35 = vld [vmem:[%s5885_s11 + $0x40] sm:$0xff]   ;;  %v3236_v11 = vld [vmem:[#allocation4 + $0x3c] sm:$0x1] }
 0x69a   : > { %3071 = vrot.lane.b32.xlu1 %v4242_v58, %s4641_s27  ;;  %v3575_v56 = vrot.slane %v3573_v62, 5  ;;  %v3583_v29 = vrot.slane %v3581_v34, 5  ;;  %v3268_v30 = vshrl.u32 %v3227_v18, 16  ;;  %v3271_v38 = vshll.u32 %v3227_v18, 16  ;;  %v2869_v58 = vld [vmem:[#allocation4 + $0x40] sm:$0xf]  ;;  %3858 = vmatpush1.bf16.msra.mxu1 %v4554_v35 }
 0x69b   : > { %v3562_v23 = vsel %vm5153_vm4, %v3557_v19, %v3561_v41  ;;  %v3571_v53 = vrot.slane %v3570_v3, 4  ;;  %v3277_v36 = vshll.u32 %v3228_v45, 16  ;;  %v3282_v61 = vshrl.u32 %v3229_v24, 16  ;;  %v2940_v34 = vld [vmem:[#allocation4 + $0x2c] sm:$0x1] }
 0x69c   : > { %v4281_v55 = vcombine.low %v3548_v9, %v3562_v23  ;;  %v3584_v51 = vor.u32 %v3583_v29, %v3580_v57  ;;  %v3270_v5 = vrot.slane %v3268_v30, 4  ;;  %v3273_v52 = vrot.slane %v3271_v38, 5  ;;  %v3231_v9 = vld [vmem:[#allocation4 + $0x28] sm:$0xf] }
 0x69d   : > { %v3576_v8 = vsel %vm5153_vm4, %v3571_v53, %v3575_v56  ;;  %v3589_v20 = vrot.slane %v3587_v31, 5  ;;  %v3284_v46 = vrot.slane %v3282_v61, 4  ;;  %v3285_v44 = vshll.u32 %v3229_v24, 16  ;;  %v3232_v56 = vld [vmem:[#allocation4 + $0x2c] sm:$0x1] }
 0x69e   : > { %3659 = vrot.lane.b32.xlu0 %v4281_v55, %s4651_s16  ;;  %v3585_v21 = vrot.slane %v3584_v51, 4  ;;  %v3274_v25 = vor.u32 %v3273_v52, %v3270_v5  ;;  %v3291_v48 = vshll.u32 %v3230_v26, 16  ;;  %v5707_v2 = vrot.slane %v2801_v10, 7  ;;  %v3233_v53 = vld [vmem:[#allocation4 + $0x30] sm:$0xf] }
 0x69f   : > { %v3287_v7 = vrot.slane %v3285_v44, 5  ;;  %v2804_v62 = vshll.u32 %v5628_v14, 16  ;;  %v3002_v40 = vshrl.u32 %v2937_v1, 16  ;;  %v3005_v16 = vshll.u32 %v2937_v1, 16  ;;  %v3234_v26 = vld [vmem:[#allocation4 + $0x34] sm:$0x1] }
 0x6a0   : > { %v3590_v43 = vsel %vm5153_vm4, %v3585_v21, %v3589_v20  ;;  %v3275_v47 = vrot.slane %v3274_v25, 4  ;;  %v3279_v18 = vrot.slane %v3277_v36, 5  ;;  %v3293_v45 = vrot.slane %v3291_v48, 5  ;;  %v3097_v5 = vld [vmem:[#allocation4 + $0x30] sm:$0xe] }
 0x6a1   : > { %v4282_v10 = vcombine.low %v3576_v8, %v3590_v43  ;;  %v3288_v41 = vor.u32 %v3287_v7, %v3284_v46  ;;  %v2806_v57 = vor.u32 %v2804_v62, %v5707_v2  ;;  %v3004_v24 = vrot.slane %v3002_v40, 4  ;;  %v3098_v46 = vld [vmem:[#allocation4 + $0x34] sm:$0x1]  ;;  %v3099_v48 = vld [vmem:[#allocation4 + $0x38] sm:$0xe] }
 0x6a2   : > { %v2807_v14 = vrot.slane %v5707_v2, 4  ;;  %v3007_v19 = vrot.slane %v3005_v16, 5  ;;  %v3011_v3 = vshll.u32 %v2938_v6, 16  ;;  %v3016_v31 = vshrl.u32 %v2939_v27, 16 }
 0x6a3   : > { %3661 = vrot.lane.b32.xlu1 %v4282_v10, %s4651_s16  ;;  %v3280_v29 = vsel %vm5153_vm4, %v3275_v47, %v3279_v18  ;;  %v3289_v30 = vrot.slane %v3288_v41, 4  ;;  %v2870_v38 = vsel %vm5533_vm11, %v2806_v57, %v2869_v58  ;;  %v3019_v23 = vshll.u32 %v2939_v27, 16  ;;  %v3100_v27 = vld [vmem:[#allocation4 + $0x3c] sm:$0x1]  ;;  %v2941_v18 = vld [vmem:[#allocation4 + $0x30] sm:$0xf] }
 0x6a4   : > { %2871 = vst [vmem:[#allocation4 + $0x40] sm:$0xf] %v2870_v38  ;;  %v3008_v36 = vor.u32 %v3007_v19, %v3004_v24  ;;  %v3018_v61 = vrot.slane %v3016_v31, 4  ;;  %v3025_v55 = vshll.u32 %v2940_v34, 16  ;;  %v3296_v51 = vshrl.u32 %v3231_v9, 16 }
 0x6a5   : > { %v3294_v52 = vsel %vm5153_vm4, %v3289_v30, %v3293_v45  ;;  %v3013_v1 = vrot.slane %v3011_v3, 5  ;;  %v3021_v8 = vrot.slane %v3019_v23, 5  ;;  %v3299_v20 = vshll.u32 %v3231_v9, 16  ;;  %v2942_v57 = vld [vmem:[#allocation4 + $0x34] sm:$0x1] }
 0x6a6   : > { %v4262_v44 = vcombine.low %v3280_v29, %v3294_v52  ;;  %v3009_v21 = vrot.slane %v3008_v36, 4  ;;  %v3298_v13 = vrot.slane %v3296_v51, 4  ;;  %v3305_v25 = vshll.u32 %v3232_v56, 16  ;;  %v2943_v3 = vld [vmem:[#allocation4 + $0x38] sm:$0xf] }
 0x6a7   : > { %v3022_v6 = vor.u32 %v3021_v8, %v3018_v61  ;;  %v3301_v35 = vrot.slane %v3299_v20, 5  ;;  %v3310_v7 = vshrl.u32 %v3233_v53, 16  ;;  %v3313_v62 = vshll.u32 %v3233_v53, 16  ;;  %v2944_v36 = vld [vmem:[#allocation4 + $0x3c] sm:$0x1] }
 0x6a8   : > { %3365 = vrot.lane.b32.xlu0 %v4262_v44, %s4646_s22  ;;  %v3014_v40 = vsel %vm5153_vm4, %v3009_v21, %v3013_v1  ;;  %v3027_v16 = vrot.slane %v3025_v55, 5  ;;  %v3319_v43 = vshll.u32 %v3234_v26, 16  ;;  %v4251_v47 = vrot.slane %v3097_v5, 9  ;;  %v3527_v55 = vld [vmem:[#allocation4 + $0x30] sm:$0xf] }
 0x6a9   : > { %v3023_v45 = vrot.slane %v3022_v6, 4  ;;  %v3302_v58 = vor.u32 %v3301_v35, %v3298_v13  ;;  %v3312_v10 = vrot.slane %v3310_v7, 4  ;;  %v3315_v41 = vrot.slane %v3313_v62, 5  ;;  %v3528_v8 = vld [vmem:[#allocation4 + $0x34] sm:$0x1] }
 0x6aa   : > { %v3307_v34 = vrot.slane %v3305_v25, 5  ;;  %v3143_v24 = vrot.slane %v3098_v46, 5  ;;  %v4252_v9 = vrot.slane %v3099_v48, 9  ;;  %v3147_v19 = vrot.slane %v3100_v27, 5  ;;  %v3529_v13 = vld [vmem:[#allocation4 + $0x38] sm:$0xf] }
 0x6ab   : > { %v4542_v31 = vld [vmem:[#allocation4 + $0x38] ss:$8 sps:$4 sm:$0xff]   ;;  %v3028_v56 = vsel %vm5153_vm4, %v3023_v45, %v3027_v16  ;;  %v3303_v29 = vrot.slane %v3302_v58, 4  ;;  %v3316_v30 = vor.u32 %v3315_v41, %v3312_v10  ;;  %v3030_v38 = vshrl.u32 %v2941_v18, 16  ;;  %v2872_v25 = vld [vmem:[#allocation4 + $0x44] sm:$0x1] }
 0x6ac   : > { %v4243_v23 = vcombine.low %v3014_v40, %v3028_v56  ;;  %v3144_v53 = vsel %vm5099_vm13, %v4251_v47, %v3143_v24  ;;  %v3148_v26 = vsel %vm5099_vm13, %v4252_v9, %v3147_v19  ;;  %v3033_v61 = vshll.u32 %v2941_v18, 16  ;;  %3212 = vrot.lane.b32.xlu1 %v4542_v31, %s4649_s25  ;;  %v3530_v35 = vld [vmem:[#allocation4 + $0x3c] sm:$0x1]  ;;  %v4549_v47 = vld [vmem:[#allocation4] ss:$8 sps:$4 sm:$0xff]  }
 0x6ad   : > { %v3308_v51 = vsel %vm5153_vm4, %v3303_v29, %v3307_v34  ;;  %v3317_v5 = vrot.slane %v3316_v30, 4  ;;  %v3321_v52 = vrot.slane %v3319_v43, 5  ;;  %v3032_v1 = vrot.slane %v3030_v38, 4  ;;  %v3392_v41 = vld [vmem:[#allocation4 + $0x38] sm:$0xe]  ;;  %2925 = vst.msk [vmem:[#allocation5] sm:$0xff] %vm680_vm0, %v4549_v47 }
 0x6ae   : > { %3073 = vrot.lane.b32.xlu0 %v4243_v23, %s4641_s27  ;;  %v3035_v20 = vrot.slane %v3033_v61, 5  ;;  %v3039_v46 = vshll.u32 %v2942_v57, 16  ;;  %v3044_v44 = vshrl.u32 %v2943_v3, 16  ;;  %v3047_v21 = vshll.u32 %v2943_v3, 16  ;;  %v3393_v57 = vld [vmem:[#allocation4 + $0x3c] sm:$0x1] }
 0x6af   : > { %v3322_v48 = vsel %vm5153_vm4, %v3317_v5, %v3321_v52  ;;  %v4256_v6 = vcombine.low %v3144_v53, %v3148_v26  ;;  %v3592_v7 = vshrl.u32 %v3527_v55, 16  ;;  %v3595_v62 = vshll.u32 %v3527_v55, 16  ;;  %v3235_v34 = vld [vmem:[#allocation4 + $0x38] sm:$0xf]  ;;  %v5741_v31 = vld [vmem:[#allocation4 + $0x40] sm:$0xe] }
 0x6b0   : > { %v4263_v27 = vcombine.low %v3308_v51, %v3322_v48  ;;  %v3036_v40 = vor.u32 %v3035_v20, %v3032_v1  ;;  %v3046_v16 = vrot.slane %v3044_v44, 4  ;;  %v3053_v43 = vshll.u32 %v2944_v36, 16  ;;  %v4552_v56 = vld [vmem:[#allocation4 + $0x10] ss:$8 sps:$4 sm:$0xff]   ;;  %v4555_v55 = vld [vmem:[#allocation4 + $0x20] ss:$8 sps:$4 sm:$0xff]  }
 0x6b1   : > { %v3041_v18 = vrot.slane %v3039_v46, 5  ;;  %v3049_v45 = vrot.slane %v3047_v21, 5  ;;  %v3594_v58 = vrot.slane %v3592_v7, 4  ;;  %v3597_v10 = vrot.slane %v3595_v62, 5  ;;  %2926 = vst.msk [vmem:[#allocation5 + $0x18] sm:$0xff] %vm680_vm0, %v4552_v56  ;;  %2927 = vst.msk [vmem:[#allocation5 + $0x30] sm:$0xff] %vm680_vm0, %v4555_v55 }
 0x6b2   : > { %3367 = vrot.lane.b32.xlu1 %v4263_v27, %s4646_s22  ;;  %3167 = vrot.lane.b32.xlu0 %v4256_v6, %s4648_s21  ;;  %v3037_v24 = vrot.slane %v3036_v40, 4  ;;  %v3601_v9 = vshll.u32 %v3528_v8, 16  ;;  %v3606_v19 = vshrl.u32 %v3529_v13, 16  ;;  %v3609_v3 = vshll.u32 %v3529_v13, 16  ;;  %v3237_v20 = vld [vmem:[#allocation4 + $0x40] sm:$0xf] }
 0x6b3   : > { %v3050_v29 = vor.u32 %v3049_v45, %v3046_v16  ;;  %v3598_v30 = vor.u32 %v3597_v10, %v3594_v58  ;;  %v3615_v38 = vshll.u32 %v3530_v35, 16  ;;  %v2873_v23 = vsel %vm5430_vm10, %v2807_v14, %v2872_v25  ;;  %v3531_v21 = vld [vmem:[#allocation4 + $0x40] sm:$0xf]  ;;  %v4556_v40 = vld [vmem:[#allocation4 + $0x30] ss:$8 sps:$4 sm:$0xff]  }
 0x6b4   : > { %v3055_v53 = vrot.slane %v3053_v43, 5  ;;  %v3608_v26 = vrot.slane %v3606_v19, 4  ;;  %v3611_v36 = vrot.slane %v3609_v3, 5  ;;  %2874 = vst [vmem:[#allocation4 + $0x44] sm:$0x1] %v2873_v23  ;;  %v5751_v61 = vrot.slane %v3640_v17, 4 }
 0x6b5   : > { %v3042_v51 = vsel %vm5153_vm4, %v3037_v24, %v3041_v18  ;;  %v3051_v5 = vrot.slane %v3050_v29, 4  ;;  %v3599_v2 = vrot.slane %v3598_v30, 4  ;;  %v3603_v52 = vrot.slane %v3601_v9, 5  ;;  %2928 = vst.msk [vmem:[#allocation5 + $0x48] sm:$0xff] %vm680_vm0, %v4556_v40  ;;  %v3680_v56 = vld [vmem:[#allocation4 + $0x20] sm:$0xe] }
 0x6b6   : > { %v3612_v14 = vor.u32 %v3611_v36, %v3608_v26  ;;  %v4271_v1 = vrot.slane %v3392_v41, 9  ;;  %v3438_v8 = vrot.slane %v3393_v57, 5  ;;  %v3324_v46 = vshrl.u32 %v3235_v34, 16  ;;  %v3682_v55 = vld [vmem:[#allocation4 + $0x28] sm:$0xe] }
 0x6b7   : > { %v3056_v49 = vsel %vm5153_vm4, %v3051_v5, %v3055_v53  ;;  %v3617_v28 = vrot.slane %v3615_v38, 5  ;;  %v4272_v17 = vrot.slane %v5741_v31, 9  ;;  %v3327_v44 = vshll.u32 %v3235_v34, 16  ;;  %v3681_v53 = vld [vmem:[#allocation4 + $0x24] sm:$0x1] }
 0x6b8   : > { %v4244_v13 = vcombine.low %v3042_v51, %v3056_v49  ;;  %v3604_v25 = vsel %vm5153_vm4, %v3599_v2, %v3603_v52  ;;  %v3613_v48 = vrot.slane %v3612_v14, 4  ;;  %v3326_v6 = vrot.slane %v3324_v46, 4  ;;  %v3683_v51 = vld [vmem:[#allocation4 + $0x2c] sm:$0x1]  ;;  %v3684_v5 = vld [vmem:[#allocation4 + $0x30] sm:$0xe] }
 0x6b9   : > { %v3329_v35 = vrot.slane %v3327_v44, 5  ;;  %v3333_v7 = vshll.u32 %v3236_v11, 16  ;;  %v3338_v62 = vshrl.u32 %v3237_v20, 16  ;;  %v3341_v27 = vshll.u32 %v3237_v20, 16 }
 0x6ba   : > { %3075 = vrot.lane.b32.xlu1 %v4244_v13, %s4641_s27  ;;  %v3618_v16 = vsel %vm5153_vm4, %v3613_v48, %v3617_v28  ;;  %v3439_v43 = vsel %vm5099_vm13, %v4271_v1, %v3438_v8  ;;  %v3620_v47 = vshrl.u32 %v3531_v21, 16  ;;  %v3623_v18 = vshll.u32 %v3531_v21, 16  ;;  %v3685_v1 = vld [vmem:[#allocation4 + $0x34] sm:$0x1]  ;;  %v3686_v8 = vld [vmem:[#allocation4 + $0x38] sm:$0xe] }
 0x6bb   : > { %v4283_v45 = vcombine.low %v3604_v25, %v3618_v16  ;;  %v3395_v58 = vld [vmem:[#allocation4 + $0x44] sm:$0x1]  ;;  %v3330_v41 = vor.u32 %v3329_v35, %v3326_v6  ;;  %v3340_v57 = vrot.slane %v3338_v62, 4  ;;  %v3343_v34 = vrot.slane %v3341_v27, 5  ;;  %v3687_v28 = vld [vmem:[#allocation4 + $0x3c] sm:$0x1] }
 0x6bc   : > { %v3238_v10 = vld [vmem:[#allocation4 + $0x44] sm:$0x1]  ;;  %v3442_v24 = vrot.slane %v3395_v58, 5  ;;  %v3622_v3 = vrot.slane %v3620_v47, 4  ;;  %v3625_v31 = vrot.slane %v3623_v18, 5  ;;  %v3335_v30 = vrot.slane %v3333_v7, 5 }
 0x6bd   : > { %v3347_v9 = vshll.u32 %v3238_v10, 16  ;;  %v3532_v19 = vld [vmem:[#allocation4 + $0x44] sm:$0x1]  ;;  %3663 = vrot.lane.b32.xlu0 %v4283_v45, %s4651_s16  ;;  %v3331_v29 = vrot.slane %v3330_v41, 4  ;;  %v3344_v38 = vor.u32 %v3343_v34, %v3340_v57  ;;  %v3646_v49 = vsel %vm5153_vm4, %v5751_v61, %v5606_v50  ;;  %v4543_v47 = vld [vmem:[#allocation4 + $0x40] ss:$8 sps:$4 sm:$0xff]  }
 0x6be   : > { %v3629_v23 = vshll.u32 %v3532_v19, 16  ;;  %v3443_v26 = vsel %vm5099_vm13, %v4272_v17, %v3442_v24  ;;  %v3626_v36 = vor.u32 %v3625_v31, %v3622_v3  ;;  %v3688_v17 = vld [vmem:[#allocation4 + $0x40] sm:$0xe]  ;;  %v3739_v44 = vsel %vm5099_vm13, %v4292_v32, %v3738_v54  ;;  %v3689_v6 = vld [vmem:[#allocation4 + $0x44] sm:$0x1] }
 0x6bf   : > { %v4276_v2 = vcombine.low %v3439_v43, %v3443_v26  ;;  %v3336_v52 = vsel %vm5153_vm4, %v3331_v29, %v3335_v30  ;;  %v3345_v11 = vrot.slane %v3344_v38, 4  ;;  %v3349_v14 = vrot.slane %v3347_v9, 5 }
 0x6c0   : > { %v3627_v20 = vrot.slane %v3626_v36, 4  ;;  %v3631_v46 = vrot.slane %v3629_v23, 5  ;;  %v4287_v13 = vrot.slane %v3680_v56, 9  ;;  %v3718_v25 = vrot.slane %v3681_v53, 5 }
 0x6c1   : > { %3462 = vrot.lane.b32.xlu1 %v4276_v2, %s4650_s29  ;;  %v3350_v21 = vsel %vm5153_vm4, %v3345_v11, %v3349_v14  ;;  %v4288_v48 = vrot.slane %v3682_v55, 9  ;;  %v3722_v61 = vrot.slane %v3683_v51, 5  ;;  %v4289_v12 = vrot.slane %v3684_v5, 9 }
 0x6c2   : > { %v4264_v35 = vcombine.low %v3336_v52, %v3350_v21  ;;  %v3632_v50 = vsel %vm5153_vm4, %v3627_v20, %v3631_v46  ;;  %v3719_v60 = vsel %vm5099_vm13, %v4287_v13, %v3718_v25  ;;  %v3726_v32 = vrot.slane %v3685_v1, 5 }
 0x6c3   : > { %v4284_v7 = vcombine.low %v3632_v50, %v3646_v49  ;;  %v4290_v54 = vrot.slane %v3686_v8, 9  ;;  %v3723_v62 = vsel %vm5099_vm13, %v4288_v48, %v3722_v61  ;;  %v3730_v27 = vrot.slane %v3687_v28, 5  ;;  %v4311_v48 = vld [vmem:[%s5888_s14] ss:$0 sm:$0xff] }
 0x6c4   : > { %3369 = vrot.lane.b32.xlu0 %v4264_v35, %s4646_s22  ;;  %v4291_v40 = vrot.slane %v3688_v17, 9  ;;  %v3734_v16 = vrot.slane %v3689_v6, 5  ;;  %v4294_v15 = vcombine.low %v3719_v60, %v3723_v62  ;;  %v3727_v43 = vsel %vm5099_vm13, %v4289_v12, %v3726_v32  ;;  %v4297_v6 = vld [vmem:[%s5886_s12] ss:$0 sm:$0xff] }
 0x6c5   : > { %3665 = vrot.lane.b32.xlu1 %v4284_v7, %s4651_s16  ;;  %v3731_v18 = vsel %vm5099_vm13, %v4290_v54, %v3730_v27  ;;  %vm3671_vm4 = vcmask 1048448   ;;  %v3980_v50 = vadd.f32 %v4311_v48, %v5365_v0  ;;  %v3983_v60 = vadd.f32 %v4311_v48, %v5370_v37 }
 0x6c6   : > { %v3735_v45 = vsel %vm5099_vm13, %v4291_v40, %v3734_v16  ;;  %3757 = vst.msk [vmem:[#allocation5 + $0x20] sm:$0xff] %vm680_vm0, %v4294_v15  ;;  %v4295_v58 = vcombine.low %v3727_v43, %v3731_v18  ;;  %vm3375_vm13 = vcmask 654848   ;;  %v3988_v40 = vadd.f32 %v5363_v59, %v4311_v48 }
 0x6c7   : > { %v4296_v10 = vcombine.low %v3735_v45, %v3739_v44 }
 0x6c8   : > { %3508 = vrot.lane.b32.xlu0 %v4543_v47, %s4647_s24  ;;  %3758 = vst.msk [vmem:[#allocation5 + $0x38] sm:$0xff] %vm680_vm0, %v4295_v58  ;;  %v3991_v47 = vadd.f32 %v5368_v33, %v4311_v48 }
 0x6c9   : > { %3759 = vst.msk [vmem:[#allocation5 + $0x50] sm:$0xff] %vm680_vm0, %v4296_v10 }
 0x6cd   : > { %v3763_v51 = vld [vmem:[#allocation5 + $0x20] sm:$0xff] }
 0x6cf   : > { %v3765_v1 = vld [vmem:[#allocation5 + $0x38] sm:$0xff] }
 0x6d0   : > { %v3767_v44 = vld [vmem:[#allocation5 + $0x50] sm:$0xff] }
 0x6e7   : > { %v3207_v41 = vpop.permute.xlu0 %3206 }
 0x6e8   : > { %v3503_v57 = vpop.permute.xlu1 %3502 }
 0x6eb   : > { %v3505_v34 = vpop.permute.xlu0 %3504 }
 0x6ec   : > { %v3209_v24 = vpop.permute.xlu1 %3208 }
 0x6ef   : > { %v3211_v9 = vpop.permute.xlu0 %3210 }
 0x6f0   : > { %v3162_v19 = vpop.permute.xlu1 %3161 }
 0x6f3   : > { %v3457_v3 = vpop.permute.xlu0 %3456 }
 0x6f4   : > { %v3459_v31 = vpop.permute.xlu1 %3458 }
 0x6f7   : > { %v3164_v22 = vpop.permute.xlu0 %3163 }
 0x6f8   : > { %v3166_v56 = vpop.permute.xlu1 %3165 }
 0x700   : > { %v3070_v29 = vpop.permute.xlu0 %3069 }
 0x701   : > { %3081 = vst.msk [vmem:[#allocation5] sm:$0xff] %vm729_vm2, %v3070_v29  ;;  %v3507_v30 = vpop.permute.xlu1 %3506 }
 0x702   : > { %3174 = vst.msk [vmem:[#allocation5] sm:$0xff] %vm3173_vm5, %v3162_v19 }
 0x703   : > { %3219 = vst.msk [vmem:[#allocation5] sm:$0xff] %vm3218_vm12, %v3207_v41  ;;  %v3996_v41 = vadd.f32 %v4311_v48, %v5375_v39 }
 0x704   : > { %v3461_v23 = vpop.permute.xlu0 %3460 }
 0x705   : > { %v3364_v38 = vpop.permute.xlu1 %3363 }
 0x706   : > { %3376 = vst.msk [vmem:[#allocation5] sm:$0xff] %vm3375_vm13, %v3364_v38 }
 0x707   : > { %3469 = vst.msk [vmem:[#allocation5] sm:$0xff] %vm3468_vm14, %v3457_v3 }
 0x708   : > { %3515 = vst.msk [vmem:[#allocation5] sm:$0xff] %vm3514_vm15, %v3503_v57 }
 0x70c   : > { %v3072_v53 = vpop.permute.xlu1 %3071 }
 0x70d   : > { %3082 = vst.msk [vmem:[#allocation5 + $0x18] sm:$0xff] %vm729_vm2, %v3072_v53 }
 0x70e   : > { %3175 = vst.msk [vmem:[#allocation5 + $0x18] sm:$0xff] %vm3173_vm5, %v3164_v22  ;;  %v4004_v22 = vadd.f32 %v5373_v42, %v4311_v48 }
 0x70f   : > { %3220 = vst.msk [vmem:[#allocation5 + $0x18] sm:$0xff] %vm3218_vm12, %v3209_v24  ;;  %v3999_v24 = vadd.f32 %v4311_v48, %v5379_v63 }
 0x710   : > { %v3660_v26 = vpop.permute.xlu0 %3659 }
 0x711   : > { %3672 = vst.msk [vmem:[#allocation5] sm:$0xff] %vm3671_vm4, %v3660_v26 }
 0x715   : > { %v3662_v55 = vpop.permute.xlu1 %3661 }
 0x718   : > { %v3760_v36 = vld [vmem:[#allocation5] sm:$0xff] }
 0x719   : > { %3874 = vmatmul.mubr.bf16.vlgmr.msra.gmra.mrb[12].mxu1 %v3760_v36 }
 0x71a   : > { %v3366_v5 = vpop.permute.xlu0 %3365  ;;  %4308 = vmatprep.mubr.msk.bf16.mxu1 %vm680_vm0, %v3763_v51 }
 0x71b   : > { %3377 = vst.msk [vmem:[#allocation5 + $0x18] sm:$0xff] %vm3375_vm13, %v3366_v5 }
 0x71c   : > { %3470 = vst.msk [vmem:[#allocation5 + $0x18] sm:$0xff] %vm3468_vm14, %v3459_v31 }
 0x71d   : > { %3516 = vst.msk [vmem:[#allocation5 + $0x18] sm:$0xff] %vm3514_vm15, %v3505_v34 }
 0x71e   : > { %3673 = vst.msk [vmem:[#allocation5 + $0x18] sm:$0xff] %vm3671_vm4, %v3662_v55  ;;  %v3213_v2 = vpop.permute.xlu1 %3212 }
 0x720   : > { %v3074_v52 = vpop.permute.xlu0 %3073 }
 0x721   : > { %3083 = vst.msk [vmem:[#allocation5 + $0x30] sm:$0xff] %vm729_vm2, %v3074_v52 }
 0x722   : > { %3176 = vst.msk [vmem:[#allocation5 + $0x30] sm:$0xff] %vm3173_vm5, %v3166_v56 }
 0x723   : > { %3221 = vst.msk [vmem:[#allocation5 + $0x30] sm:$0xff] %vm3218_vm12, %v3211_v9 }
 0x724   : > { %v3368_v11 = vpop.permute.xlu1 %3367  ;;  %v3168_v8 = vpop.permute.xlu0 %3167 }
 0x725   : > { %3378 = vst.msk [vmem:[#allocation5 + $0x30] sm:$0xff] %vm3375_vm13, %v3368_v11  ;;  %v3762_v14 = vld [vmem:[#allocation5 + $0x18] sm:$0xff] }
 0x726   : > { %3471 = vst.msk [vmem:[#allocation5 + $0x30] sm:$0xff] %vm3468_vm14, %v3461_v23  ;;  %3882 = vmatmul.mubr.bf16.gmra.mrb[16].mxu1 %v3762_v14 }
 0x727   : > { %3517 = vst.msk [vmem:[#allocation5 + $0x30] sm:$0xff] %vm3514_vm15, %v3507_v30  ;;  %4309 = vmatprep.mubr.msk.bf16.mxu1 %vm680_vm0, %v3765_v1  ;;  %v4007_v30 = vadd.f32 %v5377_v4, %v4311_v48 }
 0x72c   : > { %v3076_v20 = vpop.permute.xlu1 %3075 }
 0x72d   : > { %3084 = vst.msk [vmem:[#allocation5 + $0x48] sm:$0xff] %vm729_vm2, %v3076_v20 }
 0x72e   : > { %3177 = vst.msk [vmem:[#allocation5 + $0x48] sm:$0xff] %vm3173_vm5, %v3168_v8 }
 0x72f   : > { %3222 = vst.msk [vmem:[#allocation5 + $0x48] sm:$0xff] %vm3218_vm12, %v3213_v2  ;;  %v3664_v46 = vpop.permute.xlu0 %3663 }
 0x730   : > { %3674 = vst.msk [vmem:[#allocation5 + $0x30] sm:$0xff] %vm3671_vm4, %v3664_v46 }
 0x733   : > { %v3463_v49 = vpop.permute.xlu1 %3462 }
 0x736   : > { %v3370_v28 = vpop.permute.xlu0 %3369 }
 0x737   : > { %3379 = vst.msk [vmem:[#allocation5 + $0x48] sm:$0xff] %vm3375_vm13, %v3370_v28  ;;  %v3764_v17 = vld [vmem:[#allocation5 + $0x30] sm:$0xff]  ;;  %v3666_v21 = vpop.permute.xlu1 %3665 }
 0x738   : > { %3472 = vst.msk [vmem:[#allocation5 + $0x48] sm:$0xff] %vm3468_vm14, %v3463_v49  ;;  %3890 = vmatmul.mubr.bf16.gmra.mrb[20].mxu1 %v3764_v17 }
 0x739   : > { %4310 = vmatprep.mubr.msk.bf16.mxu1 %vm680_vm0, %v3767_v44 }
 0x73a   : > { %v3509_v13 = vpop.permute.xlu0 %3508 }
 0x73b   : > { %3518 = vst.msk [vmem:[#allocation5 + $0x48] sm:$0xff] %vm3514_vm15, %v3509_v13 }
 0x73c   : > { %3675 = vst.msk [vmem:[#allocation5 + $0x48] sm:$0xff] %vm3671_vm4, %v3666_v21 }
 0x743   : > { %v3766_v25 = vld [vmem:[#allocation5 + $0x48] sm:$0xff] }
 0x744   : > { %3898 = vmatmul.mubr.bf16.gmra.mrb[24].mxu1 %v3766_v25 }
 0x7ec   : > { %v3875_v35 = vpop.f32.mrb[12].mxu1 }
 0x7ed   : > { %v3876_v61 = vadd.f32 %v4297_v6, %v3875_v35  ;;  %v3877_v12 = vpop.f32.mrb[13].mxu1 }
 0x7ee   : > { %v3878_v7 = vpop.f32.mrb[14].mxu1 }
 0x7ef   : > { %v4010_v32 = vadd.f32 %v3980_v50, %v3876_v61  ;;  %v3879_v54 = vadd.f32 %v4297_v6, %v3878_v7  ;;  %v3880_v62 = vpop.f32.mrb[15].mxu1 }
 0x7f1   : > { %4018 = vst.msk [vmem:[%s5846_s19] sm:$0xff] %vm680_vm0, %v4010_v32  ;;  %v4011_v0 = vadd.f32 %v3983_v60, %v3879_v54 }
 0x7f3   : > { %4019 = vst.msk [vmem:[%s5846_s19 + $0x8] sm:$0xff] %vm680_vm0, %v4011_v0 }
 0x7f9   : > { %v3883_v27 = vpop.f32.mrb[16].mxu1 }
 0x7fa   : > { %v3884_v16 = vadd.f32 %v4297_v6, %v3883_v27  ;;  %v3885_v15 = vpop.f32.mrb[17].mxu1 }
 0x7fb   : > { %v3886_v43 = vpop.f32.mrb[18].mxu1 }
 0x7fc   : > { %v4012_v37 = vadd.f32 %v3988_v40, %v3884_v16  ;;  %v3887_v18 = vadd.f32 %v4297_v6, %v3886_v43  ;;  %v3888_v45 = vpop.f32.mrb[19].mxu1 }
 0x7fe   : > { %4020 = vst.msk [vmem:[%s5846_s19 + $0x10] sm:$0xff] %vm680_vm0, %v4012_v37  ;;  %v4013_v58 = vadd.f32 %v3991_v47, %v3887_v18 }
 0x800   : > { %4021 = vst.msk [vmem:[%s5846_s19 + $0x18] sm:$0xff] %vm680_vm0, %v4013_v58 }
 0x80b   : > { %v3891_v10 = vpop.f32.mrb[20].mxu1 }
 0x80c   : > { %v3892_v57 = vadd.f32 %v4297_v6, %v3891_v10  ;;  %v3893_v59 = vpop.f32.mrb[21].mxu1 }
 0x80d   : > { %v3894_v34 = vpop.f32.mrb[22].mxu1 }
 0x80e   : > { %v4014_v33 = vadd.f32 %v3996_v41, %v3892_v57  ;;  %v3895_v9 = vadd.f32 %v4297_v6, %v3894_v34  ;;  %v3896_v19 = vpop.f32.mrb[23].mxu1 }
 0x810   : > { %4022 = vst.msk [vmem:[%s5846_s19 + $0x20] sm:$0xff] %vm680_vm0, %v4014_v33  ;;  %v4015_v3 = vadd.f32 %v3999_v24, %v3895_v9 }
 0x812   : > { %4023 = vst.msk [vmem:[%s5846_s19 + $0x28] sm:$0xff] %vm680_vm0, %v4015_v3 }
 0x817   : > { %v3899_v31 = vpop.f32.mrb[24].mxu1 }
 0x818   : > { %v3900_v56 = vadd.f32 %v4297_v6, %v3899_v31  ;;  %v3901_v39 = vpop.f32.mrb[25].mxu1 }
 0x819   : > { %v3902_v29 = vpop.f32.mrb[26].mxu1 }
 0x81a   : > { %v4016_v38 = vadd.f32 %v4004_v22, %v3900_v56  ;;  %v3903_v63 = vadd.f32 %v4297_v6, %v3902_v29  ;;  %v3904_v23 = vpop.f32.mrb[27].mxu1 }
 0x81c   : > { %4024 = vst.msk [vmem:[%s5846_s19 + $0x30] sm:$0xff] %vm680_vm0, %v4016_v38  ;;  %v4017_v53 = vadd.f32 %v4007_v30, %v3903_v63 }
 0x81e   : > { %4025 = vst.msk [vmem:[%s5846_s19 + $0x38] sm:$0xff] %vm680_vm0, %v4017_v53 }
 0x81f PF: > { %s25_s18 = sadd.s32 1, %s4639_s18  }
 0x820   : > { %p22_p4 = scmp.ge.s32.totalorder %s25_s18, 4  }
 0x822   :  { %24 = sbr.rel (!%p22_p4) target bundleno = 1 (0x1), region = 122 }

</bundles_post_ra>
